<compile_context>
chip_gen: v7x
topology: tpu7x:2x2x1
jax: 0.10.0
libtpu: 0.0.40
codegen_flags: <defaults>
</compile_context>

<pallas_src>
import math

import jax
import jax.numpy as jnp
from jax import lax
from jax.experimental import pallas as pl
from jax.experimental.pallas import tpu as pltpu

# ----------------------------- hyper-params (small) -----------------------------
B = 2            # number of graphs in the batch
N_NODES = 8      # nodes per graph  -> M = N_NODES + 1 candidates (with EOS)
EMBED_DIM = 32   # d_model
NUM_HEADS = 4
HIDDEN_DIM = 64  # dim_feedforward
SEQ_LEN = 8      # decoder target length (teacher sequence length)
NUM_LAYERS = 2
MAX_TRUCKS = 3

T = SEQ_LEN + 1                      # start token + SEQ_LEN teacher tokens
M = N_NODES + 1                      # candidates + eos
M_PAD = 128                          # lane-dense padded candidate count (logit lanes)
CA_KEYS = ((M + 7) // 8) * 8         # sublane-aligned key count for cross-attention
NT = MAX_TRUCKS * T                  # all truck tokens of one graph, flattened
HEAD_DIM = EMBED_DIM // NUM_HEADS
LN_EPS = 1e-5


# ----------------------------- Pallas kernel -----------------------------
def _decoder_kernel(seq_ref, mem_ref, smask_ref, kmask_ref,
                    sa_in_w_ref, sa_in_b_ref, sa_out_w_ref, sa_out_b_ref,
                    ca_in_w_ref, ca_in_b_ref, ca_out_w_ref, ca_out_b_ref,
                    ff_w1_ref, ff_b1_ref, ff_w2_ref, ff_b2_ref,
                    ln_g_ref, ln_b_ref,
                    logits_ref):
    D = EMBED_DIM
    nH = NUM_HEADS
    dh = HEAD_DIM
    scale = 1.0 / math.sqrt(dh)
    f32 = jnp.float32

    x = seq_ref[...].astype(f32)        # (NT, D)        all trucks flattened
    mem = mem_ref[...].astype(f32)      # (M_PAD, D)     zero-padded candidates (+eos)
    mem_kv = mem[:CA_KEYS, :]           # (CA_KEYS, D)   sublane-aligned slice for K/V
    smask = smask_ref[...]              # (NT, NT)       block-diag causal mask (const)
    kmask = kmask_ref[...]              # (1, CA_KEYS)   key-padding mask (const)

    def layer_norm(v, g, b):
        mu = jnp.mean(v, axis=-1, keepdims=True)
        c = v - mu
        var = jnp.mean(c * c, axis=-1, keepdims=True)
        return c * lax.rsqrt(var + LN_EPS) * g + b

    def attend(q, k, v, mask, out_w, out_b):
        # q: (Nq, D) already scaled by 1/sqrt(dh); k, v: (Nk, D); mask bcast (Nq, Nk)
        heads = []
        for h in range(nH):
            sl = slice(h * dh, (h + 1) * dh)
            s = jnp.einsum('nd,md->nm', q[:, sl], k[:, sl],
                           preferred_element_type=f32) + mask
            s = s - jnp.max(s, axis=-1, keepdims=True)
            e = jnp.exp(s)
            p = e * pl.reciprocal(jnp.sum(e, axis=-1, keepdims=True), approx=True)
            heads.append(jnp.dot(p, v[:, sl], preferred_element_type=f32))
        ho = jnp.concatenate(heads, axis=-1)                     # (Nq, D)
        return jnp.einsum('nd,od->no', ho, out_w,
                          preferred_element_type=f32) + out_b

    for l in range(NUM_LAYERS):
        # ---- self-attention (fused QKV projection, block-diagonal causal mask) ----
        qkv = jnp.einsum('nd,ed->ne', x, sa_in_w_ref[l],
                         preferred_element_type=f32) + sa_in_b_ref[l]   # (NT, 3D)
        sa = attend(qkv[:, :D] * scale, qkv[:, D:2 * D], qkv[:, 2 * D:],
                    smask, sa_out_w_ref[l], sa_out_b_ref[l])
        x = layer_norm(x + sa, ln_g_ref[l, 0], ln_b_ref[l, 0])

        # ---- cross-attention over the candidate memory (K/V on CA_KEYS rows only) ----
        q = (jnp.einsum('nd,ed->ne', x, ca_in_w_ref[l, :D, :],
                        preferred_element_type=f32)
             + ca_in_b_ref[l, :, :D]) * scale                           # (NT, D)
        kv = jnp.einsum('md,ed->me', mem_kv, ca_in_w_ref[l, D:, :],
                        preferred_element_type=f32) + ca_in_b_ref[l, :, D:]  # (CA_KEYS, 2D)
        ca = attend(q, kv[:, :D], kv[:, D:], kmask,
                    ca_out_w_ref[l], ca_out_b_ref[l])
        x = layer_norm(x + ca, ln_g_ref[l, 1], ln_b_ref[l, 1])

        # ---- feed-forward (relu) ----
        h1 = jnp.maximum(
            jnp.einsum('nd,hd->nh', x, ff_w1_ref[l],
                       preferred_element_type=f32) + ff_b1_ref[l], 0.0)
        ff = jnp.einsum('nh,dh->nd', h1, ff_w2_ref[l],
                        preferred_element_type=f32) + ff_b2_ref[l]
        x = layer_norm(x + ff, ln_g_ref[l, 2], ln_b_ref[l, 2])

    # pointer logits for ALL rows, lane-dense 128 columns; the wrapper drops the
    # per-truck start-token row and the zero-padded candidate columns.
    logits_ref[...] = jnp.einsum('nd,md->nm', x, mem,
                                 preferred_element_type=f32).astype(logits_ref.dtype)


# ----------------------------- wrapper -----------------------------
def decoder_teacher_forcing(seq_in_all, mem_all, params):
    """seq_in_all: (B, MAX_TRUCKS, T, D)   mem_all: (B, M, D)
       returns pointer logits (B, MAX_TRUCKS, SEQ_LEN, M)."""
    # flatten trucks into one token axis; pad candidate memory to 128 rows so the
    # pointer-logit store is lane-dense (unmasked vst).
    seq_flat = seq_in_all.reshape(B, NT, EMBED_DIM)
    mem_pad = jnp.pad(mem_all, ((0, 0), (0, M_PAD - M), (0, 0)))

    # precomputed masks (constant inputs; never rebuilt inside the kernel)
    tok = jnp.arange(NT)
    truck = tok // T
    pos = tok % T
    self_mask = jnp.where((truck[:, None] == truck[None, :])
                          & (pos[None, :] <= pos[:, None]),
                          0.0, -1e30).astype(jnp.float32)            # (NT, NT)
    key_mask = jnp.where(jnp.arange(CA_KEYS)[None, :] < M,
                         0.0, -1e30).astype(jnp.float32)             # (1, CA_KEYS)

    weight_list = [
        params["sa_in_w"], params["sa_in_b"], params["sa_out_w"], params["sa_out_b"],
        params["ca_in_w"], params["ca_in_b"], params["ca_out_w"], params["ca_out_b"],
        params["ff_w1"], params["ff_b1"], params["ff_w2"], params["ff_b2"],
        params["ln_g"], params["ln_b"],
    ]
    const_list = [self_mask, key_mask] + weight_list

    def const_spec(w):
        nd = w.ndim
        # constant block index -> fetched once, never re-DMA'd across grid steps
        return pl.BlockSpec(w.shape, lambda i, _nd=nd: (0,) * _nd)

    in_specs = [
        pl.BlockSpec((None, NT, EMBED_DIM), lambda i: (i, 0, 0)),     # seq (per graph)
        pl.BlockSpec((None, M_PAD, EMBED_DIM), lambda i: (i, 0, 0)),  # padded memory
    ] + [const_spec(w) for w in const_list]

    out_spec = pl.BlockSpec((None, NT, M_PAD), lambda i: (i, 0, 0))

    logits = pl.pallas_call(
        _decoder_kernel,
        out_shape=jax.ShapeDtypeStruct((B, NT, M_PAD), jnp.float32),
        grid_spec=pltpu.PrefetchScalarGridSpec(
            num_scalar_prefetch=0,
            grid=(B,),
            in_specs=in_specs,
            out_specs=out_spec,
        ),
        compiler_params=pltpu.CompilerParams(
            dimension_semantics=("parallel",)),
    )(seq_flat, mem_pad, *const_list)

    # drop start-token rows and padded candidate columns (cheap wrapper plumbing)
    return logits.reshape(B, MAX_TRUCKS, T, M_PAD)[:, :, 1:, :M]


# ----------------------------- glue (plain JAX) -----------------------------
def make_positional_encoding(max_len, d_model):
    pos = jnp.arange(max_len, dtype=jnp.float32)[:, None]
    div = jnp.exp(jnp.arange(0, d_model, 2, dtype=jnp.float32)
                  * (-math.log(10000.0) / d_model))
    pe = jnp.zeros((max_len, d_model), jnp.float32)
    pe = pe.at[:, 0::2].set(jnp.sin(pos * div))
    pe = pe.at[:, 1::2].set(jnp.cos(pos * div))
    return pe                                         # (max_len, d_model)


def init_params(key):
    def rnd(k, shape, s=0.1):
        return (s * jax.random.normal(k, shape)).astype(jnp.float32)
    keys = jax.random.split(key, 20)
    D, H, L = EMBED_DIM, HIDDEN_DIM, NUM_LAYERS
    p = {
        "start_token": rnd(keys[0], (D,)),
        "eos_token":   rnd(keys[1], (D,)),
        "sa_in_w":  rnd(keys[2], (L, 3 * D, D)),
        "sa_in_b":  rnd(keys[3], (L, 1, 3 * D)),
        "sa_out_w": rnd(keys[4], (L, D, D)),
        "sa_out_b": rnd(keys[5], (L, 1, D)),
        "ca_in_w":  rnd(keys[6], (L, 3 * D, D)),
        "ca_in_b":  rnd(keys[7], (L, 1, 3 * D)),
        "ca_out_w": rnd(keys[8], (L, D, D)),
        "ca_out_b": rnd(keys[9], (L, 1, D)),
        "ff_w1":    rnd(keys[10], (L, H, D)),
        "ff_b1":    rnd(keys[11], (L, 1, H)),
        "ff_w2":    rnd(keys[12], (L, D, H)),
        "ff_b2":    rnd(keys[13], (L, 1, D)),
        "ln_g":     jnp.ones((L, 3, 1, D), jnp.float32),
        "ln_b":     jnp.zeros((L, 3, 1, D), jnp.float32),
    }
    return p


def build_inputs(node_emb, pointer_targets, params, pe):
    """node_emb: (B*N_NODES, D) with batch_vec = [0]*N,[1]*N,...
       pointer_targets: (B, MAX_TRUCKS, SEQ_LEN) int32 in [-1, M-1]."""
    cands = node_emb.reshape(B, N_NODES, EMBED_DIM)
    eos = jnp.broadcast_to(params["eos_token"], (B, 1, EMBED_DIM))
    cands_ext = jnp.concatenate([cands, eos], axis=1)             # (B, M, D)

    def per_graph(cext, tids):                                    # (M,D), (TR,S)
        emb = jnp.where(tids[..., None] >= 0, cext[jnp.clip(tids, 0)], 0.0)  # (TR,S,D)
        start = jnp.broadcast_to(params["start_token"], (MAX_TRUCKS, 1, EMBED_DIM))
        seq = jnp.concatenate([start, emb], axis=1)               # (TR, T, D)
        return seq + pe[None, :T, :]

    seq_in_all = jax.vmap(per_graph)(cands_ext, pointer_targets)  # (B, TR, T, D)
    return seq_in_all, cands_ext


# ----------------------------- pure-JAX reference -----------------------------
def reference(seq_in_all, mem_all, p):
    D, dh, nH = EMBED_DIM, HEAD_DIM, NUM_HEADS
    scale = 1.0 / math.sqrt(dh)
    row = jnp.arange(T)[:, None]
    col = jnp.arange(T)[None, :]
    causal = jnp.where(col <= row, 0.0, -1e30)

    def ln(v, g, b):
        mu = v.mean(-1, keepdims=True)
        var = ((v - mu) ** 2).mean(-1, keepdims=True)
        return (v - mu) / jnp.sqrt(var + LN_EPS) * g + b

    def mha(q_in, kv_in, in_w, in_b, out_w, out_b, mask):
        q = q_in @ in_w[:D].T + in_b[:, :D]
        k = kv_in @ in_w[D:2 * D].T + in_b[:, D:2 * D]
        v = kv_in @ in_w[2 * D:].T + in_b[:, 2 * D:]
        outs = []
        for h in range(nH):
            sl = slice(h * dh, (h + 1) * dh)
            s = q[:, sl] @ k[:, sl].T * scale
            if mask is not None:
                s = s + mask
            pr = jax.nn.softmax(s, axis=-1)
            outs.append(pr @ v[:, sl])
        return jnp.concatenate(outs, -1) @ out_w.T + out_b

    def one(seq, mem):
        x = seq
        for l in range(NUM_LAYERS):
            x = ln(x + mha(x, x, p["sa_in_w"][l], p["sa_in_b"][l],
                           p["sa_out_w"][l], p["sa_out_b"][l], causal),
                   p["ln_g"][l, 0], p["ln_b"][l, 0])
            x = ln(x + mha(x, mem, p["ca_in_w"][l], p["ca_in_b"][l],
                           p["ca_out_w"][l], p["ca_out_b"][l], None),
                   p["ln_g"][l, 1], p["ln_b"][l, 1])
            ff = jnp.maximum(x @ p["ff_w1"][l].T + p["ff_b1"][l], 0.0) @ p["ff_w2"][l].T + p["ff_b2"][l]
            x = ln(x + ff, p["ln_g"][l, 2], p["ln_b"][l, 2])
        return x[1:] @ mem.T

    return jax.vmap(lambda seqs, mem: jax.vmap(lambda s: one(s, mem))(seqs))(
        seq_in_all, mem_all)


# ----------------------------- main -----------------------------
if __name__ == "__main__":
    key = jax.random.PRNGKey(0)
    k_nodes, k_params, k_tgt, k_glob = jax.random.split(key, 4)

    params = init_params(k_params)
    pe = make_positional_encoding(SEQ_LEN + 1, EMBED_DIM)

    node_emb = (0.1 * jax.random.normal(k_nodes, (B * N_NODES, EMBED_DIM))).astype(jnp.float32)
    global_emb = (0.1 * jax.random.normal(k_glob, (B, EMBED_DIM))).astype(jnp.float32)  # shape only
    batch_vec = jnp.repeat(jnp.arange(B), N_NODES)                                      # shape only
    pointer_targets = jax.random.randint(k_tgt, (B, MAX_TRUCKS, SEQ_LEN), -1, M)

    seq_in_all, mem_all = build_inputs(node_emb, pointer_targets, params, pe)

    logits = decoder_teacher_forcing(seq_in_all, mem_all, params)
    logits = jax.block_until_ready(logits)

    ref = jax.block_until_ready(reference(seq_in_all, mem_all, params))
    err = float(jnp.max(jnp.abs(logits - ref)))
    assert err < 1e-2, f"mismatch vs reference: {err}"

    print("KERNEL_OK")
</pallas_src>

<mosaic_0001>
module attributes {stable_mosaic.version = 11 : i64} {
  func.func @_decoder_kernel(%arg0: i32, %arg1: memref<1x27x32xf32, #tpu.memory_space<vmem>>, %arg2: memref<1x128x32xf32, #tpu.memory_space<vmem>>, %arg3: memref<27x27xf32, #tpu.memory_space<vmem>>, %arg4: memref<1x16xf32, #tpu.memory_space<vmem>>, %arg5: memref<2x96x32xf32, #tpu.memory_space<vmem>>, %arg6: memref<2x1x96xf32, #tpu.memory_space<vmem>>, %arg7: memref<2x32x32xf32, #tpu.memory_space<vmem>>, %arg8: memref<2x1x32xf32, #tpu.memory_space<vmem>>, %arg9: memref<2x96x32xf32, #tpu.memory_space<vmem>>, %arg10: memref<2x1x96xf32, #tpu.memory_space<vmem>>, %arg11: memref<2x32x32xf32, #tpu.memory_space<vmem>>, %arg12: memref<2x1x32xf32, #tpu.memory_space<vmem>>, %arg13: memref<2x64x32xf32, #tpu.memory_space<vmem>>, %arg14: memref<2x1x64xf32, #tpu.memory_space<vmem>>, %arg15: memref<2x32x64xf32, #tpu.memory_space<vmem>>, %arg16: memref<2x1x32xf32, #tpu.memory_space<vmem>>, %arg17: memref<2x3x1x32xf32, #tpu.memory_space<vmem>>, %arg18: memref<2x3x1x32xf32, #tpu.memory_space<vmem>>, %arg19: memref<1x27x128xf32, #tpu.memory_space<vmem>>) attributes {dimension_semantics = [#tpu.dimension_semantics<parallel>], iteration_bounds = array<i64: 2>, scalar_prefetch = 0 : i64, scratch_operands = 0 : i64, tpu.core_type = #tpu.core_type<tc>, window_params = [{transform_indices = @transform_0, window_bounds = array<i64: 1, 27, 32>}, {transform_indices = @transform_1, window_bounds = array<i64: 1, 128, 32>}, {pipeline_mode = #tpu.pipeline_mode<synchronous>, transform_indices = @transform_2, window_bounds = array<i64: 27, 27>}, {pipeline_mode = #tpu.pipeline_mode<synchronous>, transform_indices = @transform_3, window_bounds = array<i64: 1, 16>}, {pipeline_mode = #tpu.pipeline_mode<synchronous>, transform_indices = @transform_4, window_bounds = array<i64: 2, 96, 32>}, {pipeline_mode = #tpu.pipeline_mode<synchronous>, transform_indices = @transform_5, window_bounds = array<i64: 2, 1, 96>}, {pipeline_mode = #tpu.pipeline_mode<synchronous>, transform_indices = @transform_6, window_bounds = array<i64: 2, 32, 32>}, {pipeline_mode = #tpu.pipeline_mode<synchronous>, transform_indices = @transform_7, window_bounds = array<i64: 2, 1, 32>}, {pipeline_mode = #tpu.pipeline_mode<synchronous>, transform_indices = @transform_8, window_bounds = array<i64: 2, 96, 32>}, {pipeline_mode = #tpu.pipeline_mode<synchronous>, transform_indices = @transform_9, window_bounds = array<i64: 2, 1, 96>}, {pipeline_mode = #tpu.pipeline_mode<synchronous>, transform_indices = @transform_10, window_bounds = array<i64: 2, 32, 32>}, {pipeline_mode = #tpu.pipeline_mode<synchronous>, transform_indices = @transform_11, window_bounds = array<i64: 2, 1, 32>}, {pipeline_mode = #tpu.pipeline_mode<synchronous>, transform_indices = @transform_12, window_bounds = array<i64: 2, 64, 32>}, {pipeline_mode = #tpu.pipeline_mode<synchronous>, transform_indices = @transform_13, window_bounds = array<i64: 2, 1, 64>}, {pipeline_mode = #tpu.pipeline_mode<synchronous>, transform_indices = @transform_14, window_bounds = array<i64: 2, 32, 64>}, {pipeline_mode = #tpu.pipeline_mode<synchronous>, transform_indices = @transform_15, window_bounds = array<i64: 2, 1, 32>}, {pipeline_mode = #tpu.pipeline_mode<synchronous>, transform_indices = @transform_16, window_bounds = array<i64: 2, 3, 1, 32>}, {pipeline_mode = #tpu.pipeline_mode<synchronous>, transform_indices = @transform_17, window_bounds = array<i64: 2, 3, 1, 32>}, {transform_indices = @transform_18, window_bounds = array<i64: 1, 27, 128>}]} {
    %c0 = arith.constant 0 : index
    %c0_0 = arith.constant 0 : index
    %c0_1 = arith.constant 0 : index
    %0 = vector.load %arg1[%c0, %c0_0, %c0_1] : memref<1x27x32xf32, #tpu.memory_space<vmem>>, vector<1x27x32xf32>
    %1 = vector.shape_cast %0 : vector<1x27x32xf32> to vector<27x32xf32>
    %c0_2 = arith.constant 0 : index
    %c0_3 = arith.constant 0 : index
    %c0_4 = arith.constant 0 : index
    %2 = vector.load %arg2[%c0_2, %c0_3, %c0_4] : memref<1x128x32xf32, #tpu.memory_space<vmem>>, vector<1x128x32xf32>
    %3 = vector.shape_cast %2 : vector<1x128x32xf32> to vector<128x32xf32>
    %4 = vector.extract_strided_slice %3 {offsets = [0, 0], sizes = [16, 32], strides = [1, 1]} : vector<128x32xf32> to vector<16x32xf32>
    %c0_5 = arith.constant 0 : index
    %c0_6 = arith.constant 0 : index
    %5 = vector.load %arg3[%c0_5, %c0_6] : memref<27x27xf32, #tpu.memory_space<vmem>>, vector<27x27xf32>
    %c0_7 = arith.constant 0 : index
    %c0_8 = arith.constant 0 : index
    %6 = vector.load %arg4[%c0_7, %c0_8] : memref<1x16xf32, #tpu.memory_space<vmem>>, vector<1x16xf32>
    %c0_9 = arith.constant 0 : index
    %c0_10 = arith.constant 0 : index
    %c0_11 = arith.constant 0 : index
    %7 = vector.load %arg5[%c0_9, %c0_10, %c0_11] : memref<2x96x32xf32, #tpu.memory_space<vmem>>, vector<1x96x32xf32>
    %8 = vector.shape_cast %7 : vector<1x96x32xf32> to vector<96x32xf32>
    "tpu.trace_start"() <{level = 10 : i32, message = "nd,ed->ne"}> : () -> ()
    %cst = arith.constant dense<0.000000e+00> : vector<27x96xf32>
    %9 = tpu.matmul %1, %8, %cst {dimension_numbers = #tpu.dot_dimension_numbers<[1], [1], [0], [0], [0, 0, 1, 0], [], []>} : vector<27x32xf32>, vector<96x32xf32>, vector<27x96xf32> -> vector<27x96xf32>
    "tpu.trace_stop"() : () -> ()
    %c0_12 = arith.constant 0 : index
    %c0_13 = arith.constant 0 : index
    %c0_14 = arith.constant 0 : index
    %10 = vector.load %arg6[%c0_12, %c0_13, %c0_14] : memref<2x1x96xf32, #tpu.memory_space<vmem>>, vector<1x1x96xf32>
    %11 = vector.shape_cast %10 : vector<1x1x96xf32> to vector<1x96xf32>
    %12 = vector.broadcast %11 : vector<1x96xf32> to vector<27x96xf32>
    %13 = arith.addf %9, %12 : vector<27x96xf32>
    %14 = vector.extract_strided_slice %13 {offsets = [0, 0], sizes = [27, 32], strides = [1, 1]} : vector<27x96xf32> to vector<27x32xf32>
    %cst_15 = arith.constant 0.353553385 : f32
    %15 = vector.broadcast %cst_15 : f32 to vector<27x32xf32>
    %16 = arith.mulf %14, %15 : vector<27x32xf32>
    %17 = vector.extract_strided_slice %13 {offsets = [0, 32], sizes = [27, 32], strides = [1, 1]} : vector<27x96xf32> to vector<27x32xf32>
    %18 = vector.extract_strided_slice %13 {offsets = [0, 64], sizes = [27, 32], strides = [1, 1]} : vector<27x96xf32> to vector<27x32xf32>
    %c0_16 = arith.constant 0 : index
    %c0_17 = arith.constant 0 : index
    %c0_18 = arith.constant 0 : index
    %19 = vector.load %arg7[%c0_16, %c0_17, %c0_18] : memref<2x32x32xf32, #tpu.memory_space<vmem>>, vector<1x32x32xf32>
    %20 = vector.shape_cast %19 : vector<1x32x32xf32> to vector<32x32xf32>
    %c0_19 = arith.constant 0 : index
    %c0_20 = arith.constant 0 : index
    %c0_21 = arith.constant 0 : index
    %21 = vector.load %arg8[%c0_19, %c0_20, %c0_21] : memref<2x1x32xf32, #tpu.memory_space<vmem>>, vector<1x1x32xf32>
    %22 = vector.shape_cast %21 : vector<1x1x32xf32> to vector<1x32xf32>
    %23 = vector.extract_strided_slice %16 {offsets = [0, 0], sizes = [27, 8], strides = [1, 1]} : vector<27x32xf32> to vector<27x8xf32>
    %24 = vector.extract_strided_slice %17 {offsets = [0, 0], sizes = [27, 8], strides = [1, 1]} : vector<27x32xf32> to vector<27x8xf32>
    "tpu.trace_start"() <{level = 10 : i32, message = "nd,md->nm"}> : () -> ()
    %cst_22 = arith.constant dense<0.000000e+00> : vector<27x27xf32>
    %25 = tpu.matmul %23, %24, %cst_22 {dimension_numbers = #tpu.dot_dimension_numbers<[1], [1], [0], [0], [0, 0, 1, 0], [], []>} : vector<27x8xf32>, vector<27x8xf32>, vector<27x27xf32> -> vector<27x27xf32>
    "tpu.trace_stop"() : () -> ()
    %26 = arith.addf %25, %5 : vector<27x27xf32>
    %cst_23 = arith.constant dense<0xFF800000> : vector<27xf32>
    %27 = vector.multi_reduction <maximumf>, %26, %cst_23 [1] : vector<27x27xf32> to vector<27xf32>
    %28 = vector.shape_cast %27 : vector<27xf32> to vector<27x1xf32>
    %29 = vector.broadcast %28 : vector<27x1xf32> to vector<27x27xf32>
    %30 = arith.subf %26, %29 : vector<27x27xf32>
    %31 = math.exp %30 : vector<27x27xf32>
    %cst_24 = arith.constant dense<0.000000e+00> : vector<27xf32>
    %32 = vector.multi_reduction <add>, %31, %cst_24 [1] : vector<27x27xf32> to vector<27xf32>
    %33 = vector.shape_cast %32 : vector<27xf32> to vector<27x1xf32>
    %34 = tpu.reciprocal %33 {approx = true} : vector<27x1xf32> -> vector<27x1xf32>
    %35 = vector.broadcast %34 : vector<27x1xf32> to vector<27x27xf32>
    %36 = arith.mulf %31, %35 : vector<27x27xf32>
    %37 = vector.extract_strided_slice %18 {offsets = [0, 0], sizes = [27, 8], strides = [1, 1]} : vector<27x32xf32> to vector<27x8xf32>
    %cst_25 = arith.constant dense<0.000000e+00> : vector<27x8xf32>
    %38 = tpu.matmul %36, %37, %cst_25 {dimension_numbers = #tpu.dot_dimension_numbers<[1], [0], [0], [1], [0, 0, 1, 1], [], []>} : vector<27x27xf32>, vector<27x8xf32>, vector<27x8xf32> -> vector<27x8xf32>
    %39 = vector.extract_strided_slice %16 {offsets = [0, 8], sizes = [27, 8], strides = [1, 1]} : vector<27x32xf32> to vector<27x8xf32>
    %40 = vector.extract_strided_slice %17 {offsets = [0, 8], sizes = [27, 8], strides = [1, 1]} : vector<27x32xf32> to vector<27x8xf32>
    "tpu.trace_start"() <{level = 10 : i32, message = "nd,md->nm"}> : () -> ()
    %cst_26 = arith.constant dense<0.000000e+00> : vector<27x27xf32>
    %41 = tpu.matmul %39, %40, %cst_26 {dimension_numbers = #tpu.dot_dimension_numbers<[1], [1], [0], [0], [0, 0, 1, 0], [], []>} : vector<27x8xf32>, vector<27x8xf32>, vector<27x27xf32> -> vector<27x27xf32>
    "tpu.trace_stop"() : () -> ()
    %42 = arith.addf %41, %5 : vector<27x27xf32>
    %cst_27 = arith.constant dense<0xFF800000> : vector<27xf32>
    %43 = vector.multi_reduction <maximumf>, %42, %cst_27 [1] : vector<27x27xf32> to vector<27xf32>
    %44 = vector.shape_cast %43 : vector<27xf32> to vector<27x1xf32>
    %45 = vector.broadcast %44 : vector<27x1xf32> to vector<27x27xf32>
    %46 = arith.subf %42, %45 : vector<27x27xf32>
    %47 = math.exp %46 : vector<27x27xf32>
    %cst_28 = arith.constant dense<0.000000e+00> : vector<27xf32>
    %48 = vector.multi_reduction <add>, %47, %cst_28 [1] : vector<27x27xf32> to vector<27xf32>
    %49 = vector.shape_cast %48 : vector<27xf32> to vector<27x1xf32>
    %50 = tpu.reciprocal %49 {approx = true} : vector<27x1xf32> -> vector<27x1xf32>
    %51 = vector.broadcast %50 : vector<27x1xf32> to vector<27x27xf32>
    %52 = arith.mulf %47, %51 : vector<27x27xf32>
    %53 = vector.extract_strided_slice %18 {offsets = [0, 8], sizes = [27, 8], strides = [1, 1]} : vector<27x32xf32> to vector<27x8xf32>
    %cst_29 = arith.constant dense<0.000000e+00> : vector<27x8xf32>
    %54 = tpu.matmul %52, %53, %cst_29 {dimension_numbers = #tpu.dot_dimension_numbers<[1], [0], [0], [1], [0, 0, 1, 1], [], []>} : vector<27x27xf32>, vector<27x8xf32>, vector<27x8xf32> -> vector<27x8xf32>
    %55 = vector.extract_strided_slice %16 {offsets = [0, 16], sizes = [27, 8], strides = [1, 1]} : vector<27x32xf32> to vector<27x8xf32>
    %56 = vector.extract_strided_slice %17 {offsets = [0, 16], sizes = [27, 8], strides = [1, 1]} : vector<27x32xf32> to vector<27x8xf32>
    "tpu.trace_start"() <{level = 10 : i32, message = "nd,md->nm"}> : () -> ()
    %cst_30 = arith.constant dense<0.000000e+00> : vector<27x27xf32>
    %57 = tpu.matmul %55, %56, %cst_30 {dimension_numbers = #tpu.dot_dimension_numbers<[1], [1], [0], [0], [0, 0, 1, 0], [], []>} : vector<27x8xf32>, vector<27x8xf32>, vector<27x27xf32> -> vector<27x27xf32>
    "tpu.trace_stop"() : () -> ()
    %58 = arith.addf %57, %5 : vector<27x27xf32>
    %cst_31 = arith.constant dense<0xFF800000> : vector<27xf32>
    %59 = vector.multi_reduction <maximumf>, %58, %cst_31 [1] : vector<27x27xf32> to vector<27xf32>
    %60 = vector.shape_cast %59 : vector<27xf32> to vector<27x1xf32>
    %61 = vector.broadcast %60 : vector<27x1xf32> to vector<27x27xf32>
    %62 = arith.subf %58, %61 : vector<27x27xf32>
    %63 = math.exp %62 : vector<27x27xf32>
    %cst_32 = arith.constant dense<0.000000e+00> : vector<27xf32>
    %64 = vector.multi_reduction <add>, %63, %cst_32 [1] : vector<27x27xf32> to vector<27xf32>
    %65 = vector.shape_cast %64 : vector<27xf32> to vector<27x1xf32>
    %66 = tpu.reciprocal %65 {approx = true} : vector<27x1xf32> -> vector<27x1xf32>
    %67 = vector.broadcast %66 : vector<27x1xf32> to vector<27x27xf32>
    %68 = arith.mulf %63, %67 : vector<27x27xf32>
    %69 = vector.extract_strided_slice %18 {offsets = [0, 16], sizes = [27, 8], strides = [1, 1]} : vector<27x32xf32> to vector<27x8xf32>
    %cst_33 = arith.constant dense<0.000000e+00> : vector<27x8xf32>
    %70 = tpu.matmul %68, %69, %cst_33 {dimension_numbers = #tpu.dot_dimension_numbers<[1], [0], [0], [1], [0, 0, 1, 1], [], []>} : vector<27x27xf32>, vector<27x8xf32>, vector<27x8xf32> -> vector<27x8xf32>
    %71 = vector.extract_strided_slice %16 {offsets = [0, 24], sizes = [27, 8], strides = [1, 1]} : vector<27x32xf32> to vector<27x8xf32>
    %72 = vector.extract_strided_slice %17 {offsets = [0, 24], sizes = [27, 8], strides = [1, 1]} : vector<27x32xf32> to vector<27x8xf32>
    "tpu.trace_start"() <{level = 10 : i32, message = "nd,md->nm"}> : () -> ()
    %cst_34 = arith.constant dense<0.000000e+00> : vector<27x27xf32>
    %73 = tpu.matmul %71, %72, %cst_34 {dimension_numbers = #tpu.dot_dimension_numbers<[1], [1], [0], [0], [0, 0, 1, 0], [], []>} : vector<27x8xf32>, vector<27x8xf32>, vector<27x27xf32> -> vector<27x27xf32>
    "tpu.trace_stop"() : () -> ()
    %74 = arith.addf %73, %5 : vector<27x27xf32>
    %cst_35 = arith.constant dense<0xFF800000> : vector<27xf32>
    %75 = vector.multi_reduction <maximumf>, %74, %cst_35 [1] : vector<27x27xf32> to vector<27xf32>
    %76 = vector.shape_cast %75 : vector<27xf32> to vector<27x1xf32>
    %77 = vector.broadcast %76 : vector<27x1xf32> to vector<27x27xf32>
    %78 = arith.subf %74, %77 : vector<27x27xf32>
    %79 = math.exp %78 : vector<27x27xf32>
    %cst_36 = arith.constant dense<0.000000e+00> : vector<27xf32>
    %80 = vector.multi_reduction <add>, %79, %cst_36 [1] : vector<27x27xf32> to vector<27xf32>
    %81 = vector.shape_cast %80 : vector<27xf32> to vector<27x1xf32>
    %82 = tpu.reciprocal %81 {approx = true} : vector<27x1xf32> -> vector<27x1xf32>
    %83 = vector.broadcast %82 : vector<27x1xf32> to vector<27x27xf32>
    %84 = arith.mulf %79, %83 : vector<27x27xf32>
    %85 = vector.extract_strided_slice %18 {offsets = [0, 24], sizes = [27, 8], strides = [1, 1]} : vector<27x32xf32> to vector<27x8xf32>
    %cst_37 = arith.constant dense<0.000000e+00> : vector<27x8xf32>
    %86 = tpu.matmul %84, %85, %cst_37 {dimension_numbers = #tpu.dot_dimension_numbers<[1], [0], [0], [1], [0, 0, 1, 1], [], []>} : vector<27x27xf32>, vector<27x8xf32>, vector<27x8xf32> -> vector<27x8xf32>
    %87 = tpu.concatenate %38, %54, %70, %86 in 1 : vector<27x8xf32>, vector<27x8xf32>, vector<27x8xf32>, vector<27x8xf32> -> vector<27x32xf32>
    "tpu.trace_start"() <{level = 10 : i32, message = "nd,od->no"}> : () -> ()
    %cst_38 = arith.constant dense<0.000000e+00> : vector<27x32xf32>
    %88 = tpu.matmul %87, %20, %cst_38 {dimension_numbers = #tpu.dot_dimension_numbers<[1], [1], [0], [0], [0, 0, 1, 0], [], []>} : vector<27x32xf32>, vector<32x32xf32>, vector<27x32xf32> -> vector<27x32xf32>
    "tpu.trace_stop"() : () -> ()
    %89 = vector.broadcast %22 : vector<1x32xf32> to vector<27x32xf32>
    %90 = arith.addf %88, %89 : vector<27x32xf32>
    %91 = arith.addf %1, %90 : vector<27x32xf32>
    %c0_39 = arith.constant 0 : index
    %c0_40 = arith.constant 0 : index
    %c0_41 = arith.constant 0 : index
    %c0_42 = arith.constant 0 : index
    %92 = vector.load %arg17[%c0_39, %c0_40, %c0_41, %c0_42] : memref<2x3x1x32xf32, #tpu.memory_space<vmem>>, vector<1x1x1x32xf32>
    %93 = vector.shape_cast %92 : vector<1x1x1x32xf32> to vector<1x32xf32>
    %c0_43 = arith.constant 0 : index
    %c0_44 = arith.constant 0 : index
    %c0_45 = arith.constant 0 : index
    %c0_46 = arith.constant 0 : index
    %94 = vector.load %arg18[%c0_43, %c0_44, %c0_45, %c0_46] : memref<2x3x1x32xf32, #tpu.memory_space<vmem>>, vector<1x1x1x32xf32>
    %95 = vector.shape_cast %94 : vector<1x1x1x32xf32> to vector<1x32xf32>
    %cst_47 = arith.constant dense<0.000000e+00> : vector<27xf32>
    %96 = vector.multi_reduction <add>, %91, %cst_47 [1] : vector<27x32xf32> to vector<27xf32>
    %97 = vector.shape_cast %96 : vector<27xf32> to vector<27x1xf32>
    %cst_48 = arith.constant 3.200000e+01 : f32
    %98 = vector.broadcast %cst_48 : f32 to vector<27x1xf32>
    %99 = arith.divf %97, %98 : vector<27x1xf32>
    %100 = vector.broadcast %99 : vector<27x1xf32> to vector<27x32xf32>
    %101 = arith.subf %91, %100 : vector<27x32xf32>
    %102 = arith.mulf %101, %101 : vector<27x32xf32>
    %cst_49 = arith.constant dense<0.000000e+00> : vector<27xf32>
    %103 = vector.multi_reduction <add>, %102, %cst_49 [1] : vector<27x32xf32> to vector<27xf32>
    %104 = vector.shape_cast %103 : vector<27xf32> to vector<27x1xf32>
    %cst_50 = arith.constant 3.200000e+01 : f32
    %105 = vector.broadcast %cst_50 : f32 to vector<27x1xf32>
    %106 = arith.divf %104, %105 : vector<27x1xf32>
    %cst_51 = arith.constant 9.99999974E-6 : f32
    %107 = vector.broadcast %cst_51 : f32 to vector<27x1xf32>
    %108 = arith.addf %106, %107 : vector<27x1xf32>
    %109 = math.rsqrt %108 : vector<27x1xf32>
    %110 = vector.broadcast %109 : vector<27x1xf32> to vector<27x32xf32>
    %111 = arith.mulf %101, %110 : vector<27x32xf32>
    %112 = vector.broadcast %93 : vector<1x32xf32> to vector<27x32xf32>
    %113 = arith.mulf %111, %112 : vector<27x32xf32>
    %114 = vector.broadcast %95 : vector<1x32xf32> to vector<27x32xf32>
    %115 = arith.addf %113, %114 : vector<27x32xf32>
    %c0_52 = arith.constant 0 : index
    %c0_53 = arith.constant 0 : index
    %c0_54 = arith.constant 0 : index
    %116 = vector.load %arg9[%c0_52, %c0_53, %c0_54] : memref<2x96x32xf32, #tpu.memory_space<vmem>>, vector<1x32x32xf32>
    %117 = vector.shape_cast %116 : vector<1x32x32xf32> to vector<32x32xf32>
    "tpu.trace_start"() <{level = 10 : i32, message = "nd,ed->ne"}> : () -> ()
    %cst_55 = arith.constant dense<0.000000e+00> : vector<27x32xf32>
    %118 = tpu.matmul %115, %117, %cst_55 {dimension_numbers = #tpu.dot_dimension_numbers<[1], [1], [0], [0], [0, 0, 1, 0], [], []>} : vector<27x32xf32>, vector<32x32xf32>, vector<27x32xf32> -> vector<27x32xf32>
    "tpu.trace_stop"() : () -> ()
    %c0_56 = arith.constant 0 : index
    %c0_57 = arith.constant 0 : index
    %c0_58 = arith.constant 0 : index
    %119 = vector.load %arg10[%c0_56, %c0_57, %c0_58] : memref<2x1x96xf32, #tpu.memory_space<vmem>>, vector<1x1x32xf32>
    %120 = vector.shape_cast %119 : vector<1x1x32xf32> to vector<1x32xf32>
    %121 = vector.broadcast %120 : vector<1x32xf32> to vector<27x32xf32>
    %122 = arith.addf %118, %121 : vector<27x32xf32>
    %cst_59 = arith.constant 0.353553385 : f32
    %123 = vector.broadcast %cst_59 : f32 to vector<27x32xf32>
    %124 = arith.mulf %122, %123 : vector<27x32xf32>
    %c0_60 = arith.constant 0 : index
    %c32 = arith.constant 32 : index
    %c0_61 = arith.constant 0 : index
    %125 = vector.load %arg9[%c0_60, %c32, %c0_61] : memref<2x96x32xf32, #tpu.memory_space<vmem>>, vector<1x64x32xf32>
    %126 = vector.shape_cast %125 : vector<1x64x32xf32> to vector<64x32xf32>
    "tpu.trace_start"() <{level = 10 : i32, message = "md,ed->me"}> : () -> ()
    %cst_62 = arith.constant dense<0.000000e+00> : vector<16x64xf32>
    %127 = tpu.matmul %4, %126, %cst_62 {dimension_numbers = #tpu.dot_dimension_numbers<[1], [1], [0], [0], [0, 0, 1, 0], [], []>} : vector<16x32xf32>, vector<64x32xf32>, vector<16x64xf32> -> vector<16x64xf32>
    "tpu.trace_stop"() : () -> ()
    %c0_63 = arith.constant 0 : index
    %c0_64 = arith.constant 0 : index
    %c32_65 = arith.constant 32 : index
    %128 = vector.load %arg10[%c0_63, %c0_64, %c32_65] : memref<2x1x96xf32, #tpu.memory_space<vmem>>, vector<1x1x64xf32>
    %129 = vector.shape_cast %128 : vector<1x1x64xf32> to vector<1x64xf32>
    %130 = vector.broadcast %129 : vector<1x64xf32> to vector<16x64xf32>
    %131 = arith.addf %127, %130 : vector<16x64xf32>
    %132 = vector.extract_strided_slice %131 {offsets = [0, 0], sizes = [16, 32], strides = [1, 1]} : vector<16x64xf32> to vector<16x32xf32>
    %133 = vector.extract_strided_slice %131 {offsets = [0, 32], sizes = [16, 32], strides = [1, 1]} : vector<16x64xf32> to vector<16x32xf32>
    %c0_66 = arith.constant 0 : index
    %c0_67 = arith.constant 0 : index
    %c0_68 = arith.constant 0 : index
    %134 = vector.load %arg11[%c0_66, %c0_67, %c0_68] : memref<2x32x32xf32, #tpu.memory_space<vmem>>, vector<1x32x32xf32>
    %135 = vector.shape_cast %134 : vector<1x32x32xf32> to vector<32x32xf32>
    %c0_69 = arith.constant 0 : index
    %c0_70 = arith.constant 0 : index
    %c0_71 = arith.constant 0 : index
    %136 = vector.load %arg12[%c0_69, %c0_70, %c0_71] : memref<2x1x32xf32, #tpu.memory_space<vmem>>, vector<1x1x32xf32>
    %137 = vector.shape_cast %136 : vector<1x1x32xf32> to vector<1x32xf32>
    %138 = vector.extract_strided_slice %124 {offsets = [0, 0], sizes = [27, 8], strides = [1, 1]} : vector<27x32xf32> to vector<27x8xf32>
    %139 = vector.extract_strided_slice %132 {offsets = [0, 0], sizes = [16, 8], strides = [1, 1]} : vector<16x32xf32> to vector<16x8xf32>
    "tpu.trace_start"() <{level = 10 : i32, message = "nd,md->nm"}> : () -> ()
    %cst_72 = arith.constant dense<0.000000e+00> : vector<27x16xf32>
    %140 = tpu.matmul %138, %139, %cst_72 {dimension_numbers = #tpu.dot_dimension_numbers<[1], [1], [0], [0], [0, 0, 1, 0], [], []>} : vector<27x8xf32>, vector<16x8xf32>, vector<27x16xf32> -> vector<27x16xf32>
    "tpu.trace_stop"() : () -> ()
    %141 = vector.broadcast %6 : vector<1x16xf32> to vector<27x16xf32>
    %142 = arith.addf %140, %141 : vector<27x16xf32>
    %cst_73 = arith.constant dense<0xFF800000> : vector<27xf32>
    %143 = vector.multi_reduction <maximumf>, %142, %cst_73 [1] : vector<27x16xf32> to vector<27xf32>
    %144 = vector.shape_cast %143 : vector<27xf32> to vector<27x1xf32>
    %145 = vector.broadcast %144 : vector<27x1xf32> to vector<27x16xf32>
    %146 = arith.subf %142, %145 : vector<27x16xf32>
    %147 = math.exp %146 : vector<27x16xf32>
    %cst_74 = arith.constant dense<0.000000e+00> : vector<27xf32>
    %148 = vector.multi_reduction <add>, %147, %cst_74 [1] : vector<27x16xf32> to vector<27xf32>
    %149 = vector.shape_cast %148 : vector<27xf32> to vector<27x1xf32>
    %150 = tpu.reciprocal %149 {approx = true} : vector<27x1xf32> -> vector<27x1xf32>
    %151 = vector.broadcast %150 : vector<27x1xf32> to vector<27x16xf32>
    %152 = arith.mulf %147, %151 : vector<27x16xf32>
    %153 = vector.extract_strided_slice %133 {offsets = [0, 0], sizes = [16, 8], strides = [1, 1]} : vector<16x32xf32> to vector<16x8xf32>
    %cst_75 = arith.constant dense<0.000000e+00> : vector<27x8xf32>
    %154 = tpu.matmul %152, %153, %cst_75 {dimension_numbers = #tpu.dot_dimension_numbers<[1], [0], [0], [1], [0, 0, 1, 1], [], []>} : vector<27x16xf32>, vector<16x8xf32>, vector<27x8xf32> -> vector<27x8xf32>
    %155 = vector.extract_strided_slice %124 {offsets = [0, 8], sizes = [27, 8], strides = [1, 1]} : vector<27x32xf32> to vector<27x8xf32>
    %156 = vector.extract_strided_slice %132 {offsets = [0, 8], sizes = [16, 8], strides = [1, 1]} : vector<16x32xf32> to vector<16x8xf32>
    "tpu.trace_start"() <{level = 10 : i32, message = "nd,md->nm"}> : () -> ()
    %cst_76 = arith.constant dense<0.000000e+00> : vector<27x16xf32>
    %157 = tpu.matmul %155, %156, %cst_76 {dimension_numbers = #tpu.dot_dimension_numbers<[1], [1], [0], [0], [0, 0, 1, 0], [], []>} : vector<27x8xf32>, vector<16x8xf32>, vector<27x16xf32> -> vector<27x16xf32>
    "tpu.trace_stop"() : () -> ()
    %158 = vector.broadcast %6 : vector<1x16xf32> to vector<27x16xf32>
    %159 = arith.addf %157, %158 : vector<27x16xf32>
    %cst_77 = arith.constant dense<0xFF800000> : vector<27xf32>
    %160 = vector.multi_reduction <maximumf>, %159, %cst_77 [1] : vector<27x16xf32> to vector<27xf32>
    %161 = vector.shape_cast %160 : vector<27xf32> to vector<27x1xf32>
    %162 = vector.broadcast %161 : vector<27x1xf32> to vector<27x16xf32>
    %163 = arith.subf %159, %162 : vector<27x16xf32>
    %164 = math.exp %163 : vector<27x16xf32>
    %cst_78 = arith.constant dense<0.000000e+00> : vector<27xf32>
    %165 = vector.multi_reduction <add>, %164, %cst_78 [1] : vector<27x16xf32> to vector<27xf32>
    %166 = vector.shape_cast %165 : vector<27xf32> to vector<27x1xf32>
    %167 = tpu.reciprocal %166 {approx = true} : vector<27x1xf32> -> vector<27x1xf32>
    %168 = vector.broadcast %167 : vector<27x1xf32> to vector<27x16xf32>
    %169 = arith.mulf %164, %168 : vector<27x16xf32>
    %170 = vector.extract_strided_slice %133 {offsets = [0, 8], sizes = [16, 8], strides = [1, 1]} : vector<16x32xf32> to vector<16x8xf32>
    %cst_79 = arith.constant dense<0.000000e+00> : vector<27x8xf32>
    %171 = tpu.matmul %169, %170, %cst_79 {dimension_numbers = #tpu.dot_dimension_numbers<[1], [0], [0], [1], [0, 0, 1, 1], [], []>} : vector<27x16xf32>, vector<16x8xf32>, vector<27x8xf32> -> vector<27x8xf32>
    %172 = vector.extract_strided_slice %124 {offsets = [0, 16], sizes = [27, 8], strides = [1, 1]} : vector<27x32xf32> to vector<27x8xf32>
    %173 = vector.extract_strided_slice %132 {offsets = [0, 16], sizes = [16, 8], strides = [1, 1]} : vector<16x32xf32> to vector<16x8xf32>
    "tpu.trace_start"() <{level = 10 : i32, message = "nd,md->nm"}> : () -> ()
    %cst_80 = arith.constant dense<0.000000e+00> : vector<27x16xf32>
    %174 = tpu.matmul %172, %173, %cst_80 {dimension_numbers = #tpu.dot_dimension_numbers<[1], [1], [0], [0], [0, 0, 1, 0], [], []>} : vector<27x8xf32>, vector<16x8xf32>, vector<27x16xf32> -> vector<27x16xf32>
    "tpu.trace_stop"() : () -> ()
    %175 = vector.broadcast %6 : vector<1x16xf32> to vector<27x16xf32>
    %176 = arith.addf %174, %175 : vector<27x16xf32>
    %cst_81 = arith.constant dense<0xFF800000> : vector<27xf32>
    %177 = vector.multi_reduction <maximumf>, %176, %cst_81 [1] : vector<27x16xf32> to vector<27xf32>
    %178 = vector.shape_cast %177 : vector<27xf32> to vector<27x1xf32>
    %179 = vector.broadcast %178 : vector<27x1xf32> to vector<27x16xf32>
    %180 = arith.subf %176, %179 : vector<27x16xf32>
    %181 = math.exp %180 : vector<27x16xf32>
    %cst_82 = arith.constant dense<0.000000e+00> : vector<27xf32>
    %182 = vector.multi_reduction <add>, %181, %cst_82 [1] : vector<27x16xf32> to vector<27xf32>
    %183 = vector.shape_cast %182 : vector<27xf32> to vector<27x1xf32>
    %184 = tpu.reciprocal %183 {approx = true} : vector<27x1xf32> -> vector<27x1xf32>
    %185 = vector.broadcast %184 : vector<27x1xf32> to vector<27x16xf32>
    %186 = arith.mulf %181, %185 : vector<27x16xf32>
    %187 = vector.extract_strided_slice %133 {offsets = [0, 16], sizes = [16, 8], strides = [1, 1]} : vector<16x32xf32> to vector<16x8xf32>
    %cst_83 = arith.constant dense<0.000000e+00> : vector<27x8xf32>
    %188 = tpu.matmul %186, %187, %cst_83 {dimension_numbers = #tpu.dot_dimension_numbers<[1], [0], [0], [1], [0, 0, 1, 1], [], []>} : vector<27x16xf32>, vector<16x8xf32>, vector<27x8xf32> -> vector<27x8xf32>
    %189 = vector.extract_strided_slice %124 {offsets = [0, 24], sizes = [27, 8], strides = [1, 1]} : vector<27x32xf32> to vector<27x8xf32>
    %190 = vector.extract_strided_slice %132 {offsets = [0, 24], sizes = [16, 8], strides = [1, 1]} : vector<16x32xf32> to vector<16x8xf32>
    "tpu.trace_start"() <{level = 10 : i32, message = "nd,md->nm"}> : () -> ()
    %cst_84 = arith.constant dense<0.000000e+00> : vector<27x16xf32>
    %191 = tpu.matmul %189, %190, %cst_84 {dimension_numbers = #tpu.dot_dimension_numbers<[1], [1], [0], [0], [0, 0, 1, 0], [], []>} : vector<27x8xf32>, vector<16x8xf32>, vector<27x16xf32> -> vector<27x16xf32>
    "tpu.trace_stop"() : () -> ()
    %192 = vector.broadcast %6 : vector<1x16xf32> to vector<27x16xf32>
    %193 = arith.addf %191, %192 : vector<27x16xf32>
    %cst_85 = arith.constant dense<0xFF800000> : vector<27xf32>
    %194 = vector.multi_reduction <maximumf>, %193, %cst_85 [1] : vector<27x16xf32> to vector<27xf32>
    %195 = vector.shape_cast %194 : vector<27xf32> to vector<27x1xf32>
    %196 = vector.broadcast %195 : vector<27x1xf32> to vector<27x16xf32>
    %197 = arith.subf %193, %196 : vector<27x16xf32>
    %198 = math.exp %197 : vector<27x16xf32>
    %cst_86 = arith.constant dense<0.000000e+00> : vector<27xf32>
    %199 = vector.multi_reduction <add>, %198, %cst_86 [1] : vector<27x16xf32> to vector<27xf32>
    %200 = vector.shape_cast %199 : vector<27xf32> to vector<27x1xf32>
    %201 = tpu.reciprocal %200 {approx = true} : vector<27x1xf32> -> vector<27x1xf32>
    %202 = vector.broadcast %201 : vector<27x1xf32> to vector<27x16xf32>
    %203 = arith.mulf %198, %202 : vector<27x16xf32>
    %204 = vector.extract_strided_slice %133 {offsets = [0, 24], sizes = [16, 8], strides = [1, 1]} : vector<16x32xf32> to vector<16x8xf32>
    %cst_87 = arith.constant dense<0.000000e+00> : vector<27x8xf32>
    %205 = tpu.matmul %203, %204, %cst_87 {dimension_numbers = #tpu.dot_dimension_numbers<[1], [0], [0], [1], [0, 0, 1, 1], [], []>} : vector<27x16xf32>, vector<16x8xf32>, vector<27x8xf32> -> vector<27x8xf32>
    %206 = tpu.concatenate %154, %171, %188, %205 in 1 : vector<27x8xf32>, vector<27x8xf32>, vector<27x8xf32>, vector<27x8xf32> -> vector<27x32xf32>
    "tpu.trace_start"() <{level = 10 : i32, message = "nd,od->no"}> : () -> ()
    %cst_88 = arith.constant dense<0.000000e+00> : vector<27x32xf32>
    %207 = tpu.matmul %206, %135, %cst_88 {dimension_numbers = #tpu.dot_dimension_numbers<[1], [1], [0], [0], [0, 0, 1, 0], [], []>} : vector<27x32xf32>, vector<32x32xf32>, vector<27x32xf32> -> vector<27x32xf32>
    "tpu.trace_stop"() : () -> ()
    %208 = vector.broadcast %137 : vector<1x32xf32> to vector<27x32xf32>
    %209 = arith.addf %207, %208 : vector<27x32xf32>
    %210 = arith.addf %115, %209 : vector<27x32xf32>
    %c0_89 = arith.constant 0 : index
    %c1 = arith.constant 1 : index
    %c0_90 = arith.constant 0 : index
    %c0_91 = arith.constant 0 : index
    %211 = vector.load %arg17[%c0_89, %c1, %c0_90, %c0_91] : memref<2x3x1x32xf32, #tpu.memory_space<vmem>>, vector<1x1x1x32xf32>
    %212 = vector.shape_cast %211 : vector<1x1x1x32xf32> to vector<1x32xf32>
    %c0_92 = arith.constant 0 : index
    %c1_93 = arith.constant 1 : index
    %c0_94 = arith.constant 0 : index
    %c0_95 = arith.constant 0 : index
    %213 = vector.load %arg18[%c0_92, %c1_93, %c0_94, %c0_95] : memref<2x3x1x32xf32, #tpu.memory_space<vmem>>, vector<1x1x1x32xf32>
    %214 = vector.shape_cast %213 : vector<1x1x1x32xf32> to vector<1x32xf32>
    %cst_96 = arith.constant dense<0.000000e+00> : vector<27xf32>
    %215 = vector.multi_reduction <add>, %210, %cst_96 [1] : vector<27x32xf32> to vector<27xf32>
    %216 = vector.shape_cast %215 : vector<27xf32> to vector<27x1xf32>
    %cst_97 = arith.constant 3.200000e+01 : f32
    %217 = vector.broadcast %cst_97 : f32 to vector<27x1xf32>
    %218 = arith.divf %216, %217 : vector<27x1xf32>
    %219 = vector.broadcast %218 : vector<27x1xf32> to vector<27x32xf32>
    %220 = arith.subf %210, %219 : vector<27x32xf32>
    %221 = arith.mulf %220, %220 : vector<27x32xf32>
    %cst_98 = arith.constant dense<0.000000e+00> : vector<27xf32>
    %222 = vector.multi_reduction <add>, %221, %cst_98 [1] : vector<27x32xf32> to vector<27xf32>
    %223 = vector.shape_cast %222 : vector<27xf32> to vector<27x1xf32>
    %cst_99 = arith.constant 3.200000e+01 : f32
    %224 = vector.broadcast %cst_99 : f32 to vector<27x1xf32>
    %225 = arith.divf %223, %224 : vector<27x1xf32>
    %cst_100 = arith.constant 9.99999974E-6 : f32
    %226 = vector.broadcast %cst_100 : f32 to vector<27x1xf32>
    %227 = arith.addf %225, %226 : vector<27x1xf32>
    %228 = math.rsqrt %227 : vector<27x1xf32>
    %229 = vector.broadcast %228 : vector<27x1xf32> to vector<27x32xf32>
    %230 = arith.mulf %220, %229 : vector<27x32xf32>
    %231 = vector.broadcast %212 : vector<1x32xf32> to vector<27x32xf32>
    %232 = arith.mulf %230, %231 : vector<27x32xf32>
    %233 = vector.broadcast %214 : vector<1x32xf32> to vector<27x32xf32>
    %234 = arith.addf %232, %233 : vector<27x32xf32>
    %c0_101 = arith.constant 0 : index
    %c0_102 = arith.constant 0 : index
    %c0_103 = arith.constant 0 : index
    %235 = vector.load %arg13[%c0_101, %c0_102, %c0_103] : memref<2x64x32xf32, #tpu.memory_space<vmem>>, vector<1x64x32xf32>
    %236 = vector.shape_cast %235 : vector<1x64x32xf32> to vector<64x32xf32>
    "tpu.trace_start"() <{level = 10 : i32, message = "nd,hd->nh"}> : () -> ()
    %cst_104 = arith.constant dense<0.000000e+00> : vector<27x64xf32>
    %237 = tpu.matmul %234, %236, %cst_104 {dimension_numbers = #tpu.dot_dimension_numbers<[1], [1], [0], [0], [0, 0, 1, 0], [], []>} : vector<27x32xf32>, vector<64x32xf32>, vector<27x64xf32> -> vector<27x64xf32>
    "tpu.trace_stop"() : () -> ()
    %c0_105 = arith.constant 0 : index
    %c0_106 = arith.constant 0 : index
    %c0_107 = arith.constant 0 : index
    %238 = vector.load %arg14[%c0_105, %c0_106, %c0_107] : memref<2x1x64xf32, #tpu.memory_space<vmem>>, vector<1x1x64xf32>
    %239 = vector.shape_cast %238 : vector<1x1x64xf32> to vector<1x64xf32>
    %240 = vector.broadcast %239 : vector<1x64xf32> to vector<27x64xf32>
    %241 = arith.addf %237, %240 : vector<27x64xf32>
    %cst_108 = arith.constant 0.000000e+00 : f32
    %242 = vector.broadcast %cst_108 : f32 to vector<27x64xf32>
    %243 = arith.maximumf %241, %242 : vector<27x64xf32>
    %c0_109 = arith.constant 0 : index
    %c0_110 = arith.constant 0 : index
    %c0_111 = arith.constant 0 : index
    %244 = vector.load %arg15[%c0_109, %c0_110, %c0_111] : memref<2x32x64xf32, #tpu.memory_space<vmem>>, vector<1x32x64xf32>
    %245 = vector.shape_cast %244 : vector<1x32x64xf32> to vector<32x64xf32>
    "tpu.trace_start"() <{level = 10 : i32, message = "nh,dh->nd"}> : () -> ()
    %cst_112 = arith.constant dense<0.000000e+00> : vector<27x32xf32>
    %246 = tpu.matmul %243, %245, %cst_112 {dimension_numbers = #tpu.dot_dimension_numbers<[1], [1], [0], [0], [0, 0, 1, 0], [], []>} : vector<27x64xf32>, vector<32x64xf32>, vector<27x32xf32> -> vector<27x32xf32>
    "tpu.trace_stop"() : () -> ()
    %c0_113 = arith.constant 0 : index
    %c0_114 = arith.constant 0 : index
    %c0_115 = arith.constant 0 : index
    %247 = vector.load %arg16[%c0_113, %c0_114, %c0_115] : memref<2x1x32xf32, #tpu.memory_space<vmem>>, vector<1x1x32xf32>
    %248 = vector.shape_cast %247 : vector<1x1x32xf32> to vector<1x32xf32>
    %249 = vector.broadcast %248 : vector<1x32xf32> to vector<27x32xf32>
    %250 = arith.addf %246, %249 : vector<27x32xf32>
    %251 = arith.addf %234, %250 : vector<27x32xf32>
    %c0_116 = arith.constant 0 : index
    %c2 = arith.constant 2 : index
    %c0_117 = arith.constant 0 : index
    %c0_118 = arith.constant 0 : index
    %252 = vector.load %arg17[%c0_116, %c2, %c0_117, %c0_118] : memref<2x3x1x32xf32, #tpu.memory_space<vmem>>, vector<1x1x1x32xf32>
    %253 = vector.shape_cast %252 : vector<1x1x1x32xf32> to vector<1x32xf32>
    %c0_119 = arith.constant 0 : index
    %c2_120 = arith.constant 2 : index
    %c0_121 = arith.constant 0 : index
    %c0_122 = arith.constant 0 : index
    %254 = vector.load %arg18[%c0_119, %c2_120, %c0_121, %c0_122] : memref<2x3x1x32xf32, #tpu.memory_space<vmem>>, vector<1x1x1x32xf32>
    %255 = vector.shape_cast %254 : vector<1x1x1x32xf32> to vector<1x32xf32>
    %cst_123 = arith.constant dense<0.000000e+00> : vector<27xf32>
    %256 = vector.multi_reduction <add>, %251, %cst_123 [1] : vector<27x32xf32> to vector<27xf32>
    %257 = vector.shape_cast %256 : vector<27xf32> to vector<27x1xf32>
    %cst_124 = arith.constant 3.200000e+01 : f32
    %258 = vector.broadcast %cst_124 : f32 to vector<27x1xf32>
    %259 = arith.divf %257, %258 : vector<27x1xf32>
    %260 = vector.broadcast %259 : vector<27x1xf32> to vector<27x32xf32>
    %261 = arith.subf %251, %260 : vector<27x32xf32>
    %262 = arith.mulf %261, %261 : vector<27x32xf32>
    %cst_125 = arith.constant dense<0.000000e+00> : vector<27xf32>
    %263 = vector.multi_reduction <add>, %262, %cst_125 [1] : vector<27x32xf32> to vector<27xf32>
    %264 = vector.shape_cast %263 : vector<27xf32> to vector<27x1xf32>
    %cst_126 = arith.constant 3.200000e+01 : f32
    %265 = vector.broadcast %cst_126 : f32 to vector<27x1xf32>
    %266 = arith.divf %264, %265 : vector<27x1xf32>
    %cst_127 = arith.constant 9.99999974E-6 : f32
    %267 = vector.broadcast %cst_127 : f32 to vector<27x1xf32>
    %268 = arith.addf %266, %267 : vector<27x1xf32>
    %269 = math.rsqrt %268 : vector<27x1xf32>
    %270 = vector.broadcast %269 : vector<27x1xf32> to vector<27x32xf32>
    %271 = arith.mulf %261, %270 : vector<27x32xf32>
    %272 = vector.broadcast %253 : vector<1x32xf32> to vector<27x32xf32>
    %273 = arith.mulf %271, %272 : vector<27x32xf32>
    %274 = vector.broadcast %255 : vector<1x32xf32> to vector<27x32xf32>
    %275 = arith.addf %273, %274 : vector<27x32xf32>
    %c1_128 = arith.constant 1 : index
    %c0_129 = arith.constant 0 : index
    %c0_130 = arith.constant 0 : index
    %276 = vector.load %arg5[%c1_128, %c0_129, %c0_130] : memref<2x96x32xf32, #tpu.memory_space<vmem>>, vector<1x96x32xf32>
    %277 = vector.shape_cast %276 : vector<1x96x32xf32> to vector<96x32xf32>
    "tpu.trace_start"() <{level = 10 : i32, message = "nd,ed->ne"}> : () -> ()
    %cst_131 = arith.constant dense<0.000000e+00> : vector<27x96xf32>
    %278 = tpu.matmul %275, %277, %cst_131 {dimension_numbers = #tpu.dot_dimension_numbers<[1], [1], [0], [0], [0, 0, 1, 0], [], []>} : vector<27x32xf32>, vector<96x32xf32>, vector<27x96xf32> -> vector<27x96xf32>
    "tpu.trace_stop"() : () -> ()
    %c1_132 = arith.constant 1 : index
    %c0_133 = arith.constant 0 : index
    %c0_134 = arith.constant 0 : index
    %279 = vector.load %arg6[%c1_132, %c0_133, %c0_134] : memref<2x1x96xf32, #tpu.memory_space<vmem>>, vector<1x1x96xf32>
    %280 = vector.shape_cast %279 : vector<1x1x96xf32> to vector<1x96xf32>
    %281 = vector.broadcast %280 : vector<1x96xf32> to vector<27x96xf32>
    %282 = arith.addf %278, %281 : vector<27x96xf32>
    %283 = vector.extract_strided_slice %282 {offsets = [0, 0], sizes = [27, 32], strides = [1, 1]} : vector<27x96xf32> to vector<27x32xf32>
    %cst_135 = arith.constant 0.353553385 : f32
    %284 = vector.broadcast %cst_135 : f32 to vector<27x32xf32>
    %285 = arith.mulf %283, %284 : vector<27x32xf32>
    %286 = vector.extract_strided_slice %282 {offsets = [0, 32], sizes = [27, 32], strides = [1, 1]} : vector<27x96xf32> to vector<27x32xf32>
    %287 = vector.extract_strided_slice %282 {offsets = [0, 64], sizes = [27, 32], strides = [1, 1]} : vector<27x96xf32> to vector<27x32xf32>
    %c1_136 = arith.constant 1 : index
    %c0_137 = arith.constant 0 : index
    %c0_138 = arith.constant 0 : index
    %288 = vector.load %arg7[%c1_136, %c0_137, %c0_138] : memref<2x32x32xf32, #tpu.memory_space<vmem>>, vector<1x32x32xf32>
    %289 = vector.shape_cast %288 : vector<1x32x32xf32> to vector<32x32xf32>
    %c1_139 = arith.constant 1 : index
    %c0_140 = arith.constant 0 : index
    %c0_141 = arith.constant 0 : index
    %290 = vector.load %arg8[%c1_139, %c0_140, %c0_141] : memref<2x1x32xf32, #tpu.memory_space<vmem>>, vector<1x1x32xf32>
    %291 = vector.shape_cast %290 : vector<1x1x32xf32> to vector<1x32xf32>
    %292 = vector.extract_strided_slice %285 {offsets = [0, 0], sizes = [27, 8], strides = [1, 1]} : vector<27x32xf32> to vector<27x8xf32>
    %293 = vector.extract_strided_slice %286 {offsets = [0, 0], sizes = [27, 8], strides = [1, 1]} : vector<27x32xf32> to vector<27x8xf32>
    "tpu.trace_start"() <{level = 10 : i32, message = "nd,md->nm"}> : () -> ()
    %cst_142 = arith.constant dense<0.000000e+00> : vector<27x27xf32>
    %294 = tpu.matmul %292, %293, %cst_142 {dimension_numbers = #tpu.dot_dimension_numbers<[1], [1], [0], [0], [0, 0, 1, 0], [], []>} : vector<27x8xf32>, vector<27x8xf32>, vector<27x27xf32> -> vector<27x27xf32>
    "tpu.trace_stop"() : () -> ()
    %295 = arith.addf %294, %5 : vector<27x27xf32>
    %cst_143 = arith.constant dense<0xFF800000> : vector<27xf32>
    %296 = vector.multi_reduction <maximumf>, %295, %cst_143 [1] : vector<27x27xf32> to vector<27xf32>
    %297 = vector.shape_cast %296 : vector<27xf32> to vector<27x1xf32>
    %298 = vector.broadcast %297 : vector<27x1xf32> to vector<27x27xf32>
    %299 = arith.subf %295, %298 : vector<27x27xf32>
    %300 = math.exp %299 : vector<27x27xf32>
    %cst_144 = arith.constant dense<0.000000e+00> : vector<27xf32>
    %301 = vector.multi_reduction <add>, %300, %cst_144 [1] : vector<27x27xf32> to vector<27xf32>
    %302 = vector.shape_cast %301 : vector<27xf32> to vector<27x1xf32>
    %303 = tpu.reciprocal %302 {approx = true} : vector<27x1xf32> -> vector<27x1xf32>
    %304 = vector.broadcast %303 : vector<27x1xf32> to vector<27x27xf32>
    %305 = arith.mulf %300, %304 : vector<27x27xf32>
    %306 = vector.extract_strided_slice %287 {offsets = [0, 0], sizes = [27, 8], strides = [1, 1]} : vector<27x32xf32> to vector<27x8xf32>
    %cst_145 = arith.constant dense<0.000000e+00> : vector<27x8xf32>
    %307 = tpu.matmul %305, %306, %cst_145 {dimension_numbers = #tpu.dot_dimension_numbers<[1], [0], [0], [1], [0, 0, 1, 1], [], []>} : vector<27x27xf32>, vector<27x8xf32>, vector<27x8xf32> -> vector<27x8xf32>
    %308 = vector.extract_strided_slice %285 {offsets = [0, 8], sizes = [27, 8], strides = [1, 1]} : vector<27x32xf32> to vector<27x8xf32>
    %309 = vector.extract_strided_slice %286 {offsets = [0, 8], sizes = [27, 8], strides = [1, 1]} : vector<27x32xf32> to vector<27x8xf32>
    "tpu.trace_start"() <{level = 10 : i32, message = "nd,md->nm"}> : () -> ()
    %cst_146 = arith.constant dense<0.000000e+00> : vector<27x27xf32>
    %310 = tpu.matmul %308, %309, %cst_146 {dimension_numbers = #tpu.dot_dimension_numbers<[1], [1], [0], [0], [0, 0, 1, 0], [], []>} : vector<27x8xf32>, vector<27x8xf32>, vector<27x27xf32> -> vector<27x27xf32>
    "tpu.trace_stop"() : () -> ()
    %311 = arith.addf %310, %5 : vector<27x27xf32>
    %cst_147 = arith.constant dense<0xFF800000> : vector<27xf32>
    %312 = vector.multi_reduction <maximumf>, %311, %cst_147 [1] : vector<27x27xf32> to vector<27xf32>
    %313 = vector.shape_cast %312 : vector<27xf32> to vector<27x1xf32>
    %314 = vector.broadcast %313 : vector<27x1xf32> to vector<27x27xf32>
    %315 = arith.subf %311, %314 : vector<27x27xf32>
    %316 = math.exp %315 : vector<27x27xf32>
    %cst_148 = arith.constant dense<0.000000e+00> : vector<27xf32>
    %317 = vector.multi_reduction <add>, %316, %cst_148 [1] : vector<27x27xf32> to vector<27xf32>
    %318 = vector.shape_cast %317 : vector<27xf32> to vector<27x1xf32>
    %319 = tpu.reciprocal %318 {approx = true} : vector<27x1xf32> -> vector<27x1xf32>
    %320 = vector.broadcast %319 : vector<27x1xf32> to vector<27x27xf32>
    %321 = arith.mulf %316, %320 : vector<27x27xf32>
    %322 = vector.extract_strided_slice %287 {offsets = [0, 8], sizes = [27, 8], strides = [1, 1]} : vector<27x32xf32> to vector<27x8xf32>
    %cst_149 = arith.constant dense<0.000000e+00> : vector<27x8xf32>
    %323 = tpu.matmul %321, %322, %cst_149 {dimension_numbers = #tpu.dot_dimension_numbers<[1], [0], [0], [1], [0, 0, 1, 1], [], []>} : vector<27x27xf32>, vector<27x8xf32>, vector<27x8xf32> -> vector<27x8xf32>
    %324 = vector.extract_strided_slice %285 {offsets = [0, 16], sizes = [27, 8], strides = [1, 1]} : vector<27x32xf32> to vector<27x8xf32>
    %325 = vector.extract_strided_slice %286 {offsets = [0, 16], sizes = [27, 8], strides = [1, 1]} : vector<27x32xf32> to vector<27x8xf32>
    "tpu.trace_start"() <{level = 10 : i32, message = "nd,md->nm"}> : () -> ()
    %cst_150 = arith.constant dense<0.000000e+00> : vector<27x27xf32>
    %326 = tpu.matmul %324, %325, %cst_150 {dimension_numbers = #tpu.dot_dimension_numbers<[1], [1], [0], [0], [0, 0, 1, 0], [], []>} : vector<27x8xf32>, vector<27x8xf32>, vector<27x27xf32> -> vector<27x27xf32>
    "tpu.trace_stop"() : () -> ()
    %327 = arith.addf %326, %5 : vector<27x27xf32>
    %cst_151 = arith.constant dense<0xFF800000> : vector<27xf32>
    %328 = vector.multi_reduction <maximumf>, %327, %cst_151 [1] : vector<27x27xf32> to vector<27xf32>
    %329 = vector.shape_cast %328 : vector<27xf32> to vector<27x1xf32>
    %330 = vector.broadcast %329 : vector<27x1xf32> to vector<27x27xf32>
    %331 = arith.subf %327, %330 : vector<27x27xf32>
    %332 = math.exp %331 : vector<27x27xf32>
    %cst_152 = arith.constant dense<0.000000e+00> : vector<27xf32>
    %333 = vector.multi_reduction <add>, %332, %cst_152 [1] : vector<27x27xf32> to vector<27xf32>
    %334 = vector.shape_cast %333 : vector<27xf32> to vector<27x1xf32>
    %335 = tpu.reciprocal %334 {approx = true} : vector<27x1xf32> -> vector<27x1xf32>
    %336 = vector.broadcast %335 : vector<27x1xf32> to vector<27x27xf32>
    %337 = arith.mulf %332, %336 : vector<27x27xf32>
    %338 = vector.extract_strided_slice %287 {offsets = [0, 16], sizes = [27, 8], strides = [1, 1]} : vector<27x32xf32> to vector<27x8xf32>
    %cst_153 = arith.constant dense<0.000000e+00> : vector<27x8xf32>
    %339 = tpu.matmul %337, %338, %cst_153 {dimension_numbers = #tpu.dot_dimension_numbers<[1], [0], [0], [1], [0, 0, 1, 1], [], []>} : vector<27x27xf32>, vector<27x8xf32>, vector<27x8xf32> -> vector<27x8xf32>
    %340 = vector.extract_strided_slice %285 {offsets = [0, 24], sizes = [27, 8], strides = [1, 1]} : vector<27x32xf32> to vector<27x8xf32>
    %341 = vector.extract_strided_slice %286 {offsets = [0, 24], sizes = [27, 8], strides = [1, 1]} : vector<27x32xf32> to vector<27x8xf32>
    "tpu.trace_start"() <{level = 10 : i32, message = "nd,md->nm"}> : () -> ()
    %cst_154 = arith.constant dense<0.000000e+00> : vector<27x27xf32>
    %342 = tpu.matmul %340, %341, %cst_154 {dimension_numbers = #tpu.dot_dimension_numbers<[1], [1], [0], [0], [0, 0, 1, 0], [], []>} : vector<27x8xf32>, vector<27x8xf32>, vector<27x27xf32> -> vector<27x27xf32>
    "tpu.trace_stop"() : () -> ()
    %343 = arith.addf %342, %5 : vector<27x27xf32>
    %cst_155 = arith.constant dense<0xFF800000> : vector<27xf32>
    %344 = vector.multi_reduction <maximumf>, %343, %cst_155 [1] : vector<27x27xf32> to vector<27xf32>
    %345 = vector.shape_cast %344 : vector<27xf32> to vector<27x1xf32>
    %346 = vector.broadcast %345 : vector<27x1xf32> to vector<27x27xf32>
    %347 = arith.subf %343, %346 : vector<27x27xf32>
    %348 = math.exp %347 : vector<27x27xf32>
    %cst_156 = arith.constant dense<0.000000e+00> : vector<27xf32>
    %349 = vector.multi_reduction <add>, %348, %cst_156 [1] : vector<27x27xf32> to vector<27xf32>
    %350 = vector.shape_cast %349 : vector<27xf32> to vector<27x1xf32>
    %351 = tpu.reciprocal %350 {approx = true} : vector<27x1xf32> -> vector<27x1xf32>
    %352 = vector.broadcast %351 : vector<27x1xf32> to vector<27x27xf32>
    %353 = arith.mulf %348, %352 : vector<27x27xf32>
    %354 = vector.extract_strided_slice %287 {offsets = [0, 24], sizes = [27, 8], strides = [1, 1]} : vector<27x32xf32> to vector<27x8xf32>
    %cst_157 = arith.constant dense<0.000000e+00> : vector<27x8xf32>
    %355 = tpu.matmul %353, %354, %cst_157 {dimension_numbers = #tpu.dot_dimension_numbers<[1], [0], [0], [1], [0, 0, 1, 1], [], []>} : vector<27x27xf32>, vector<27x8xf32>, vector<27x8xf32> -> vector<27x8xf32>
    %356 = tpu.concatenate %307, %323, %339, %355 in 1 : vector<27x8xf32>, vector<27x8xf32>, vector<27x8xf32>, vector<27x8xf32> -> vector<27x32xf32>
    "tpu.trace_start"() <{level = 10 : i32, message = "nd,od->no"}> : () -> ()
    %cst_158 = arith.constant dense<0.000000e+00> : vector<27x32xf32>
    %357 = tpu.matmul %356, %289, %cst_158 {dimension_numbers = #tpu.dot_dimension_numbers<[1], [1], [0], [0], [0, 0, 1, 0], [], []>} : vector<27x32xf32>, vector<32x32xf32>, vector<27x32xf32> -> vector<27x32xf32>
    "tpu.trace_stop"() : () -> ()
    %358 = vector.broadcast %291 : vector<1x32xf32> to vector<27x32xf32>
    %359 = arith.addf %357, %358 : vector<27x32xf32>
    %360 = arith.addf %275, %359 : vector<27x32xf32>
    %c1_159 = arith.constant 1 : index
    %c0_160 = arith.constant 0 : index
    %c0_161 = arith.constant 0 : index
    %c0_162 = arith.constant 0 : index
    %361 = vector.load %arg17[%c1_159, %c0_160, %c0_161, %c0_162] : memref<2x3x1x32xf32, #tpu.memory_space<vmem>>, vector<1x1x1x32xf32>
    %362 = vector.shape_cast %361 : vector<1x1x1x32xf32> to vector<1x32xf32>
    %c1_163 = arith.constant 1 : index
    %c0_164 = arith.constant 0 : index
    %c0_165 = arith.constant 0 : index
    %c0_166 = arith.constant 0 : index
    %363 = vector.load %arg18[%c1_163, %c0_164, %c0_165, %c0_166] : memref<2x3x1x32xf32, #tpu.memory_space<vmem>>, vector<1x1x1x32xf32>
    %364 = vector.shape_cast %363 : vector<1x1x1x32xf32> to vector<1x32xf32>
    %cst_167 = arith.constant dense<0.000000e+00> : vector<27xf32>
    %365 = vector.multi_reduction <add>, %360, %cst_167 [1] : vector<27x32xf32> to vector<27xf32>
    %366 = vector.shape_cast %365 : vector<27xf32> to vector<27x1xf32>
    %cst_168 = arith.constant 3.200000e+01 : f32
    %367 = vector.broadcast %cst_168 : f32 to vector<27x1xf32>
    %368 = arith.divf %366, %367 : vector<27x1xf32>
    %369 = vector.broadcast %368 : vector<27x1xf32> to vector<27x32xf32>
    %370 = arith.subf %360, %369 : vector<27x32xf32>
    %371 = arith.mulf %370, %370 : vector<27x32xf32>
    %cst_169 = arith.constant dense<0.000000e+00> : vector<27xf32>
    %372 = vector.multi_reduction <add>, %371, %cst_169 [1] : vector<27x32xf32> to vector<27xf32>
    %373 = vector.shape_cast %372 : vector<27xf32> to vector<27x1xf32>
    %cst_170 = arith.constant 3.200000e+01 : f32
    %374 = vector.broadcast %cst_170 : f32 to vector<27x1xf32>
    %375 = arith.divf %373, %374 : vector<27x1xf32>
    %cst_171 = arith.constant 9.99999974E-6 : f32
    %376 = vector.broadcast %cst_171 : f32 to vector<27x1xf32>
    %377 = arith.addf %375, %376 : vector<27x1xf32>
    %378 = math.rsqrt %377 : vector<27x1xf32>
    %379 = vector.broadcast %378 : vector<27x1xf32> to vector<27x32xf32>
    %380 = arith.mulf %370, %379 : vector<27x32xf32>
    %381 = vector.broadcast %362 : vector<1x32xf32> to vector<27x32xf32>
    %382 = arith.mulf %380, %381 : vector<27x32xf32>
    %383 = vector.broadcast %364 : vector<1x32xf32> to vector<27x32xf32>
    %384 = arith.addf %382, %383 : vector<27x32xf32>
    %c1_172 = arith.constant 1 : index
    %c0_173 = arith.constant 0 : index
    %c0_174 = arith.constant 0 : index
    %385 = vector.load %arg9[%c1_172, %c0_173, %c0_174] : memref<2x96x32xf32, #tpu.memory_space<vmem>>, vector<1x32x32xf32>
    %386 = vector.shape_cast %385 : vector<1x32x32xf32> to vector<32x32xf32>
    "tpu.trace_start"() <{level = 10 : i32, message = "nd,ed->ne"}> : () -> ()
    %cst_175 = arith.constant dense<0.000000e+00> : vector<27x32xf32>
    %387 = tpu.matmul %384, %386, %cst_175 {dimension_numbers = #tpu.dot_dimension_numbers<[1], [1], [0], [0], [0, 0, 1, 0], [], []>} : vector<27x32xf32>, vector<32x32xf32>, vector<27x32xf32> -> vector<27x32xf32>
    "tpu.trace_stop"() : () -> ()
    %c1_176 = arith.constant 1 : index
    %c0_177 = arith.constant 0 : index
    %c0_178 = arith.constant 0 : index
    %388 = vector.load %arg10[%c1_176, %c0_177, %c0_178] : memref<2x1x96xf32, #tpu.memory_space<vmem>>, vector<1x1x32xf32>
    %389 = vector.shape_cast %388 : vector<1x1x32xf32> to vector<1x32xf32>
    %390 = vector.broadcast %389 : vector<1x32xf32> to vector<27x32xf32>
    %391 = arith.addf %387, %390 : vector<27x32xf32>
    %cst_179 = arith.constant 0.353553385 : f32
    %392 = vector.broadcast %cst_179 : f32 to vector<27x32xf32>
    %393 = arith.mulf %391, %392 : vector<27x32xf32>
    %c1_180 = arith.constant 1 : index
    %c32_181 = arith.constant 32 : index
    %c0_182 = arith.constant 0 : index
    %394 = vector.load %arg9[%c1_180, %c32_181, %c0_182] : memref<2x96x32xf32, #tpu.memory_space<vmem>>, vector<1x64x32xf32>
    %395 = vector.shape_cast %394 : vector<1x64x32xf32> to vector<64x32xf32>
    "tpu.trace_start"() <{level = 10 : i32, message = "md,ed->me"}> : () -> ()
    %cst_183 = arith.constant dense<0.000000e+00> : vector<16x64xf32>
    %396 = tpu.matmul %4, %395, %cst_183 {dimension_numbers = #tpu.dot_dimension_numbers<[1], [1], [0], [0], [0, 0, 1, 0], [], []>} : vector<16x32xf32>, vector<64x32xf32>, vector<16x64xf32> -> vector<16x64xf32>
    "tpu.trace_stop"() : () -> ()
    %c1_184 = arith.constant 1 : index
    %c0_185 = arith.constant 0 : index
    %c32_186 = arith.constant 32 : index
    %397 = vector.load %arg10[%c1_184, %c0_185, %c32_186] : memref<2x1x96xf32, #tpu.memory_space<vmem>>, vector<1x1x64xf32>
    %398 = vector.shape_cast %397 : vector<1x1x64xf32> to vector<1x64xf32>
    %399 = vector.broadcast %398 : vector<1x64xf32> to vector<16x64xf32>
    %400 = arith.addf %396, %399 : vector<16x64xf32>
    %401 = vector.extract_strided_slice %400 {offsets = [0, 0], sizes = [16, 32], strides = [1, 1]} : vector<16x64xf32> to vector<16x32xf32>
    %402 = vector.extract_strided_slice %400 {offsets = [0, 32], sizes = [16, 32], strides = [1, 1]} : vector<16x64xf32> to vector<16x32xf32>
    %c1_187 = arith.constant 1 : index
    %c0_188 = arith.constant 0 : index
    %c0_189 = arith.constant 0 : index
    %403 = vector.load %arg11[%c1_187, %c0_188, %c0_189] : memref<2x32x32xf32, #tpu.memory_space<vmem>>, vector<1x32x32xf32>
    %404 = vector.shape_cast %403 : vector<1x32x32xf32> to vector<32x32xf32>
    %c1_190 = arith.constant 1 : index
    %c0_191 = arith.constant 0 : index
    %c0_192 = arith.constant 0 : index
    %405 = vector.load %arg12[%c1_190, %c0_191, %c0_192] : memref<2x1x32xf32, #tpu.memory_space<vmem>>, vector<1x1x32xf32>
    %406 = vector.shape_cast %405 : vector<1x1x32xf32> to vector<1x32xf32>
    %407 = vector.extract_strided_slice %393 {offsets = [0, 0], sizes = [27, 8], strides = [1, 1]} : vector<27x32xf32> to vector<27x8xf32>
    %408 = vector.extract_strided_slice %401 {offsets = [0, 0], sizes = [16, 8], strides = [1, 1]} : vector<16x32xf32> to vector<16x8xf32>
    "tpu.trace_start"() <{level = 10 : i32, message = "nd,md->nm"}> : () -> ()
    %cst_193 = arith.constant dense<0.000000e+00> : vector<27x16xf32>
    %409 = tpu.matmul %407, %408, %cst_193 {dimension_numbers = #tpu.dot_dimension_numbers<[1], [1], [0], [0], [0, 0, 1, 0], [], []>} : vector<27x8xf32>, vector<16x8xf32>, vector<27x16xf32> -> vector<27x16xf32>
    "tpu.trace_stop"() : () -> ()
    %410 = vector.broadcast %6 : vector<1x16xf32> to vector<27x16xf32>
    %411 = arith.addf %409, %410 : vector<27x16xf32>
    %cst_194 = arith.constant dense<0xFF800000> : vector<27xf32>
    %412 = vector.multi_reduction <maximumf>, %411, %cst_194 [1] : vector<27x16xf32> to vector<27xf32>
    %413 = vector.shape_cast %412 : vector<27xf32> to vector<27x1xf32>
    %414 = vector.broadcast %413 : vector<27x1xf32> to vector<27x16xf32>
    %415 = arith.subf %411, %414 : vector<27x16xf32>
    %416 = math.exp %415 : vector<27x16xf32>
    %cst_195 = arith.constant dense<0.000000e+00> : vector<27xf32>
    %417 = vector.multi_reduction <add>, %416, %cst_195 [1] : vector<27x16xf32> to vector<27xf32>
    %418 = vector.shape_cast %417 : vector<27xf32> to vector<27x1xf32>
    %419 = tpu.reciprocal %418 {approx = true} : vector<27x1xf32> -> vector<27x1xf32>
    %420 = vector.broadcast %419 : vector<27x1xf32> to vector<27x16xf32>
    %421 = arith.mulf %416, %420 : vector<27x16xf32>
    %422 = vector.extract_strided_slice %402 {offsets = [0, 0], sizes = [16, 8], strides = [1, 1]} : vector<16x32xf32> to vector<16x8xf32>
    %cst_196 = arith.constant dense<0.000000e+00> : vector<27x8xf32>
    %423 = tpu.matmul %421, %422, %cst_196 {dimension_numbers = #tpu.dot_dimension_numbers<[1], [0], [0], [1], [0, 0, 1, 1], [], []>} : vector<27x16xf32>, vector<16x8xf32>, vector<27x8xf32> -> vector<27x8xf32>
    %424 = vector.extract_strided_slice %393 {offsets = [0, 8], sizes = [27, 8], strides = [1, 1]} : vector<27x32xf32> to vector<27x8xf32>
    %425 = vector.extract_strided_slice %401 {offsets = [0, 8], sizes = [16, 8], strides = [1, 1]} : vector<16x32xf32> to vector<16x8xf32>
    "tpu.trace_start"() <{level = 10 : i32, message = "nd,md->nm"}> : () -> ()
    %cst_197 = arith.constant dense<0.000000e+00> : vector<27x16xf32>
    %426 = tpu.matmul %424, %425, %cst_197 {dimension_numbers = #tpu.dot_dimension_numbers<[1], [1], [0], [0], [0, 0, 1, 0], [], []>} : vector<27x8xf32>, vector<16x8xf32>, vector<27x16xf32> -> vector<27x16xf32>
    "tpu.trace_stop"() : () -> ()
    %427 = vector.broadcast %6 : vector<1x16xf32> to vector<27x16xf32>
    %428 = arith.addf %426, %427 : vector<27x16xf32>
    %cst_198 = arith.constant dense<0xFF800000> : vector<27xf32>
    %429 = vector.multi_reduction <maximumf>, %428, %cst_198 [1] : vector<27x16xf32> to vector<27xf32>
    %430 = vector.shape_cast %429 : vector<27xf32> to vector<27x1xf32>
    %431 = vector.broadcast %430 : vector<27x1xf32> to vector<27x16xf32>
    %432 = arith.subf %428, %431 : vector<27x16xf32>
    %433 = math.exp %432 : vector<27x16xf32>
    %cst_199 = arith.constant dense<0.000000e+00> : vector<27xf32>
    %434 = vector.multi_reduction <add>, %433, %cst_199 [1] : vector<27x16xf32> to vector<27xf32>
    %435 = vector.shape_cast %434 : vector<27xf32> to vector<27x1xf32>
    %436 = tpu.reciprocal %435 {approx = true} : vector<27x1xf32> -> vector<27x1xf32>
    %437 = vector.broadcast %436 : vector<27x1xf32> to vector<27x16xf32>
    %438 = arith.mulf %433, %437 : vector<27x16xf32>
    %439 = vector.extract_strided_slice %402 {offsets = [0, 8], sizes = [16, 8], strides = [1, 1]} : vector<16x32xf32> to vector<16x8xf32>
    %cst_200 = arith.constant dense<0.000000e+00> : vector<27x8xf32>
    %440 = tpu.matmul %438, %439, %cst_200 {dimension_numbers = #tpu.dot_dimension_numbers<[1], [0], [0], [1], [0, 0, 1, 1], [], []>} : vector<27x16xf32>, vector<16x8xf32>, vector<27x8xf32> -> vector<27x8xf32>
    %441 = vector.extract_strided_slice %393 {offsets = [0, 16], sizes = [27, 8], strides = [1, 1]} : vector<27x32xf32> to vector<27x8xf32>
    %442 = vector.extract_strided_slice %401 {offsets = [0, 16], sizes = [16, 8], strides = [1, 1]} : vector<16x32xf32> to vector<16x8xf32>
    "tpu.trace_start"() <{level = 10 : i32, message = "nd,md->nm"}> : () -> ()
    %cst_201 = arith.constant dense<0.000000e+00> : vector<27x16xf32>
    %443 = tpu.matmul %441, %442, %cst_201 {dimension_numbers = #tpu.dot_dimension_numbers<[1], [1], [0], [0], [0, 0, 1, 0], [], []>} : vector<27x8xf32>, vector<16x8xf32>, vector<27x16xf32> -> vector<27x16xf32>
    "tpu.trace_stop"() : () -> ()
    %444 = vector.broadcast %6 : vector<1x16xf32> to vector<27x16xf32>
    %445 = arith.addf %443, %444 : vector<27x16xf32>
    %cst_202 = arith.constant dense<0xFF800000> : vector<27xf32>
    %446 = vector.multi_reduction <maximumf>, %445, %cst_202 [1] : vector<27x16xf32> to vector<27xf32>
    %447 = vector.shape_cast %446 : vector<27xf32> to vector<27x1xf32>
    %448 = vector.broadcast %447 : vector<27x1xf32> to vector<27x16xf32>
    %449 = arith.subf %445, %448 : vector<27x16xf32>
    %450 = math.exp %449 : vector<27x16xf32>
    %cst_203 = arith.constant dense<0.000000e+00> : vector<27xf32>
    %451 = vector.multi_reduction <add>, %450, %cst_203 [1] : vector<27x16xf32> to vector<27xf32>
    %452 = vector.shape_cast %451 : vector<27xf32> to vector<27x1xf32>
    %453 = tpu.reciprocal %452 {approx = true} : vector<27x1xf32> -> vector<27x1xf32>
    %454 = vector.broadcast %453 : vector<27x1xf32> to vector<27x16xf32>
    %455 = arith.mulf %450, %454 : vector<27x16xf32>
    %456 = vector.extract_strided_slice %402 {offsets = [0, 16], sizes = [16, 8], strides = [1, 1]} : vector<16x32xf32> to vector<16x8xf32>
    %cst_204 = arith.constant dense<0.000000e+00> : vector<27x8xf32>
    %457 = tpu.matmul %455, %456, %cst_204 {dimension_numbers = #tpu.dot_dimension_numbers<[1], [0], [0], [1], [0, 0, 1, 1], [], []>} : vector<27x16xf32>, vector<16x8xf32>, vector<27x8xf32> -> vector<27x8xf32>
    %458 = vector.extract_strided_slice %393 {offsets = [0, 24], sizes = [27, 8], strides = [1, 1]} : vector<27x32xf32> to vector<27x8xf32>
    %459 = vector.extract_strided_slice %401 {offsets = [0, 24], sizes = [16, 8], strides = [1, 1]} : vector<16x32xf32> to vector<16x8xf32>
    "tpu.trace_start"() <{level = 10 : i32, message = "nd,md->nm"}> : () -> ()
    %cst_205 = arith.constant dense<0.000000e+00> : vector<27x16xf32>
    %460 = tpu.matmul %458, %459, %cst_205 {dimension_numbers = #tpu.dot_dimension_numbers<[1], [1], [0], [0], [0, 0, 1, 0], [], []>} : vector<27x8xf32>, vector<16x8xf32>, vector<27x16xf32> -> vector<27x16xf32>
    "tpu.trace_stop"() : () -> ()
    %461 = vector.broadcast %6 : vector<1x16xf32> to vector<27x16xf32>
    %462 = arith.addf %460, %461 : vector<27x16xf32>
    %cst_206 = arith.constant dense<0xFF800000> : vector<27xf32>
    %463 = vector.multi_reduction <maximumf>, %462, %cst_206 [1] : vector<27x16xf32> to vector<27xf32>
    %464 = vector.shape_cast %463 : vector<27xf32> to vector<27x1xf32>
    %465 = vector.broadcast %464 : vector<27x1xf32> to vector<27x16xf32>
    %466 = arith.subf %462, %465 : vector<27x16xf32>
    %467 = math.exp %466 : vector<27x16xf32>
    %cst_207 = arith.constant dense<0.000000e+00> : vector<27xf32>
    %468 = vector.multi_reduction <add>, %467, %cst_207 [1] : vector<27x16xf32> to vector<27xf32>
    %469 = vector.shape_cast %468 : vector<27xf32> to vector<27x1xf32>
    %470 = tpu.reciprocal %469 {approx = true} : vector<27x1xf32> -> vector<27x1xf32>
    %471 = vector.broadcast %470 : vector<27x1xf32> to vector<27x16xf32>
    %472 = arith.mulf %467, %471 : vector<27x16xf32>
    %473 = vector.extract_strided_slice %402 {offsets = [0, 24], sizes = [16, 8], strides = [1, 1]} : vector<16x32xf32> to vector<16x8xf32>
    %cst_208 = arith.constant dense<0.000000e+00> : vector<27x8xf32>
    %474 = tpu.matmul %472, %473, %cst_208 {dimension_numbers = #tpu.dot_dimension_numbers<[1], [0], [0], [1], [0, 0, 1, 1], [], []>} : vector<27x16xf32>, vector<16x8xf32>, vector<27x8xf32> -> vector<27x8xf32>
    %475 = tpu.concatenate %423, %440, %457, %474 in 1 : vector<27x8xf32>, vector<27x8xf32>, vector<27x8xf32>, vector<27x8xf32> -> vector<27x32xf32>
    "tpu.trace_start"() <{level = 10 : i32, message = "nd,od->no"}> : () -> ()
    %cst_209 = arith.constant dense<0.000000e+00> : vector<27x32xf32>
    %476 = tpu.matmul %475, %404, %cst_209 {dimension_numbers = #tpu.dot_dimension_numbers<[1], [1], [0], [0], [0, 0, 1, 0], [], []>} : vector<27x32xf32>, vector<32x32xf32>, vector<27x32xf32> -> vector<27x32xf32>
    "tpu.trace_stop"() : () -> ()
    %477 = vector.broadcast %406 : vector<1x32xf32> to vector<27x32xf32>
    %478 = arith.addf %476, %477 : vector<27x32xf32>
    %479 = arith.addf %384, %478 : vector<27x32xf32>
    %c1_210 = arith.constant 1 : index
    %c1_211 = arith.constant 1 : index
    %c0_212 = arith.constant 0 : index
    %c0_213 = arith.constant 0 : index
    %480 = vector.load %arg17[%c1_210, %c1_211, %c0_212, %c0_213] : memref<2x3x1x32xf32, #tpu.memory_space<vmem>>, vector<1x1x1x32xf32>
    %481 = vector.shape_cast %480 : vector<1x1x1x32xf32> to vector<1x32xf32>
    %c1_214 = arith.constant 1 : index
    %c1_215 = arith.constant 1 : index
    %c0_216 = arith.constant 0 : index
    %c0_217 = arith.constant 0 : index
    %482 = vector.load %arg18[%c1_214, %c1_215, %c0_216, %c0_217] : memref<2x3x1x32xf32, #tpu.memory_space<vmem>>, vector<1x1x1x32xf32>
    %483 = vector.shape_cast %482 : vector<1x1x1x32xf32> to vector<1x32xf32>
    %cst_218 = arith.constant dense<0.000000e+00> : vector<27xf32>
    %484 = vector.multi_reduction <add>, %479, %cst_218 [1] : vector<27x32xf32> to vector<27xf32>
    %485 = vector.shape_cast %484 : vector<27xf32> to vector<27x1xf32>
    %cst_219 = arith.constant 3.200000e+01 : f32
    %486 = vector.broadcast %cst_219 : f32 to vector<27x1xf32>
    %487 = arith.divf %485, %486 : vector<27x1xf32>
    %488 = vector.broadcast %487 : vector<27x1xf32> to vector<27x32xf32>
    %489 = arith.subf %479, %488 : vector<27x32xf32>
    %490 = arith.mulf %489, %489 : vector<27x32xf32>
    %cst_220 = arith.constant dense<0.000000e+00> : vector<27xf32>
    %491 = vector.multi_reduction <add>, %490, %cst_220 [1] : vector<27x32xf32> to vector<27xf32>
    %492 = vector.shape_cast %491 : vector<27xf32> to vector<27x1xf32>
    %cst_221 = arith.constant 3.200000e+01 : f32
    %493 = vector.broadcast %cst_221 : f32 to vector<27x1xf32>
    %494 = arith.divf %492, %493 : vector<27x1xf32>
    %cst_222 = arith.constant 9.99999974E-6 : f32
    %495 = vector.broadcast %cst_222 : f32 to vector<27x1xf32>
    %496 = arith.addf %494, %495 : vector<27x1xf32>
    %497 = math.rsqrt %496 : vector<27x1xf32>
    %498 = vector.broadcast %497 : vector<27x1xf32> to vector<27x32xf32>
    %499 = arith.mulf %489, %498 : vector<27x32xf32>
    %500 = vector.broadcast %481 : vector<1x32xf32> to vector<27x32xf32>
    %501 = arith.mulf %499, %500 : vector<27x32xf32>
    %502 = vector.broadcast %483 : vector<1x32xf32> to vector<27x32xf32>
    %503 = arith.addf %501, %502 : vector<27x32xf32>
    %c1_223 = arith.constant 1 : index
    %c0_224 = arith.constant 0 : index
    %c0_225 = arith.constant 0 : index
    %504 = vector.load %arg13[%c1_223, %c0_224, %c0_225] : memref<2x64x32xf32, #tpu.memory_space<vmem>>, vector<1x64x32xf32>
    %505 = vector.shape_cast %504 : vector<1x64x32xf32> to vector<64x32xf32>
    "tpu.trace_start"() <{level = 10 : i32, message = "nd,hd->nh"}> : () -> ()
    %cst_226 = arith.constant dense<0.000000e+00> : vector<27x64xf32>
    %506 = tpu.matmul %503, %505, %cst_226 {dimension_numbers = #tpu.dot_dimension_numbers<[1], [1], [0], [0], [0, 0, 1, 0], [], []>} : vector<27x32xf32>, vector<64x32xf32>, vector<27x64xf32> -> vector<27x64xf32>
    "tpu.trace_stop"() : () -> ()
    %c1_227 = arith.constant 1 : index
    %c0_228 = arith.constant 0 : index
    %c0_229 = arith.constant 0 : index
    %507 = vector.load %arg14[%c1_227, %c0_228, %c0_229] : memref<2x1x64xf32, #tpu.memory_space<vmem>>, vector<1x1x64xf32>
    %508 = vector.shape_cast %507 : vector<1x1x64xf32> to vector<1x64xf32>
    %509 = vector.broadcast %508 : vector<1x64xf32> to vector<27x64xf32>
    %510 = arith.addf %506, %509 : vector<27x64xf32>
    %cst_230 = arith.constant 0.000000e+00 : f32
    %511 = vector.broadcast %cst_230 : f32 to vector<27x64xf32>
    %512 = arith.maximumf %510, %511 : vector<27x64xf32>
    %c1_231 = arith.constant 1 : index
    %c0_232 = arith.constant 0 : index
    %c0_233 = arith.constant 0 : index
    %513 = vector.load %arg15[%c1_231, %c0_232, %c0_233] : memref<2x32x64xf32, #tpu.memory_space<vmem>>, vector<1x32x64xf32>
    %514 = vector.shape_cast %513 : vector<1x32x64xf32> to vector<32x64xf32>
    "tpu.trace_start"() <{level = 10 : i32, message = "nh,dh->nd"}> : () -> ()
    %cst_234 = arith.constant dense<0.000000e+00> : vector<27x32xf32>
    %515 = tpu.matmul %512, %514, %cst_234 {dimension_numbers = #tpu.dot_dimension_numbers<[1], [1], [0], [0], [0, 0, 1, 0], [], []>} : vector<27x64xf32>, vector<32x64xf32>, vector<27x32xf32> -> vector<27x32xf32>
    "tpu.trace_stop"() : () -> ()
    %c1_235 = arith.constant 1 : index
    %c0_236 = arith.constant 0 : index
    %c0_237 = arith.constant 0 : index
    %516 = vector.load %arg16[%c1_235, %c0_236, %c0_237] : memref<2x1x32xf32, #tpu.memory_space<vmem>>, vector<1x1x32xf32>
    %517 = vector.shape_cast %516 : vector<1x1x32xf32> to vector<1x32xf32>
    %518 = vector.broadcast %517 : vector<1x32xf32> to vector<27x32xf32>
    %519 = arith.addf %515, %518 : vector<27x32xf32>
    %520 = arith.addf %503, %519 : vector<27x32xf32>
    %c1_238 = arith.constant 1 : index
    %c2_239 = arith.constant 2 : index
    %c0_240 = arith.constant 0 : index
    %c0_241 = arith.constant 0 : index
    %521 = vector.load %arg17[%c1_238, %c2_239, %c0_240, %c0_241] : memref<2x3x1x32xf32, #tpu.memory_space<vmem>>, vector<1x1x1x32xf32>
    %522 = vector.shape_cast %521 : vector<1x1x1x32xf32> to vector<1x32xf32>
    %c1_242 = arith.constant 1 : index
    %c2_243 = arith.constant 2 : index
    %c0_244 = arith.constant 0 : index
    %c0_245 = arith.constant 0 : index
    %523 = vector.load %arg18[%c1_242, %c2_243, %c0_244, %c0_245] : memref<2x3x1x32xf32, #tpu.memory_space<vmem>>, vector<1x1x1x32xf32>
    %524 = vector.shape_cast %523 : vector<1x1x1x32xf32> to vector<1x32xf32>
    %cst_246 = arith.constant dense<0.000000e+00> : vector<27xf32>
    %525 = vector.multi_reduction <add>, %520, %cst_246 [1] : vector<27x32xf32> to vector<27xf32>
    %526 = vector.shape_cast %525 : vector<27xf32> to vector<27x1xf32>
    %cst_247 = arith.constant 3.200000e+01 : f32
    %527 = vector.broadcast %cst_247 : f32 to vector<27x1xf32>
    %528 = arith.divf %526, %527 : vector<27x1xf32>
    %529 = vector.broadcast %528 : vector<27x1xf32> to vector<27x32xf32>
    %530 = arith.subf %520, %529 : vector<27x32xf32>
    %531 = arith.mulf %530, %530 : vector<27x32xf32>
    %cst_248 = arith.constant dense<0.000000e+00> : vector<27xf32>
    %532 = vector.multi_reduction <add>, %531, %cst_248 [1] : vector<27x32xf32> to vector<27xf32>
    %533 = vector.shape_cast %532 : vector<27xf32> to vector<27x1xf32>
    %cst_249 = arith.constant 3.200000e+01 : f32
    %534 = vector.broadcast %cst_249 : f32 to vector<27x1xf32>
    %535 = arith.divf %533, %534 : vector<27x1xf32>
    %cst_250 = arith.constant 9.99999974E-6 : f32
    %536 = vector.broadcast %cst_250 : f32 to vector<27x1xf32>
    %537 = arith.addf %535, %536 : vector<27x1xf32>
    %538 = math.rsqrt %537 : vector<27x1xf32>
    %539 = vector.broadcast %538 : vector<27x1xf32> to vector<27x32xf32>
    %540 = arith.mulf %530, %539 : vector<27x32xf32>
    %541 = vector.broadcast %522 : vector<1x32xf32> to vector<27x32xf32>
    %542 = arith.mulf %540, %541 : vector<27x32xf32>
    %543 = vector.broadcast %524 : vector<1x32xf32> to vector<27x32xf32>
    %544 = arith.addf %542, %543 : vector<27x32xf32>
    "tpu.trace_start"() <{level = 10 : i32, message = "nd,md->nm"}> : () -> ()
    %cst_251 = arith.constant dense<0.000000e+00> : vector<27x128xf32>
    %545 = tpu.matmul %544, %3, %cst_251 {dimension_numbers = #tpu.dot_dimension_numbers<[1], [1], [0], [0], [0, 0, 1, 0], [], []>} : vector<27x32xf32>, vector<128x32xf32>, vector<27x128xf32> -> vector<27x128xf32>
    "tpu.trace_stop"() : () -> ()
    %c0_252 = arith.constant 0 : index
    %c0_253 = arith.constant 0 : index
    %c0_254 = arith.constant 0 : index
    %546 = vector.load %arg19[%c0_252, %c0_253, %c0_254] : memref<1x27x128xf32, #tpu.memory_space<vmem>>, vector<1x27x128xf32>
    %547 = vector.shape_cast %546 : vector<1x27x128xf32> to vector<27x128xf32>
    %548 = vector.shape_cast %545 : vector<27x128xf32> to vector<1x27x128xf32>
    tpu.vector_store %arg19[%c0_252, %c0_253, %c0_254], %548 {strides = array<i32>} : memref<1x27x128xf32, #tpu.memory_space<vmem>>, vector<1x27x128xf32>,
    return
  }
  func.func @transform_0(%arg0: i32) -> (i32, i32, i32) {
    %c0_i32 = arith.constant 0 : i32
    %c0_i32_0 = arith.constant 0 : i32
    %c0_i32_1 = arith.constant 0 : i32
    return %arg0, %c0_i32, %c0_i32_0 : i32, i32, i32
  }
  func.func @transform_1(%arg0: i32) -> (i32, i32, i32) {
    %c0_i32 = arith.constant 0 : i32
    %c0_i32_0 = arith.constant 0 : i32
    %c0_i32_1 = arith.constant 0 : i32
    return %arg0, %c0_i32, %c0_i32_0 : i32, i32, i32
  }
  func.func @transform_2(%arg0: i32) -> (i32, i32) {
    %c0_i32 = arith.constant 0 : i32
    %c0_i32_0 = arith.constant 0 : i32
    %c0_i32_1 = arith.constant 0 : i32
    return %c0_i32, %c0_i32_0 : i32, i32
  }
  func.func @transform_3(%arg0: i32) -> (i32, i32) {
    %c0_i32 = arith.constant 0 : i32
    %c0_i32_0 = arith.constant 0 : i32
    %c0_i32_1 = arith.constant 0 : i32
    return %c0_i32, %c0_i32_0 : i32, i32
  }
  func.func @transform_4(%arg0: i32) -> (i32, i32, i32) {
    %c0_i32 = arith.constant 0 : i32
    %c0_i32_0 = arith.constant 0 : i32
    %c0_i32_1 = arith.constant 0 : i32
    %c0_i32_2 = arith.constant 0 : i32
    return %c0_i32, %c0_i32_0, %c0_i32_1 : i32, i32, i32
  }
  func.func @transform_5(%arg0: i32) -> (i32, i32, i32) {
    %c0_i32 = arith.constant 0 : i32
    %c0_i32_0 = arith.constant 0 : i32
    %c0_i32_1 = arith.constant 0 : i32
    %c0_i32_2 = arith.constant 0 : i32
    return %c0_i32, %c0_i32_0, %c0_i32_1 : i32, i32, i32
  }
  func.func @transform_6(%arg0: i32) -> (i32, i32, i32) {
    %c0_i32 = arith.constant 0 : i32
    %c0_i32_0 = arith.constant 0 : i32
    %c0_i32_1 = arith.constant 0 : i32
    %c0_i32_2 = arith.constant 0 : i32
    return %c0_i32, %c0_i32_0, %c0_i32_1 : i32, i32, i32
  }
  func.func @transform_7(%arg0: i32) -> (i32, i32, i32) {
    %c0_i32 = arith.constant 0 : i32
    %c0_i32_0 = arith.constant 0 : i32
    %c0_i32_1 = arith.constant 0 : i32
    %c0_i32_2 = arith.constant 0 : i32
    return %c0_i32, %c0_i32_0, %c0_i32_1 : i32, i32, i32
  }
  func.func @transform_8(%arg0: i32) -> (i32, i32, i32) {
    %c0_i32 = arith.constant 0 : i32
    %c0_i32_0 = arith.constant 0 : i32
    %c0_i32_1 = arith.constant 0 : i32
    %c0_i32_2 = arith.constant 0 : i32
    return %c0_i32, %c0_i32_0, %c0_i32_1 : i32, i32, i32
  }
  func.func @transform_9(%arg0: i32) -> (i32, i32, i32) {
    %c0_i32 = arith.constant 0 : i32
    %c0_i32_0 = arith.constant 0 : i32
    %c0_i32_1 = arith.constant 0 : i32
    %c0_i32_2 = arith.constant 0 : i32
    return %c0_i32, %c0_i32_0, %c0_i32_1 : i32, i32, i32
  }
  func.func @transform_10(%arg0: i32) -> (i32, i32, i32) {
    %c0_i32 = arith.constant 0 : i32
    %c0_i32_0 = arith.constant 0 : i32
    %c0_i32_1 = arith.constant 0 : i32
    %c0_i32_2 = arith.constant 0 : i32
    return %c0_i32, %c0_i32_0, %c0_i32_1 : i32, i32, i32
  }
  func.func @transform_11(%arg0: i32) -> (i32, i32, i32) {
    %c0_i32 = arith.constant 0 : i32
    %c0_i32_0 = arith.constant 0 : i32
    %c0_i32_1 = arith.constant 0 : i32
    %c0_i32_2 = arith.constant 0 : i32
    return %c0_i32, %c0_i32_0, %c0_i32_1 : i32, i32, i32
  }
  func.func @transform_12(%arg0: i32) -> (i32, i32, i32) {
    %c0_i32 = arith.constant 0 : i32
    %c0_i32_0 = arith.constant 0 : i32
    %c0_i32_1 = arith.constant 0 : i32
    %c0_i32_2 = arith.constant 0 : i32
    return %c0_i32, %c0_i32_0, %c0_i32_1 : i32, i32, i32
  }
  func.func @transform_13(%arg0: i32) -> (i32, i32, i32) {
    %c0_i32 = arith.constant 0 : i32
    %c0_i32_0 = arith.constant 0 : i32
    %c0_i32_1 = arith.constant 0 : i32
    %c0_i32_2 = arith.constant 0 : i32
    return %c0_i32, %c0_i32_0, %c0_i32_1 : i32, i32, i32
  }
  func.func @transform_14(%arg0: i32) -> (i32, i32, i32) {
    %c0_i32 = arith.constant 0 : i32
    %c0_i32_0 = arith.constant 0 : i32
    %c0_i32_1 = arith.constant 0 : i32
    %c0_i32_2 = arith.constant 0 : i32
    return %c0_i32, %c0_i32_0, %c0_i32_1 : i32, i32, i32
  }
  func.func @transform_15(%arg0: i32) -> (i32, i32, i32) {
    %c0_i32 = arith.constant 0 : i32
    %c0_i32_0 = arith.constant 0 : i32
    %c0_i32_1 = arith.constant 0 : i32
    %c0_i32_2 = arith.constant 0 : i32
    return %c0_i32, %c0_i32_0, %c0_i32_1 : i32, i32, i32
  }
  func.func @transform_16(%arg0: i32) -> (i32, i32, i32, i32) {
    %c0_i32 = arith.constant 0 : i32
    %c0_i32_0 = arith.constant 0 : i32
    %c0_i32_1 = arith.constant 0 : i32
    %c0_i32_2 = arith.constant 0 : i32
    %c0_i32_3 = arith.constant 0 : i32
    return %c0_i32, %c0_i32_0, %c0_i32_1, %c0_i32_2 : i32, i32, i32, i32
  }
  func.func @transform_17(%arg0: i32) -> (i32, i32, i32, i32) {
    %c0_i32 = arith.constant 0 : i32
    %c0_i32_0 = arith.constant 0 : i32
    %c0_i32_1 = arith.constant 0 : i32
    %c0_i32_2 = arith.constant 0 : i32
    %c0_i32_3 = arith.constant 0 : i32
    return %c0_i32, %c0_i32_0, %c0_i32_1, %c0_i32_2 : i32, i32, i32, i32
  }
  func.func @transform_18(%arg0: i32) -> (i32, i32, i32) {
    %c0_i32 = arith.constant 0 : i32
    %c0_i32_0 = arith.constant 0 : i32
    %c0_i32_1 = arith.constant 0 : i32
    return %arg0, %c0_i32, %c0_i32_0 : i32, i32, i32
  }
}

</mosaic_0001>

<bundles_post_ra>
// kernel: tpu_custom_call.1
= control target key start
LH: loop header
LB: loop body
LE: loop exit
PB: predicated region body
PF: predicated region fallthrough
CT: control target
= control target key end

     0   :  { %s10344_s27 = smov 0   ;;  %s12223_s0 = inlined_call_operand.vmem [shape: f32[2,27,32], index: 0, kind: input, shape index: {}]   ;;  %s12224_s1 = inlined_call_operand.vmem [shape: f32[2,128,32], index: 1, kind: input, shape index: {}]   ;;  %s12225_s2 = inlined_call_operand.vmem [shape: f32[27,27], index: 2, kind: input, shape index: {}]   ;;  %s12226_s3 = inlined_call_operand.vmem [shape: f32[1,16], index: 3, kind: input, shape index: {}]   ;;  %s12227_s4 = inlined_call_operand.vmem [shape: f32[2,96,32], index: 4, kind: input, shape index: {}]   ;;  %s12228_s5 = inlined_call_operand.vmem [shape: f32[2,1,96], index: 5, kind: input, shape index: {}]   ;;  %s12229_s6 = inlined_call_operand.vmem [shape: f32[2,32,32], index: 6, kind: input, shape index: {}]   ;;  %s12230_s7 = inlined_call_operand.vmem [shape: f32[2,1,32], index: 7, kind: input, shape index: {}]   ;;  %s12231_s8 = inlined_call_operand.vmem [shape: f32[2,96,32], index: 8, kind: input, shape index: {}]   ;;  %s12232_s9 = inlined_call_operand.vmem [shape: f32[2,1,96], index: 9, kind: input, shape index: {}]   ;;  %s12233_s10 = inlined_call_operand.vmem [shape: f32[2,32,32], index: 10, kind: input, shape index: {}]   ;;  %s12234_s11 = inlined_call_operand.vmem [shape: f32[2,1,32], index: 11, kind: input, shape index: {}]   ;;  %s12235_s12 = inlined_call_operand.vmem [shape: f32[2,64,32], index: 12, kind: input, shape index: {}]   ;;  %s12236_s13 = inlined_call_operand.vmem [shape: f32[2,1,64], index: 13, kind: input, shape index: {}]   ;;  %s12237_s14 = inlined_call_operand.vmem [shape: f32[2,32,64], index: 14, kind: input, shape index: {}]   ;;  %s12238_s15 = inlined_call_operand.vmem [shape: f32[2,1,32], index: 15, kind: input, shape index: {}]   ;;  %s12239_s16 = inlined_call_operand.vmem [shape: f32[2,3,1,32], index: 16, kind: input, shape index: {}]   ;;  %s12240_s17 = inlined_call_operand.vmem [shape: f32[2,3,1,32], index: 17, kind: input, shape index: {}]   ;;  %s12241_s18 = inlined_call_operand.vmem [shape: f32[2,27,128], index: 18, kind: output, shape index: {}]  }
   0x1   :  { %12275 = sst [smem:[#allocation4_spill]] %s12223_s0 }
   0x2   :  { %12276 = sst [smem:[#allocation5_spill]] %s12224_s1 }
   0x3   :  { %12277 = sst [smem:[#allocation6_spill]] %s12225_s2 }
   0x4   :  { %12278 = sst [smem:[#allocation7_spill]] %s12226_s3 }
   0x5   :  { %12279 = sst [smem:[#allocation8_spill]] %s12227_s4 }
   0x6   :  { %12280 = sst [smem:[#allocation9_spill]] %s12233_s10 }
   0x7   :  { %12281 = sst [smem:[#allocation10_spill]] %s12234_s11 }
   0x8   :  { %12282 = sst [smem:[#allocation11_spill]] %s12241_s18 }
   0x9 LB: > { %12283 = sst [smem:[#allocation2_spill]] %s10232_s27  ;;  %s7580_s28 = sadd.s32 4294967295, %s10232_s27   ;;  %s10232_s27 = sphi %s10344_s27, %s28_s27  }
   0xa   : > { %p7584_p0 = scmp.ge.s32.totalorder %s10232_s27, 1  ;;  %p522_p1 = scmp.lt.s32.totalorder %s10232_s27, 3 }
   0xc   : > { %p523_p2 = pnand %p7584_p0, %p522_p1 }
   0xe   : > { %526 = sbr.rel (%p523_p2) target bundleno = 12312 (0x3018), region = 92 }
  0x15   : > { %s12284_s4 = sld [smem:[#allocation8_spill]]  ;;  %vm640_vm0 = vcmask 261120   ;;  %p581_p3 = scmp.lt.s32.totalorder %s7580_s28, 1  ;;  %v7591_v23 = vld [vmem:[%s12228_s5] ss:$0 sm:$0xff]  ;;  %vm795_vm2 = vcmask 64512  }
  0x16   : > { %vm10363_vm1 = vmpackc.low %vm640_vm0, %vm640_vm0  ;;  %s12288_s25 = sld [smem:[#allocation4_spill]]  ;;  %s12264_s22 = smov 96   ;;  %vm901_vm4 = vcmask 220160   ;;  %vm911_vm5 = vcmask 215040   ;;  %vm970_vm6 = vcmask 1042432   ;;  %vm10240_vm7 = vmmov 1  }
  0x17   : > { %s12322_s28 = smov (!%p581_p3, %s7580_s28), 1  ;;  %vm10453_vm3 = vmpackc.low %vm795_vm2, %vm795_vm2  ;;  %s12250_s21 = smov 64   ;;  %vm1923_vm9 = vcmask 130048   ;;  %vm1928_vm10 = vcmask 195584   ;;  %vm2063_vm11 = vcmask 256000   ;;  %vm2497_vm12 = vcmask 124928  }
  0x18   : > { %12287 = sst [smem:[#allocation3_spill]] %s12322_s28  ;;  %s12243_s2 = sshll.u32 %s12322_s28, 5  ;;  %vm10532_vm8 = vmpackc.low %vm970_vm6, %vm10240_vm7  ;;  %vm3810_vm13 = vcmask 523264   ;;  %v8001_v4 = vld [vmem:[%s12239_s16 + $0x5] ss:$0 sm:$0xff] }
  0x19   : > { %s12256_s23 = smov 88   ;;  %s12262_s24 = smov 120   ;;  %vm11236_vm14 = vmpackc.low %vm3810_vm13, %vm3810_vm13 }
  0x1a   : > { %s12254_s29 = smov 80   ;;  %s12260_s30 = smov 112  }
  0x1b   : > { %v621_v0 = vld [vmem:[%s12284_s4] sm:$0xff]  ;;  %v622_v1 = vld [vmem:[%s12284_s4 + $0x8] sm:$0xff]  ;;  %v623_v2 = vld [vmem:[%s12284_s4 + $0x10] sm:$0xff]  ;;  %s12246_s0 = smov 56   ;;  %s12244_s19 = smov 48  }
  0x1c   : > { %v9088_v3 = vpack.c.bf16 %v622_v1, %v621_v0  ;;  %v624_v5 = vld [vmem:[%s12284_s4 + $0x18] sm:$0xff]  ;;  %s10384_s26 = scalar_lea.vmem %s12288_s25, %s12243_s2  ;;  %v625_v7 = vld [vmem:[%s12284_s4 + $0x20] sm:$0xff]  ;;  %v626_v8 = vld [vmem:[%s12284_s4 + $0x28] sm:$0xff]  ;;  %s12291_s25 = sld [smem:[#allocation6_spill]] }
  0x1d   : > { %v9094_v6 = vpack.c.bf16 %v624_v5, %v623_v2  ;;  %v596_v9 = vld [vmem:[%s10384_s26] sm:$0xff]  ;;  %v9100_v10 = vpack.c.bf16 %v626_v8, %v625_v7  ;;  %v627_v11 = vld [vmem:[%s12284_s4 + $0x30] sm:$0xff]  ;;  %v628_v12 = vld [vmem:[%s12284_s4 + $0x38] sm:$0xff]  ;;  %s12258_s1 = smov 104   ;;  %s12252_s20 = smov 72  }
  0x1e   : > { %9090 = vmatprep.subr.msk.bf16.mxu0 %vm10363_vm1, %v9088_v3  ;;  %8436 = vmatprep.mubr.msk.f32.mxu0 %vm640_vm0, %v596_v9  ;;  %v9106_v13 = vpack.c.bf16 %v628_v12, %v627_v11  ;;  %v629_v14 = vld [vmem:[%s12284_s4 + $0x40] sm:$0xff]  ;;  %v630_v15 = vld [vmem:[%s12284_s4 + $0x48] sm:$0xff]  ;;  %v631_v17 = vld [vmem:[%s12284_s4 + $0x50] sm:$0xff]  ;;  %s12248_s2 = smov 40   ;;  %s12295_s3 = sld [smem:[#allocation7_spill]] }
  0x1f   : > { %9093 = vmatpush3.bf16.xpose.msk.msra.mxu0 %vm10363_vm1, %v9088_v3  ;;  %v9112_v16 = vpack.c.bf16 %v630_v15, %v629_v14  ;;  %v632_v18 = vld [vmem:[%s12284_s4 + $0x58] sm:$0xff]  ;;  %v597_v20 = vld [vmem:[%s10384_s26 + $0x8] sm:$0xff]  ;;  %v598_v21 = vld [vmem:[%s10384_s26 + $0x10] sm:$0xff]  ;;  %s12302_s10 = sld [smem:[#allocation9_spill]]  ;;  %s12304_s18 = smov 16  }
  0x20   : > { %9096 = vmatprep.subr.msk.bf16.mxu0 %vm10363_vm1, %v9094_v6  ;;  %v9118_v19 = vpack.c.bf16 %v632_v18, %v631_v17  ;;  %v599_v22 = vld [vmem:[%s10384_s26 + $0x18] sm:$0x7]  ;;  %s12305_s27 = smov 24   ;;  %s12306_s11 = sld [smem:[#allocation10_spill]] }
  0x22   : > { %v10480_v47 = vld [vmem:[%s12291_s25 + $0x8] sm:$0xff]  ;;  %v10485_v49 = vld [vmem:[%s12291_s25] sm:$0xff]  ;;  %v10493_v54 = vld [vmem:[%s12291_s25 + $0x10] sm:$0xff] }
  0x23   : > { %v10498_v55 = vld [vmem:[%s12291_s25 + $0x18] sm:$0x7] }
  0x27   : > { %9099 = vmatpush3.bf16.xpose.msk.msra.mxu0 %vm10363_vm1, %v9094_v6 }
  0x28   : > { %9102 = vmatprep.subr.msk.bf16.mxu0 %vm10363_vm1, %v9100_v10 }
  0x2f   : > { %9105 = vmatpush3.bf16.xpose.msk.msra.mxu0 %vm10363_vm1, %v9100_v10 }
  0x30   : > { %9108 = vmatprep.subr.msk.bf16.mxu0 %vm10363_vm1, %v9106_v13 }
  0x37   : > { %9111 = vmatpush3.bf16.xpose.msk.msra.mxu0 %vm10363_vm1, %v9106_v13 }
  0x38   : > { %9114 = vmatprep.subr.msk.bf16.mxu0 %vm10363_vm1, %v9112_v16 }
  0x3f   : > { %9117 = vmatpush3.bf16.xpose.msk.msra.mxu0 %vm10363_vm1, %v9112_v16 }
  0x40   : > { %9120 = vmatprep.subr.msk.bf16.mxu0 %vm10363_vm1, %v9118_v19 }
  0x47   : > { %9123 = vmatpush3.bf16.xpose.msk.msra.mxu0 %vm10363_vm1, %v9118_v19  ;;  %v7803_v19 = vld [vmem:[%s12229_s6 + $0x30] sm:$0xff] }
  0x4e   : > { %8437 = vmatmul.mubr.msk.f32.vlgmr.msra.gmra.mrb[0].mxu0 %vm640_vm0, %v597_v20 }
  0x4f   : > { %8439 = vmatprep.mubr.msk.f32.mxu0 %vm640_vm0, %v598_v21 }
  0x52   : > { %8440 = vmatmul.mubr.msk.f32.gmra.mrb[2].mxu0 %vm640_vm0, %v599_v22 }
 0x121   : > { %v8438_v24 = vpop.f32.mrb[0].mxu0 }
 0x122   : > { %v761_v25 = vadd.f32 %v8438_v24, %v7591_v23  ;;  %v755_v26 = vpop.f32.mrb[1].mxu0 }
 0x123   : > { %v756_v27 = vadd.f32 %v7591_v23, %v755_v26 }
 0x124   : > { %v10465_v44 = vmul.f32 0.35355338, %v761_v25 }
 0x125   : > { %v10439_v28 = vpack.i.bf16 %v761_v25, %v756_v27  ;;  %v10441_v29 = vmul.f32 0.35355338, %v756_v27  ;;  %v8441_v30 = vpop.f32.mrb[2].mxu0 }
 0x126   : > { %v771_v31 = vadd.f32 %v8441_v30, %v7591_v23  ;;  %v765_v32 = vpop.f32.mrb[3].mxu0 }
 0x127   : > { %9680 = vrot.lane.b32.xlu0 %v10439_v28, %s12264_s22  ;;  %8450 = vmatprep.mubr.msk.f32.mxu1 %vm795_vm2, %v10441_v29  ;;  %v766_v33 = vadd.f32 %v7591_v23, %v765_v32 }
 0x128   : > { %v10473_v46 = vmul.f32 0.35355338, %v771_v31 }
 0x129   : > { %v10447_v34 = vpack.i.bf16 %v771_v31, %v766_v33  ;;  %v10467_v45 = vmul.f32 0.35355338, %v766_v33 }
 0x12b   : > { %9685 = vrot.lane.b32.xlu0 %v10447_v34, %s12264_s22 }
 0x199   : > { %v9681_v35 = vpop.permute.xlu0 %9680 }
 0x19a   : > { %v9683_v36 = vunpack.i.h.bf16 %v9681_v35  ;;  %v9682_v37 = vunpack.i.l.bf16 %v9681_v35 }
 0x19c   : > { %v9124_v39 = vpack.c.bf16 %v9683_v36, %v9682_v37 }
 0x19d   : > { %v9686_v40 = vpop.permute.xlu0 %9685 }
 0x19e   : > { %9126 = vmatprep.subr.msk.bf16.mxu1 %vm10453_vm3, %v9124_v39  ;;  %v9688_v41 = vunpack.i.h.bf16 %v9686_v40  ;;  %v9687_v42 = vunpack.i.l.bf16 %v9686_v40 }
 0x19f   : > { %9129 = vmatpush3.bf16.xpose.msk.msra.mxu1 %vm10453_vm3, %v9124_v39 }
 0x1a0   : > { %v9130_v43 = vpack.c.bf16 %v9688_v41, %v9687_v42 }
 0x1a2   : > { %9132 = vmatprep.subr.msk.bf16.mxu1 %vm10453_vm3, %v9130_v43 }
 0x1a7   : > { %9135 = vmatpush3.bf16.xpose.msk.msra.mxu1 %vm10453_vm3, %v9130_v43 }
 0x1ae   : > { %8451 = vmatmul.mubr.msk.f32.vlgmr.msra.gmra.mrb[0].mxu1 %vm795_vm2, %v10465_v44 }
 0x1af   : > { %8453 = vmatprep.mubr.msk.f32.mxu1 %vm795_vm2, %v10467_v45 }
 0x1b2   : > { %8454 = vmatmul.mubr.msk.f32.gmra.mrb[2].mxu1 %vm795_vm2, %v10473_v46 }
 0x281   : > { %v8452_v48 = vpop.f32.mrb[0].mxu1 }
 0x282   : > { %v888_v50 = vadd.f32 %v8452_v48, %v10480_v47  ;;  %v882_v51 = vpop.f32.mrb[1].mxu1 }
 0x283   : > { %v883_v52 = vadd.f32 %v882_v51, %v10485_v49 }
 0x284   : > { %v905_v53 = vsel %vm901_vm4, %v888_v50, -inf }
 0x285   : > { %906 = vmax.xlane.f32.xlu1 %v905_v53  ;;  %v8455_v56 = vpop.f32.mrb[2].mxu1  ;;  %v902_v60 = vsel %vm901_vm4, %v883_v52, -inf }
 0x286   : > { %v892_v57 = vpop.f32.mrb[3].mxu1  ;;  %v10504_v59 = vadd.f32 %v8455_v56, %v10498_v55 }
 0x287   : > { %v10501_v58 = vadd.f32 %v892_v57, %v10493_v54 }
 0x288   : > { %v912_v62 = vsel %vm911_vm5, %v10504_v59, -inf }
 0x289   : > { %903 = vmax.xlane.f32.xlu1 %v902_v60  ;;  %v908_v61 = vsel %vm901_vm4, %v10501_v58, -inf }
 0x28a   : > { %909 = vmax.xlane.f32.xlu0 %v908_v61 }
 0x28d   : > { %913 = vmax.xlane.f32.xlu1 %v912_v62 }
 0x29e   : > { %9690 = vrot.lane.b32.xlu1 %v10439_v28, %s12250_s21 }
 0x2a0   : > { %9695 = vrot.lane.b32.xlu0 %v10447_v34, %s12250_s21  ;;  %s8026_s21 = sshll.u32 %s12322_s28, 7  ;;  %s12309_s28 = smov 96  }
 0x2a2   : > { %9700 = vrot.lane.b32.xlu1 %v10439_v28, %s12256_s23 }
 0x2a4   : > { %1060 = vrot.lane.b32.xlu0 %v10465_v44, %s12262_s24 }
 0x2a6   : > { %9705 = vrot.lane.b32.xlu1 %v10447_v34, %s12256_s23  ;;  %s12298_s23 = smov 104  }
 0x2a8   : > { %1062 = vrot.lane.b32.xlu0 %v10467_v45, %s12262_s24 }
 0x2aa   : > { %9710 = vrot.lane.b32.xlu1 %v10439_v28, %s12254_s29 }
 0x2ac   : > { %1329 = vrot.lane.b32.xlu0 %v10441_v29, %s12260_s30 }
 0x2b0   : > { %1333 = vrot.lane.b32.xlu0 %v10467_v45, %s12260_s30 }
 0x312   : > { %v907_v63 = vpop.xlane.xlu1 %906 }
 0x313   : > { %v916_v0 = vsub.f32 %v888_v50, %v907_v63 }
 0x315   : > { %v921_v1 = vmul.f32 1.442695, %v916_v0 }
 0x316   : > { %v904_v2 = vpop.xlane.xlu1 %903 }
 0x317   : > { %9909 = vpow2.f32 %v921_v1  ;;  %v915_v3 = vsub.f32 %v883_v52, %v904_v2  ;;  %v910_v5 = vpop.xlane.xlu0 %909 }
 0x318   : > { %v917_v37 = vsub.f32 %v10501_v58, %v910_v5 }
 0x319   : > { %v919_v6 = vmul.f32 1.442695, %v915_v3 }
 0x31a   : > { %v914_v7 = vpop.xlane.xlu1 %913  ;;  %v923_v40 = vmul.f32 1.442695, %v917_v37 }
 0x31b   : > { %9911 = vpow2.f32 %v919_v6  ;;  %v9696_v8 = vpop.permute.xlu0 %9695  ;;  %v918_v36 = vsub.f32 %v10504_v59, %v914_v7 }
 0x31c   : > { %v9698_v10 = vunpack.i.h.bf16 %v9696_v8  ;;  %v9697_v11 = vunpack.i.l.bf16 %v9696_v8 }
 0x31d   : > { %v925_v39 = vmul.f32 1.442695, %v918_v36 }
 0x31e   : > { %v9691_v9 = vpop.permute.xlu1 %9690  ;;  %v9140_v20 = vpack.c.bf16 %v9698_v10, %v9697_v11 }
 0x31f   : > { %v9693_v12 = vunpack.i.h.bf16 %v9691_v9  ;;  %v9692_v13 = vunpack.i.l.bf16 %v9691_v9  ;;  %v10529_v14 = vpop.permute.xlu0 %1060  ;;  %9913 = vpow2.f32 %v925_v39 }
 0x320   : > { %9915 = vpow2.f32 %v923_v40 }
 0x321   : > { %v9910_v15 = vpop.eup %9909  ;;  %v9136_v16 = vpack.c.bf16 %v9693_v12, %v9692_v13 }
 0x322   : > { %v9701_v17 = vpop.permute.xlu1 %9700  ;;  %v930_v18 = vsel %vm901_vm4, %v9910_v15, 0.0 }
 0x323   : > { %v9703_v21 = vunpack.i.h.bf16 %v9701_v17  ;;  %v9702_v22 = vunpack.i.l.bf16 %v9701_v17  ;;  %v10536_v23 = vpop.permute.xlu0 %1062  ;;  %931 = vadd.xlane.f32.xlu1 %v930_v18  ;;  %9137 = vmatprep.subr.bf16.mxu1 %v9136_v16 }
 0x324   : > { %9139 = vmatpush3.bf16.msra.mxu1 %v9136_v16 }
 0x325   : > { %v9912_v24 = vpop.eup %9911  ;;  %9142 = vmatprep.subr.msk.bf16.mxu1 %vm10532_vm8, %v9140_v20  ;;  %v9146_v27 = vpack.c.bf16 %v9703_v21, %v9702_v22 }
 0x326   : > { %v9706_v25 = vpop.permute.xlu1 %9705  ;;  %v927_v26 = vsel %vm901_vm4, %v9912_v24, 0.0 }
 0x327   : > { %v1330_v30 = vpop.permute.xlu0 %1329  ;;  %928 = vadd.xlane.f32.xlu1 %v927_v26  ;;  %v9708_v56 = vunpack.i.h.bf16 %v9706_v25  ;;  %v9707_v57 = vunpack.i.l.bf16 %v9706_v25 }
 0x328   : > { %9145 = vmatpush3.bf16.msk.msra.mxu1 %vm10532_vm8, %v9140_v20  ;;  %8506 = vmatprep.mubr.msk.f32.mxu0 %vm795_vm2, %v1330_v30 }
 0x329   : > { %9148 = vmatprep.subr.msk.bf16.mxu1 %vm10453_vm3, %v9146_v27  ;;  %v9914_v41 = vpop.eup %9913  ;;  %v9152_v60 = vpack.c.bf16 %v9708_v56, %v9707_v57 }
 0x32a   : > { %v9711_v31 = vpop.permute.xlu1 %9710  ;;  %v936_v42 = vsel %vm911_vm5, %v9914_v41, 0.0  ;;  %v9916_v43 = vpop.eup %9915 }
 0x32b   : > { %v9713_v32 = vunpack.i.h.bf16 %v9711_v31  ;;  %v9712_v33 = vunpack.i.l.bf16 %v9711_v31  ;;  %v933_v48 = vsel %vm901_vm4, %v9916_v43, 0.0  ;;  %v1334_v11 = vpop.permute.xlu0 %1333 }
 0x32d   : > { %v9168_v35 = vpack.c.bf16 %v9713_v32, %v9712_v33 }
 0x32f   : > { %9170 = vmatprep.subr.msk.bf16.mxu0 %vm10453_vm3, %v9168_v35 }
 0x330   : > { %9173 = vmatpush3.bf16.xpose.msk.msra.mxu0 %vm10453_vm3, %v9168_v35 }
 0x338   : > { %1058 = vrot.lane.b32.xlu1 %v10441_v29, %s12262_s24 }
 0x35c   : > { %937 = vadd.xlane.f32.xlu1 %v936_v42 }
 0x360   : > { %934 = vadd.xlane.f32.xlu1 %v933_v48 }
 0x371   : > { %9715 = vrot.lane.b32.xlu1 %v10447_v34, %s12254_s29 }
 0x375   : > { %1064 = vrot.lane.b32.xlu1 %v10473_v46, %s12262_s24  ;;  %s12294_s24 = sld [smem:[#allocation5_spill]] }
 0x379   : > { %1331 = vrot.lane.b32.xlu1 %v10465_v44, %s12260_s30 }
 0x37b   : > { %s10889_s29 = scalar_lea.vmem %s12294_s24, %s8026_s21  ;;  %s12297_s21 = smov 112  }
 0x37c   : > { %s12300_s24 = smov 80  }
 0x37d   : > { %1335 = vrot.lane.b32.xlu1 %v10473_v46, %s12260_s30  ;;  %s12301_s30 = smov 72  }
 0x3b0   : > { %v932_v50 = vpop.xlane.xlu1 %931 }
 0x3b1   : > { %9917 = vrcp.f32 %v932_v50 }
 0x3b4   : > { %v929_v51 = vpop.xlane.xlu1 %928 }
 0x3b5   : > { %9919 = vrcp.f32 %v929_v51 }
 0x3b8   : > { %v1059_v61 = vpop.permute.xlu1 %1058 }
 0x3bb   : > { %v9918_v52 = vpop.eup %9917 }
 0x3bc   : > { %v944_v59 = vmul.f32 %v9918_v52, %v9910_v15 }
 0x3bf   : > { %v9920_v53 = vpop.eup %9919 }
 0x3c0   : > { %v943_v58 = vmul.f32 %v9920_v53, %v9912_v24 }
 0x3c2   : > { %8464 = vmatprep.mubr.msk.f32.mxu1 %vm901_vm4, %v943_v58 }
 0x3c3   : > { %8465 = vmatmul.mubr.msk.f32.vlgmr.msra.gmra.mrb[4].mxu1 %vm901_vm4, %v944_v59 }
 0x3c4   : > { %9151 = vmatpush3.bf16.xpose.msk.msra.mxu1 %vm10453_vm3, %v9146_v27 }
 0x3c5   : > { %9154 = vmatprep.subr.msk.bf16.mxu1 %vm10453_vm3, %v9152_v60 }
 0x3cc   : > { %9157 = vmatpush3.bf16.xpose.msk.msra.mxu1 %vm10453_vm3, %v9152_v60 }
 0x3e9   : > { %v938_v62 = vpop.xlane.xlu1 %937 }
 0x3ea   : > { %9921 = vrcp.f32 %v938_v62 }
 0x3ed   : > { %v935_v63 = vpop.xlane.xlu1 %934 }
 0x3ee   : > { %9923 = vrcp.f32 %v935_v63 }
 0x3f1   : > { %v9716_v0 = vpop.permute.xlu1 %9715 }
 0x3f2   : > { %v9718_v1 = vunpack.i.h.bf16 %v9716_v0  ;;  %v9717_v2 = vunpack.i.l.bf16 %v9716_v0 }
 0x3f4   : > { %v9174_v3 = vpack.c.bf16 %v9718_v1, %v9717_v2  ;;  %v9922_v6 = vpop.eup %9921 }
 0x3f5   : > { %v1065_v5 = vpop.permute.xlu1 %1064  ;;  %v946_v9 = vmul.f32 %v9922_v6, %v9914_v41 }
 0x3f6   : > { %9176 = vmatprep.subr.msk.bf16.mxu0 %vm10453_vm3, %v9174_v3 }
 0x3f7   : > { %9179 = vmatpush3.bf16.xpose.msk.msra.mxu0 %vm10453_vm3, %v9174_v3 }
 0x3f8   : > { %v9924_v7 = vpop.eup %9923 }
 0x3f9   : > { %v945_v8 = vmul.f32 %v9924_v7, %v9916_v43  ;;  %v1332_v10 = vpop.permute.xlu1 %1331 }
 0x3fb   : > { %8467 = vmatprep.mubr.msk.f32.mxu1 %vm901_vm4, %v945_v8 }
 0x3fc   : > { %8468 = vmatmul.mubr.msk.f32.gmra.mrb[6].mxu1 %vm901_vm4, %v946_v9 }
 0x3fd   : > { %8478 = vmatprep.mubr.msk.f32.mxu1 %vm795_vm2, %v1059_v61  ;;  %v1336_v12 = vpop.permute.xlu1 %1335 }
 0x3fe   : > { %8507 = vmatmul.mubr.msk.f32.vlgmr.msra.gmra.mrb[4].mxu0 %vm795_vm2, %v1332_v10 }
 0x3ff   : > { %8509 = vmatprep.mubr.msk.f32.mxu0 %vm795_vm2, %v1334_v11 }
 0x400   : > { %8479 = vmatmul.mubr.msk.f32.vlgmr.msra.gmra.mrb[8].mxu1 %vm795_vm2, %v10529_v14 }
 0x401   : > { %8481 = vmatprep.mubr.msk.f32.mxu1 %vm795_vm2, %v10536_v23 }
 0x402   : > { %8510 = vmatmul.mubr.msk.f32.gmra.mrb[6].mxu0 %vm795_vm2, %v1336_v12 }
 0x404   : > { %8482 = vmatmul.mubr.msk.f32.gmra.mrb[10].mxu1 %vm795_vm2, %v1065_v5 }
 0x496   : > { %v10587_v13 = vpop.f32.mrb[4].mxu1 }
 0x497   : > { %v10589_v15 = vpop.f32.mrb[5].mxu1 }
 0x4cf   : > { %v10591_v16 = vpop.f32.mrb[6].mxu1 }
 0x4d0   : > { %v10593_v17 = vpop.f32.mrb[7].mxu1 }
 0x4d1   : > { %v8508_v18 = vpop.f32.mrb[4].mxu0 }
 0x4d2   : > { %v1427_v20 = vpop.f32.mrb[5].mxu0  ;;  %v1433_v41 = vadd.f32 %v8508_v18, %v10480_v47 }
 0x4d3   : > { %v8480_v21 = vpop.f32.mrb[8].mxu1  ;;  %v1428_v25 = vadd.f32 %v1427_v20, %v10485_v49 }
 0x4d4   : > { %v1162_v14 = vadd.f32 %v8480_v21, %v10480_v47  ;;  %v1156_v22 = vpop.f32.mrb[9].mxu1  ;;  %v1449_v48 = vsel %vm901_vm4, %v1433_v41, -inf }
 0x4d5   : > { %v10597_v23 = vadd.f32 %v1156_v22, %v10485_v49  ;;  %v8511_v24 = vpop.f32.mrb[6].mxu0  ;;  %v1446_v36 = vsel %vm901_vm4, %v1428_v25, -inf }
 0x4d6   : > { %v1437_v26 = vpop.f32.mrb[7].mxu0  ;;  %v1178_v27 = vsel %vm901_vm4, %v1162_v14, -inf  ;;  %v1443_v43 = vadd.f32 %v8511_v24, %v10498_v55 }
 0x4d7   : > { %1179 = vmax.xlane.f32.xlu1 %v1178_v27  ;;  %v8483_v30 = vpop.f32.mrb[10].mxu1  ;;  %v1175_v31 = vsel %vm901_vm4, %v10597_v23, -inf  ;;  %v1438_v35 = vadd.f32 %v1437_v26, %v10493_v54 }
 0x4d8   : > { %v1166_v32 = vpop.f32.mrb[11].mxu1  ;;  %1176 = vmax.xlane.f32.xlu0 %v1175_v31  ;;  %v1172_v37 = vadd.f32 %v8483_v30, %v10498_v55  ;;  %v1455_v50 = vsel %vm911_vm5, %v1443_v43, -inf }
 0x4d9   : > { %v10604_v33 = vadd.f32 %v1166_v32, %v10493_v54  ;;  %v1452_v40 = vsel %vm901_vm4, %v1438_v35, -inf }
 0x4da   : > { %v1184_v42 = vsel %vm911_vm5, %v1172_v37, -inf }
 0x4db   : > { %1447 = vmax.xlane.f32.xlu1 %v1446_v36  ;;  %v1181_v39 = vsel %vm901_vm4, %v10604_v33, -inf }
 0x4dc   : > { %1182 = vmax.xlane.f32.xlu0 %v1181_v39 }
 0x4df   : > { %1453 = vmax.xlane.f32.xlu1 %v1452_v40 }
 0x4e0   : > { %1185 = vmax.xlane.f32.xlu0 %v1184_v42 }
 0x4e4   : > { %1450 = vmax.xlane.f32.xlu0 %v1449_v48 }
 0x4e8   : > { %1456 = vmax.xlane.f32.xlu0 %v1455_v50 }
 0x564   : > { %v1180_v51 = vpop.xlane.xlu1 %1179 }
 0x565   : > { %v1177_v52 = vpop.xlane.xlu0 %1176  ;;  %v1188_v9 = vsub.f32 %v1162_v14, %v1180_v51 }
 0x566   : > { %v1187_v30 = vsub.f32 %v10597_v23, %v1177_v52 }
 0x567   : > { %v1193_v11 = vmul.f32 1.442695, %v1188_v9 }
 0x568   : > { %v1448_v53 = vpop.xlane.xlu1 %1447  ;;  %v1191_v31 = vmul.f32 1.442695, %v1187_v30 }
 0x569   : > { %v1458_v56 = vsub.f32 %v1428_v25, %v1448_v53  ;;  %v1183_v57 = vpop.xlane.xlu0 %1182 }
 0x56a   : > { %v1189_v32 = vsub.f32 %v10604_v33, %v1183_v57 }
 0x56b   : > { %v1462_v58 = vmul.f32 1.442695, %v1458_v56 }
 0x56c   : > { %v1454_v3 = vpop.xlane.xlu1 %1453 }
 0x56d   : > { %9925 = vpow2.f32 %v1462_v58  ;;  %v1186_v59 = vpop.xlane.xlu0 %1185  ;;  %v1460_v5 = vsub.f32 %v1438_v35, %v1454_v3  ;;  %v1195_v35 = vmul.f32 1.442695, %v1189_v32 }
 0x56e   : > { %v1190_v12 = vsub.f32 %v1172_v37, %v1186_v59 }
 0x56f   : > { %v1466_v6 = vmul.f32 1.442695, %v1460_v5 }
 0x570   : > { %v1197_v20 = vmul.f32 1.442695, %v1190_v12 }
 0x571   : > { %v1451_v60 = vpop.xlane.xlu0 %1450 }
 0x572   : > { %v1459_v61 = vsub.f32 %v1433_v41, %v1451_v60 }
 0x574   : > { %v1464_v62 = vmul.f32 1.442695, %v1459_v61 }
 0x575   : > { %v1457_v7 = vpop.xlane.xlu0 %1456 }
 0x576   : > { %9927 = vpow2.f32 %v1464_v62  ;;  %v1461_v8 = vsub.f32 %v1443_v43, %v1457_v7 }
 0x577   : > { %v10617_v63 = vpop.eup %9925  ;;  %9929 = vpow2.f32 %v1466_v6 }
 0x578   : > { %v1470_v0 = vsel %vm901_vm4, %v10617_v63, 0.0  ;;  %v1468_v10 = vmul.f32 1.442695, %v1461_v8 }
 0x579   : > { %1471 = vadd.xlane.f32.xlu1 %v1470_v0 }
 0x57a   : > { %9931 = vpow2.f32 %v1468_v10 }
 0x57b   : > { %9933 = vpow2.f32 %v1193_v11 }
 0x57c   : > { %9935 = vpow2.f32 %v1197_v20 }
 0x57d   : > { %9937 = vpow2.f32 %v1191_v31 }
 0x57e   : > { %9939 = vpow2.f32 %v1195_v35 }
 0x580   : > { %v10621_v1 = vpop.eup %9927 }
 0x581   : > { %v1473_v2 = vsel %vm901_vm4, %v10621_v1, 0.0  ;;  %v10629_v18 = vpop.eup %9929 }
 0x582   : > { %1474 = vadd.xlane.f32.xlu0 %v1473_v2  ;;  %v1476_v21 = vsel %vm901_vm4, %v10629_v18, 0.0 }
 0x584   : > { %v10633_v22 = vpop.eup %9931 }
 0x585   : > { %v1479_v24 = vsel %vm911_vm5, %v10633_v22, 0.0  ;;  %v10637_v25 = vpop.eup %9933 }
 0x586   : > { %v1202_v14 = vsel %vm901_vm4, %v10637_v25, 0.0  ;;  %v10641_v26 = vpop.eup %9935 }
 0x587   : > { %v1208_v27 = vsel %vm911_vm5, %v10641_v26, 0.0  ;;  %v9938_v36 = vpop.eup %9937 }
 0x588   : > { %v1199_v37 = vsel %vm901_vm4, %v9938_v36, 0.0  ;;  %v9940_v23 = vpop.eup %9939 }
 0x589   : > { %v1205_v33 = vsel %vm901_vm4, %v9940_v23, 0.0 }
 0x58a   : > { %9720 = vrot.lane.b32.xlu1 %v10439_v28, %s12246_s0 }
 0x598   : > { %9725 = vrot.lane.b32.xlu0 %v10447_v34, %s12246_s0  ;;  %s12268_s0 = smov 16  }
 0x5ae   : > { %1477 = vadd.xlane.f32.xlu1 %v1476_v21 }
 0x5b7   : > { %1480 = vadd.xlane.f32.xlu0 %v1479_v24 }
 0x5bb   : > { %1203 = vadd.xlane.f32.xlu0 %v1202_v14 }
 0x5bf   : > { %9730 = vrot.lane.b32.xlu1 %v10439_v28, %s12244_s19  ;;  %1209 = vadd.xlane.f32.xlu0 %v1208_v27 }
 0x5d5   : > { %9735 = vrot.lane.b32.xlu0 %v10447_v34, %s12244_s19  ;;  %s12270_s19 = smov 8  }
 0x5d9   : > { %1600 = vrot.lane.b32.xlu0 %v10441_v29, %s12258_s1 }
 0x5dd   : > { %1604 = vrot.lane.b32.xlu0 %v10467_v45, %s12258_s1 }
 0x5e3   : > { %1200 = vadd.xlane.f32.xlu1 %v1199_v37 }
 0x5e7   : > { %1206 = vadd.xlane.f32.xlu1 %v1205_v33 }
 0x5f8   : > { %9740 = vrot.lane.b32.xlu1 %v10439_v28, %s12252_s20 }
 0x5fc   : > { %9745 = vrot.lane.b32.xlu1 %v10447_v34, %s12252_s20  ;;  %s12296_s20 = smov 120  }
 0x600   : > { %1602 = vrot.lane.b32.xlu1 %v10465_v44, %s12258_s1 }
 0x604   : > { %1606 = vrot.lane.b32.xlu1 %v10473_v46, %s12258_s1  ;;  %s12314_s1 = sld [smem:[#allocation7_spill]] }
 0x606   : > { %v1472_v29 = vpop.xlane.xlu1 %1471 }
 0x60a   : > { %v9721_v45 = vpop.permute.xlu1 %9720 }
 0x60b   : > { %v9723_v39 = vunpack.i.h.bf16 %v9721_v45  ;;  %v9722_v40 = vunpack.i.l.bf16 %v9721_v45 }
 0x60d   : > { %v9158_v41 = vpack.c.bf16 %v9723_v39, %v9722_v40 }
 0x60f   : > { %9159 = vmatprep.subr.bf16.mxu1 %v9158_v41  ;;  %v1475_v42 = vpop.xlane.xlu0 %1474 }
 0x610   : > { %9161 = vmatpush3.bf16.msra.mxu1 %v9158_v41 }
 0x613   : > { %v9726_v43 = vpop.permute.xlu0 %9725 }
 0x614   : > { %v9728_v48 = vunpack.i.h.bf16 %v9726_v43  ;;  %v9727_v50 = vunpack.i.l.bf16 %v9726_v43 }
 0x616   : > { %v9162_v51 = vpack.c.bf16 %v9728_v48, %v9727_v50 }
 0x618   : > { %9164 = vmatprep.subr.msk.bf16.mxu1 %vm10532_vm8, %v9162_v51 }
 0x619   : > { %9167 = vmatpush3.bf16.msk.msra.mxu1 %vm10532_vm8, %v9162_v51 }
 0x63b   : > { %v1478_v44 = vpop.xlane.xlu1 %1477 }
 0x63f   : > { %v9731_v46 = vpop.permute.xlu1 %9730 }
 0x640   : > { %v9733_v52 = vunpack.i.h.bf16 %v9731_v46  ;;  %v9732_v53 = vunpack.i.l.bf16 %v9731_v46 }
 0x642   : > { %v9180_v56 = vpack.c.bf16 %v9733_v52, %v9732_v53 }
 0x644   : > { %9181 = vmatprep.subr.bf16.mxu1 %v9180_v56  ;;  %v1481_v57 = vpop.xlane.xlu0 %1480 }
 0x648   : > { %v1204_v58 = vpop.xlane.xlu0 %1203 }
 0x649   : > { %9941 = vrcp.f32 %v1204_v58 }
 0x64c   : > { %v1210_v60 = vpop.xlane.xlu0 %1209 }
 0x650   : > { %v9736_v62 = vpop.permute.xlu0 %9735 }
 0x651   : > { %v9738_v3 = vunpack.i.h.bf16 %v9736_v62  ;;  %v9737_v5 = vunpack.i.l.bf16 %v9736_v62 }
 0x653   : > { %v9942_v0 = vpop.eup %9941  ;;  %v9184_v12 = vpack.c.bf16 %v9738_v3, %v9737_v5 }
 0x654   : > { %v1216_v9 = vmul.f32 %v9942_v0, %v10637_v25  ;;  %v1601_v33 = vpop.permute.xlu0 %1600 }
 0x670   : > { %v1201_v59 = vpop.xlane.xlu1 %1200 }
 0x671   : > { %9943 = vrcp.f32 %v1201_v59 }
 0x672   : > { %9945 = vrcp.f32 %v1472_v29 }
 0x673   : > { %9947 = vrcp.f32 %v1210_v60 }
 0x674   : > { %v1207_v61 = vpop.xlane.xlu1 %1206 }
 0x675   : > { %9949 = vrcp.f32 %v1207_v61 }
 0x676   : > { %9951 = vrcp.f32 %v1475_v42 }
 0x677   : > { %9953 = vrcp.f32 %v1478_v44 }
 0x678   : > { %9955 = vrcp.f32 %v1481_v57  ;;  %v9741_v6 = vpop.permute.xlu1 %9740 }
 0x679   : > { %v9743_v20 = vunpack.i.h.bf16 %v9741_v6  ;;  %v9742_v21 = vunpack.i.l.bf16 %v9741_v6 }
 0x67b   : > { %v9944_v2 = vpop.eup %9943  ;;  %v9190_v31 = vpack.c.bf16 %v9743_v20, %v9742_v21 }
 0x67c   : > { %v1215_v7 = vmul.f32 %v9944_v2, %v9938_v36  ;;  %v9946_v8 = vpop.eup %9945  ;;  %v9746_v35 = vpop.permute.xlu1 %9745 }
 0x67d   : > { %v9948_v10 = vpop.eup %9947  ;;  %v1486_v25 = vmul.f32 %v9946_v8, %v10617_v63  ;;  %v9748_v63 = vunpack.i.h.bf16 %v9746_v35  ;;  %v9747_v37 = vunpack.i.l.bf16 %v9746_v35 }
 0x67e   : > { %8492 = vmatprep.mubr.msk.f32.mxu1 %vm901_vm4, %v1215_v7  ;;  %v1218_v14 = vmul.f32 %v9948_v10, %v10641_v26 }
 0x67f   : > { %v9950_v11 = vpop.eup %9949  ;;  %8493 = vmatmul.mubr.msk.f32.vlgmr.msra.gmra.mrb[12].mxu1 %vm901_vm4, %v1216_v9  ;;  %v9196_v29 = vpack.c.bf16 %v9748_v63, %v9747_v37 }
 0x680   : > { %9183 = vmatpush3.bf16.msra.mxu1 %v9180_v56  ;;  %v1217_v24 = vmul.f32 %v9950_v11, %v9940_v23  ;;  %v9952_v27 = vpop.eup %9951 }
 0x681   : > { %9186 = vmatprep.subr.msk.bf16.mxu1 %vm10532_vm8, %v9184_v12  ;;  %v9954_v30 = vpop.eup %9953  ;;  %v1487_v32 = vmul.f32 %v9952_v27, %v10621_v1  ;;  %v1603_v1 = vpop.permute.xlu1 %1602 }
 0x682   : > { %8495 = vmatprep.mubr.msk.f32.mxu1 %vm901_vm4, %v1217_v24  ;;  %v9956_v26 = vpop.eup %9955  ;;  %v1488_v36 = vmul.f32 %v9954_v30, %v10629_v18  ;;  %v1605_v18 = vpop.permute.xlu0 %1604 }
 0x683   : > { %8496 = vmatmul.mubr.msk.f32.gmra.mrb[14].mxu1 %vm901_vm4, %v1218_v14  ;;  %v1489_v23 = vmul.f32 %v9956_v26, %v10633_v22 }
 0x684   : > { %9189 = vmatpush3.bf16.msk.msra.mxu1 %vm10532_vm8, %v9184_v12  ;;  %8520 = vmatprep.mubr.msk.f32.mxu1 %vm901_vm4, %v1486_v25 }
 0x685   : > { %9192 = vmatprep.subr.msk.bf16.mxu1 %vm10453_vm3, %v9190_v31  ;;  %v1607_v22 = vpop.permute.xlu1 %1606 }
 0x687   : > { %8521 = vmatmul.mubr.msk.f32.vlgmr.msra.gmra.mrb[16].mxu1 %vm901_vm4, %v1487_v32 }
 0x688   : > { %8523 = vmatprep.mubr.msk.f32.mxu1 %vm901_vm4, %v1488_v36 }
 0x68b   : > { %8524 = vmatmul.mubr.msk.f32.gmra.mrb[18].mxu1 %vm901_vm4, %v1489_v23 }
 0x68c   : > { %8534 = vmatprep.mubr.msk.f32.mxu1 %vm795_vm2, %v1601_v33 }
 0x68d   : > { %9195 = vmatpush3.bf16.xpose.msk.msra.mxu1 %vm10453_vm3, %v9190_v31 }
 0x68e   : > { %9198 = vmatprep.subr.msk.bf16.mxu1 %vm10453_vm3, %v9196_v29 }
 0x695   : > { %9201 = vmatpush3.bf16.xpose.msk.msra.mxu1 %vm10453_vm3, %v9196_v29 }
 0x69c   : > { %8535 = vmatmul.mubr.msk.f32.vlgmr.msra.gmra.mrb[20].mxu1 %vm795_vm2, %v1603_v1 }
 0x69d   : > { %8537 = vmatprep.mubr.msk.f32.mxu1 %vm795_vm2, %v1605_v18 }
 0x6a0   : > { %8538 = vmatmul.mubr.msk.f32.gmra.mrb[22].mxu1 %vm795_vm2, %v1607_v22 }
 0x752   : > { %v8494_v45 = vpop.f32.mrb[12].mxu1 }
 0x753   : > { %v1310_v39 = vpop.f32.mrb[13].mxu1 }
 0x756   : > { %v10699_v40 = vpop.f32.mrb[14].mxu1 }
 0x757   : > { %v10701_v41 = vpop.f32.mrb[15].mxu1 }
 0x75a   : > { %v8522_v42 = vpop.f32.mrb[16].mxu1 }
 0x75b   : > { %v1581_v43 = vpop.f32.mrb[17].mxu1 }
 0x75e   : > { %v10703_v48 = vpop.f32.mrb[18].mxu1 }
 0x75f   : > { %v10705_v50 = vpop.f32.mrb[19].mxu1 }
 0x76f   : > { %v8536_v51 = vpop.f32.mrb[20].mxu1 }
 0x770   : > { %v1704_v44 = vadd.f32 %v8536_v51, %v10480_v47  ;;  %v1698_v46 = vpop.f32.mrb[21].mxu1  ;;  %v779_v51 = vld [vmem:[%s12229_s6 + $0x8] sm:$0xff] }
 0x771   : > { %v1699_v52 = vadd.f32 %v1698_v46, %v10485_v49 }
 0x772   : > { %v1720_v53 = vsel %vm901_vm4, %v1704_v44, -inf }
 0x773   : > { %1721 = vmax.xlane.f32.xlu1 %v1720_v53  ;;  %v8539_v56 = vpop.f32.mrb[22].mxu1  ;;  %v1717_v57 = vsel %vm901_vm4, %v1699_v52, -inf }
 0x774   : > { %v1708_v58 = vpop.f32.mrb[23].mxu1  ;;  %1718 = vmax.xlane.f32.xlu0 %v1717_v57  ;;  %v1714_v60 = vadd.f32 %v8539_v56, %v10498_v55 }
 0x775   : > { %v1709_v59 = vadd.f32 %v1708_v58, %v10493_v54 }
 0x776   : > { %v1726_v47 = vsel %vm911_vm5, %v1714_v60, -inf }
 0x777   : > { %v1723_v61 = vsel %vm901_vm4, %v1709_v59, -inf }
 0x778   : > { %1724 = vmax.xlane.f32.xlu0 %v1723_v61 }
 0x77c   : > { %1727 = vmax.xlane.f32.xlu0 %v1726_v47 }
 0x800   : > { %v1722_v62 = vpop.xlane.xlu1 %1721 }
 0x801   : > { %v1730_v49 = vsub.f32 %v1704_v44, %v1722_v62  ;;  %v1719_v0 = vpop.xlane.xlu0 %1718  ;;  %v780_v44 = vld [vmem:[%s12229_s6 + $0x10] sm:$0xff] }
 0x802   : > { %v1729_v2 = vsub.f32 %v1699_v52, %v1719_v0  ;;  %v781_v52 = vld [vmem:[%s12229_s6 + $0x18] sm:$0xff] }
 0x803   : > { %v1735_v3 = vmul.f32 1.442695, %v1730_v49  ;;  %v9218_v53 = vpack.c.bf16 %v781_v52, %v780_v44  ;;  %v2128_v52 = vld [vmem:[%s12231_s8] sm:$0xff] }
 0x804   : > { %v1733_v5 = vmul.f32 1.442695, %v1729_v2 }
 0x805   : > { %9957 = vpow2.f32 %v1735_v3  ;;  %v1725_v8 = vpop.xlane.xlu0 %1724 }
 0x806   : > { %9959 = vpow2.f32 %v1733_v5  ;;  %v1731_v11 = vsub.f32 %v1709_v59, %v1725_v8 }
 0x808   : > { %v1737_v20 = vmul.f32 1.442695, %v1731_v11 }
 0x809   : > { %v1728_v9 = vpop.xlane.xlu0 %1727 }
 0x80a   : > { %v1732_v10 = vsub.f32 %v1714_v60, %v1728_v9 }
 0x80c   : > { %v1739_v12 = vmul.f32 1.442695, %v1732_v10 }
 0x80e   : > { %9961 = vpow2.f32 %v1739_v12 }
 0x80f   : > { %v9958_v6 = vpop.eup %9957  ;;  %9963 = vpow2.f32 %v1737_v20 }
 0x810   : > { %v9960_v7 = vpop.eup %9959  ;;  %v1744_v54 = vsel %vm901_vm4, %v9958_v6, 0.0 }
 0x811   : > { %1745 = vadd.xlane.f32.xlu0 %v1744_v54  ;;  %v1741_v55 = vsel %vm901_vm4, %v9960_v7, 0.0 }
 0x812   : > { %1742 = vadd.xlane.f32.xlu1 %v1741_v55 }
 0x818   : > { %v9962_v21 = vpop.eup %9961 }
 0x819   : > { %v9964_v24 = vpop.eup %9963  ;;  %v1750_v14 = vsel %vm911_vm5, %v9962_v21, 0.0 }
 0x81a   : > { %v1747_v27 = vsel %vm901_vm4, %v9964_v24, 0.0 }
 0x823   : > { %9750 = vrot.lane.b32.xlu1 %v10439_v28, %s12248_s2 }
 0x827   : > { %9755 = vrot.lane.b32.xlu0 %v10447_v34, %s12248_s2  ;;  %s12266_s2 = smov 24  }
 0x846   : > { %1751 = vadd.xlane.f32.xlu0 %v1750_v14  ;;  %v10213_v14 = vld [vmem:[%s10384_s26 + $0x8] sm:$0xff] }
 0x847   : > { %1748 = vadd.xlane.f32.xlu1 %v1747_v27 }
 0x858   : > { %1875 = vrot.lane.b32.xlu1 %v1310_v39, %s12270_s19 }
 0x85c   : > { %1891 = vrot.lane.b32.xlu1 %v1581_v43, %s12268_s0  ;;  %1877 = vrot.lane.b32.xlu0 %v8494_v45, %s12270_s19  ;;  %v778_v43 = vld [vmem:[%s12229_s6] sm:$0xff] }
 0x85d   : > { %v9212_v46 = vpack.c.bf16 %v779_v51, %v778_v43 }
 0x860   : > { %1893 = vrot.lane.b32.xlu1 %v8522_v42, %s12268_s0 }
 0x89e   : > { %v1746_v28 = vpop.xlane.xlu0 %1745 }
 0x89f   : > { %v1743_v34 = vpop.xlane.xlu1 %1742 }
 0x8a0   : > { %9965 = vrcp.f32 %v1743_v34 }
 0x8a1   : > { %9967 = vrcp.f32 %v1746_v28  ;;  %v10214_v28 = vld [vmem:[%s10384_s26] sm:$0xff] }
 0x8a2   : > { %v9756_v25 = vpop.permute.xlu0 %9755 }
 0x8a3   : > { %v9751_v30 = vpop.permute.xlu1 %9750  ;;  %v9758_v31 = vunpack.i.h.bf16 %v9756_v25  ;;  %v9757_v32 = vunpack.i.l.bf16 %v9756_v25 }
 0x8a4   : > { %v9753_v35 = vunpack.i.h.bf16 %v9751_v30  ;;  %v9752_v26 = vunpack.i.l.bf16 %v9751_v30 }
 0x8a5   : > { %v9206_v63 = vpack.c.bf16 %v9758_v31, %v9757_v32 }
 0x8a6   : > { %v9202_v36 = vpack.c.bf16 %v9753_v35, %v9752_v26 }
 0x8a8   : > { %9203 = vmatprep.subr.bf16.mxu0 %v9202_v36 }
 0x8a9   : > { %9205 = vmatpush3.bf16.msra.mxu0 %v9202_v36  ;;  %v10215_v36 = vld [vmem:[%s10384_s26 + $0x10] sm:$0xff] }
 0x8aa   : > { %v9966_v37 = vpop.eup %9965  ;;  %9208 = vmatprep.subr.msk.bf16.mxu0 %vm10532_vm8, %v9206_v63 }
 0x8ab   : > { %v9968_v23 = vpop.eup %9967  ;;  %v1757_v33 = vmul.f32 %v9966_v37, %v9960_v7 }
 0x8ac   : > { %v1758_v29 = vmul.f32 %v9968_v23, %v9958_v6  ;;  %v10216_v23 = vld [vmem:[%s10384_s26 + $0x18] sm:$0x7]  ;;  %s12299_s26 = smov 88  }
 0x8ad   : > { %9211 = vmatpush3.bf16.msk.msra.mxu0 %vm10532_vm8, %v9206_v63  ;;  %8548 = vmatprep.mubr.msk.f32.mxu0 %vm901_vm4, %v1757_v33 }
 0x8ae   : > { %9214 = vmatprep.subr.msk.bf16.mxu0 %vm10363_vm1, %v9212_v46 }
 0x8b0   : > { %8549 = vmatmul.mubr.msk.f32.vlgmr.msra.gmra.mrb[8].mxu0 %vm901_vm4, %v1758_v29 }
 0x8b6   : > { %9217 = vmatpush3.bf16.xpose.msk.msra.mxu0 %vm10363_vm1, %v9212_v46 }
 0x8b7   : > { %9220 = vmatprep.subr.msk.bf16.mxu0 %vm10363_vm1, %v9218_v53 }
 0x8be   : > { %9223 = vmatpush3.bf16.xpose.msk.msra.mxu0 %vm10363_vm1, %v9218_v53  ;;  %v2129_v53 = vld [vmem:[%s12231_s8 + $0x8] sm:$0xff] }
 0x8d3   : > { %v1752_v1 = vpop.xlane.xlu0 %1751 }
 0x8d4   : > { %9969 = vrcp.f32 %v1752_v1  ;;  %v1749_v18 = vpop.xlane.xlu1 %1748 }
 0x8d5   : > { %9971 = vrcp.f32 %v1749_v18 }
 0x8d7   : > { %v1878_v62 = vpop.permute.xlu0 %1877 }
 0x8d8   : > { %v1876_v60 = vpop.permute.xlu1 %1875 }
 0x8dc   : > { %v1892_v61 = vpop.permute.xlu1 %1891 }
 0x8de   : > { %v9970_v22 = vpop.eup %9969 }
 0x8df   : > { %v9972_v45 = vpop.eup %9971  ;;  %v1760_v42 = vmul.f32 %v9970_v22, %v9962_v21 }
 0x8e0   : > { %v1759_v39 = vmul.f32 %v9972_v45, %v9964_v24  ;;  %v1894_v47 = vpop.permute.xlu1 %1893 }
 0x8e2   : > { %8551 = vmatprep.mubr.msk.f32.mxu0 %vm901_vm4, %v1759_v39 }
 0x8e3   : > { %8552 = vmatmul.mubr.msk.f32.gmra.mrb[10].mxu0 %vm901_vm4, %v1760_v42 }
 0x983   : > { %v8550_v56 = vpop.f32.mrb[8].mxu0 }
 0x984   : > { %1909 = vrot.lane.b32.xlu1 %v8550_v56, %s12266_s2  ;;  %v1852_v57 = vpop.f32.mrb[9].mxu0  ;;  %v9224_v56 = vpack.c.bf16 %v2129_v53, %v2128_v52 }
 0x985   : > { %1907 = vrot.lane.b32.xlu0 %v1852_v57, %s12266_s2  ;;  %v2130_v57 = vld [vmem:[%s12231_s8 + $0x10] sm:$0xff] }
 0x986   : > { %9226 = vmatprep.subr.msk.bf16.mxu1 %vm10363_vm1, %v9224_v56 }
 0x987   : > { %9229 = vmatpush3.bf16.xpose.msk.msra.mxu1 %vm10363_vm1, %v9224_v56 }
 0x988   : > { %1881 = vrot.lane.b32.xlu1 %v10699_v40, %s12270_s19  ;;  %v1919_v40 = vsel %vm795_vm2, %v10589_v15, %v1876_v60  ;;  %v2252_v60 = vld [vmem:[%s12231_s8 + $0x20] sm:$0xff] }
 0x989   : > { %1879 = vrot.lane.b32.xlu0 %v10701_v41, %s12270_s19  ;;  %s12313_s19 = smov 40  }
 0x98c   : > { %1897 = vrot.lane.b32.xlu1 %v10703_v48, %s12268_s0  ;;  %v1920_v48 = vsel %vm795_vm2, %v10587_v13, %v1878_v62 }
 0x98d   : > { %1895 = vrot.lane.b32.xlu0 %v10705_v50, %s12268_s0  ;;  %v1924_v50 = vsel %vm1923_vm9, %v1919_v40, %v1892_v61  ;;  %v1925_v0 = vsel %vm1923_vm9, %v1920_v48, %v1894_v47  ;;  %v2253_v61 = vld [vmem:[%s12231_s8 + $0x28] sm:$0xff] }
 0x98e   : > { %v9236_v47 = vpack.c.bf16 %v2253_v61, %v2252_v60 }
 0x9b6   : > { %v8553_v58 = vpop.f32.mrb[10].mxu0 }
 0x9b7   : > { %1913 = vrot.lane.b32.xlu1 %v8553_v58, %s12266_s2  ;;  %v1862_v59 = vpop.f32.mrb[11].mxu0  ;;  %v2131_v58 = vld [vmem:[%s12231_s8 + $0x18] sm:$0xff] }
 0x9b8   : > { %1911 = vrot.lane.b32.xlu0 %v1862_v59, %s12266_s2  ;;  %v9230_v59 = vpack.c.bf16 %v2131_v58, %v2130_v57 }
 0x9ba   : > { %9232 = vmatprep.subr.msk.bf16.mxu1 %vm10363_vm1, %v9230_v59 }
 0x9bb   : > { %9235 = vmatpush3.bf16.xpose.msk.msra.mxu1 %vm10363_vm1, %v9230_v59 }
 0x9bc   : > { %9238 = vmatprep.subr.msk.bf16.mxu1 %vm10363_vm1, %v9236_v47 }
 0x9f6   : > { %v1910_v41 = vpop.permute.xlu1 %1909 }
 0x9f7   : > { %v1908_v49 = vpop.permute.xlu0 %1907  ;;  %v1930_v3 = vsel %vm1928_vm10, %v1925_v0, %v1910_v41 }
 0x9f8   : > { %v1929_v2 = vsel %vm1928_vm10, %v1924_v50, %v1908_v49 }
 0x9f9   : > { %8562 = vmatprep.mubr.msk.f32.mxu0 %vm640_vm0, %v1929_v2 }
 0x9fa   : > { %8563 = vmatmul.mubr.msk.f32.vlgmr.msra.gmra.mrb[12].mxu0 %vm640_vm0, %v1930_v3  ;;  %v1882_v5 = vpop.permute.xlu1 %1881 }
 0x9fb   : > { %v1880_v6 = vpop.permute.xlu0 %1879  ;;  %v1922_v55 = vsel %vm795_vm2, %v10591_v16, %v1882_v5 }
 0x9fc   : > { %v1921_v13 = vsel %vm795_vm2, %v10593_v17, %v1880_v6  ;;  %v7660_v17 = vld [vmem:[%s12230_s7] ss:$0 sm:$0xff] }
 0x9fd   : > { %v10833_v6 = vld [vmem:[%s12232_s9] ss:$0 sm:$0xff] }
 0x9fe   : > { %v1898_v15 = vpop.permute.xlu1 %1897 }
 0x9ff   : > { %v1896_v7 = vpop.permute.xlu0 %1895  ;;  %v1927_v10 = vsel %vm1923_vm9, %v1922_v55, %v1898_v15 }
 0xa00   : > { %v1926_v8 = vsel %vm1923_vm9, %v1921_v13, %v1896_v7 }
 0xa29   : > { %v1914_v54 = vpop.permute.xlu1 %1913 }
 0xa2a   : > { %v1912_v9 = vpop.permute.xlu0 %1911  ;;  %v1932_v12 = vsel %vm1928_vm10, %v1927_v10, %v1914_v54  ;;  %v7669_v10 = vld [vmem:[%s12239_s16] ss:$0 sm:$0xff] }
 0xa2b   : > { %v1931_v11 = vsel %vm1928_vm10, %v1926_v8, %v1912_v9 }
 0xa2c   : > { %8565 = vmatprep.mubr.msk.f32.mxu0 %vm640_vm0, %v1931_v11 }
 0xa2d   : > { %8566 = vmatmul.mubr.msk.f32.gmra.mrb[14].mxu0 %vm640_vm0, %v1932_v12 }
 0xacd   : > { %v8564_v20 = vpop.f32.mrb[12].mxu0 }
 0xace   : > { %v2035_v16 = vadd.f32 %v8564_v20, %v7660_v17  ;;  %v2029_v21 = vpop.f32.mrb[13].mxu0  ;;  %v7670_v20 = vld [vmem:[%s12240_s17] ss:$0 sm:$0xff] }
 0xacf   : > { %v2030_v24 = vadd.f32 %v7660_v17, %v2029_v21 }
 0xad0   : > { %v2049_v27 = vadd.f32 %v10213_v14, %v2035_v16  ;;  %v2255_v14 = vld [vmem:[%s12231_s8 + $0x38] sm:$0xff] }
 0xad1   : > { %v2048_v34 = vadd.f32 %v10214_v28, %v2030_v24  ;;  %v2254_v24 = vld [vmem:[%s12231_s8 + $0x30] sm:$0xff] }
 0xad2   : > { %v2057_v25 = vsel %vm640_vm0, %v2049_v27, 0.0 }
 0xad3   : > { %2058 = vadd.xlane.f32.xlu1 %v2057_v25  ;;  %v2054_v30 = vsel %vm640_vm0, %v2048_v34, 0.0  ;;  %v2256_v25 = vld [vmem:[%s12231_s8 + $0x40] sm:$0xff] }
 0xad4   : > { %2055 = vadd.xlane.f32.xlu0 %v2054_v30  ;;  %v2257_v30 = vld [vmem:[%s12231_s8 + $0x48] sm:$0xff] }
 0xb00   : > { %v8567_v31 = vpop.f32.mrb[14].mxu0 }
 0xb01   : > { %v2039_v32 = vpop.f32.mrb[15].mxu0  ;;  %v2045_v35 = vadd.f32 %v8567_v31, %v7660_v17  ;;  %v9248_v31 = vpack.c.bf16 %v2257_v30, %v2256_v25 }
 0xb02   : > { %v2040_v26 = vadd.f32 %v7660_v17, %v2039_v32  ;;  %v2258_v32 = vld [vmem:[%s12231_s8 + $0x50] sm:$0xff] }
 0xb03   : > { %v2051_v33 = vadd.f32 %v10216_v23, %v2045_v35  ;;  %v2259_v35 = vld [vmem:[%s12231_s8 + $0x58] sm:$0xff] }
 0xb04   : > { %v2050_v63 = vadd.f32 %v10215_v36, %v2040_v26  ;;  %v9254_v26 = vpack.c.bf16 %v2259_v35, %v2258_v32 }
 0xb05   : > { %v2064_v29 = vsel %vm2063_vm11, %v2051_v33, 0.0 }
 0xb06   : > { %v2060_v37 = vsel %vm640_vm0, %v2050_v63, 0.0 }
 0xb07   : > { %2061 = vadd.xlane.f32.xlu0 %v2060_v37 }
 0xb0b   : > { %2065 = vadd.xlane.f32.xlu0 %v2064_v29 }
 0xb60   : > { %v2059_v1 = vpop.xlane.xlu1 %2058 }
 0xb61   : > { %v2069_v18 = vmul.f32 0.03125, %v2059_v1  ;;  %v2056_v22 = vpop.xlane.xlu0 %2055 }
 0xb62   : > { %v2068_v45 = vmul.f32 0.03125, %v2056_v22 }
 0xb63   : > { %v2073_v39 = vsub.f32 %v2049_v27, %v2069_v18 }
 0xb64   : > { %v2072_v42 = vsub.f32 %v2048_v34, %v2068_v45  ;;  %v9242_v34 = vpack.c.bf16 %v2255_v14, %v2254_v24 }
 0xb65   : > { %v2077_v43 = vmul.f32 %v2073_v39, %v2073_v39 }
 0xb66   : > { %v2076_v51 = vmul.f32 %v2072_v42, %v2072_v42 }
 0xb67   : > { %v2083_v44 = vsel %vm640_vm0, %v2077_v43, 0.0 }
 0xb68   : > { %2084 = vadd.xlane.f32.xlu0 %v2083_v44  ;;  %v2080_v46 = vsel %vm640_vm0, %v2076_v51, 0.0  ;;  %v600_v44 = vld [vmem:[%s10889_s29] sm:$0xff] }
 0xb69   : > { %2081 = vadd.xlane.f32.xlu1 %v2080_v46  ;;  %v601_v46 = vld [vmem:[%s10889_s29 + $0x8] sm:$0xff] }
 0xb94   : > { %v2062_v62 = vpop.xlane.xlu0 %2061 }
 0xb95   : > { %v2070_v40 = vmul.f32 0.03125, %v2062_v62 }
 0xb97   : > { %v2074_v41 = vsub.f32 %v2050_v63, %v2070_v40 }
 0xb98   : > { %v2066_v48 = vpop.xlane.xlu0 %2065 }
 0xb99   : > { %v2071_v50 = vmul.f32 0.03125, %v2066_v48  ;;  %v2078_v49 = vmul.f32 %v2074_v41, %v2074_v41 }
 0xb9b   : > { %v2075_v0 = vsub.f32 %v2051_v33, %v2071_v50  ;;  %v2086_v2 = vsel %vm640_vm0, %v2078_v49, 0.0 }
 0xb9c   : > { %2087 = vadd.xlane.f32.xlu1 %v2086_v2 }
 0xb9d   : > { %v2079_v3 = vmul.f32 %v2075_v0, %v2075_v0 }
 0xb9f   : > { %v2089_v5 = vsel %vm2063_vm11, %v2079_v3, 0.0 }
 0xba0   : > { %2090 = vadd.xlane.f32.xlu0 %v2089_v5 }
 0xbad   : > { %2266 = vrot.lane.b32.xlu1 %v10833_v6, %s12264_s22 }
 0xbf5   : > { %v2085_v15 = vpop.xlane.xlu0 %2084 }
 0xbf6   : > { %v2093_v7 = vmul.f32 0.03125, %v2085_v15  ;;  %v2082_v13 = vpop.xlane.xlu1 %2081 }
 0xbf7   : > { %v2092_v54 = vmul.f32 0.03125, %v2082_v13 }
 0xbf8   : > { %v2097_v55 = vadd.f32 1e-05, %v2093_v7 }
 0xbf9   : > { %v2096_v8 = vadd.f32 1e-05, %v2092_v54 }
 0xbfa   : > { %9973 = vrsqrt.f32 %v2097_v55 }
 0xbfb   : > { %9975 = vrsqrt.f32 %v2096_v8 }
 0xc04   : > { %v9974_v9 = vpop.eup %9973 }
 0xc05   : > { %v9976_v11 = vpop.eup %9975  ;;  %v2105_v12 = vmul.f32 %v9974_v9, %v2073_v39 }
 0xc06   : > { %v2104_v17 = vmul.f32 %v9976_v11, %v2072_v42 }
 0xc07   : > { %v2115_v16 = vmul.f32 %v7669_v10, %v2105_v12 }
 0xc08   : > { %v2114_v21 = vmul.f32 %v7669_v10, %v2104_v17 }
 0xc09   : > { %v10851_v28 = vadd.f32 %v7670_v20, %v2115_v16 }
 0xc0a   : > { %v10849_v27 = vadd.f32 %v7670_v20, %v2114_v21 }
 0xc0c   : > { %8576 = vmatprep.mubr.msk.f32.mxu1 %vm640_vm0, %v10849_v27 }
 0xc0d   : > { %8577 = vmatmul.mubr.msk.f32.vlgmr.msra.gmra.mrb[24].mxu1 %vm640_vm0, %v10851_v28 }
 0xc0e   : > { %9241 = vmatpush3.bf16.xpose.msk.msra.mxu1 %vm10363_vm1, %v9236_v47 }
 0xc0f   : > { %9244 = vmatprep.subr.msk.bf16.mxu1 %vm10363_vm1, %v9242_v34 }
 0xc16   : > { %9247 = vmatpush3.bf16.xpose.msk.msra.mxu1 %vm10363_vm1, %v9242_v34 }
 0xc17   : > { %9250 = vmatprep.subr.msk.bf16.mxu1 %vm10363_vm1, %v9248_v31 }
 0xc1e   : > { %9253 = vmatpush3.bf16.xpose.msk.msra.mxu1 %vm10363_vm1, %v9248_v31 }
 0xc1f   : > { %9256 = vmatprep.subr.msk.bf16.mxu1 %vm10363_vm1, %v9254_v26 }
 0xc26   : > { %9259 = vmatpush3.bf16.xpose.msk.msra.mxu1 %vm10363_vm1, %v9254_v26 }
 0xc29   : > { %v2088_v36 = vpop.xlane.xlu1 %2087 }
 0xc2a   : > { %v2094_v63 = vmul.f32 0.03125, %v2088_v36 }
 0xc2c   : > { %v2098_v37 = vadd.f32 1e-05, %v2094_v63 }
 0xc2d   : > { %v2091_v23 = vpop.xlane.xlu0 %2090  ;;  %v2267_v60 = vpop.permute.xlu1 %2266 }
 0xc2e   : > { %9977 = vrsqrt.f32 %v2098_v37  ;;  %v2095_v33 = vmul.f32 0.03125, %v2091_v23 }
 0xc30   : > { %v2099_v29 = vadd.f32 1e-05, %v2095_v33 }
 0xc32   : > { %9979 = vrsqrt.f32 %v2099_v29 }
 0xc38   : > { %v9978_v1 = vpop.eup %9977 }
 0xc39   : > { %v2106_v18 = vmul.f32 %v9978_v1, %v2074_v41 }
 0xc3b   : > { %v2116_v22 = vmul.f32 %v7669_v10, %v2106_v18 }
 0xc3c   : > { %v9980_v45 = vpop.eup %9979 }
 0xc3d   : > { %v10884_v39 = vadd.f32 %v7670_v20, %v2116_v22  ;;  %v2107_v42 = vmul.f32 %v9980_v45, %v2075_v0 }
 0xc3f   : > { %8579 = vmatprep.mubr.msk.f32.mxu1 %vm640_vm0, %v10884_v39  ;;  %v2117_v43 = vmul.f32 %v7669_v10, %v2107_v42 }
 0xc41   : > { %v10893_v51 = vadd.f32 %v7670_v20, %v2117_v43 }
 0xc43   : > { %8580 = vmatmul.mubr.msk.f32.gmra.mrb[26].mxu1 %vm640_vm0, %v10893_v51 }
 0xc44   : > { %8598 = vmatprep.mubr.msk.f32.mxu1 %vm640_vm0, %v600_v44 }
 0xc47   : > { %8599 = vmatmul.mubr.msk.f32.vlgmr.msra.gmra.mrb[28].mxu1 %vm640_vm0, %v601_v46 }
 0xce0   : > { %v8578_v52 = vpop.f32.mrb[24].mxu1 }
 0xce1   : > { %v2229_v53 = vpop.f32.mrb[25].mxu1  ;;  %v2235_v50 = vadd.f32 %v8578_v52, %v10833_v6 }
 0xce2   : > { %v2230_v56 = vadd.f32 %v10833_v6, %v2229_v53 }
 0xce3   : > { %v2249_v0 = vmul.f32 0.35355338, %v2235_v50 }
 0xce4   : > { %v10902_v57 = vmul.f32 0.35355338, %v2230_v56 }
 0xce6   : > { %8605 = vmatprep.mubr.msk.f32.mxu1 %vm795_vm2, %v10902_v57 }
 0xd16   : > { %v8581_v58 = vpop.f32.mrb[26].mxu1 }
 0xd17   : > { %v2239_v59 = vpop.f32.mrb[27].mxu1  ;;  %v2245_v2 = vadd.f32 %v8581_v58, %v10833_v6 }
 0xd18   : > { %v2240_v49 = vadd.f32 %v10833_v6, %v2239_v59  ;;  %v10929_v6 = vld [vmem:[%s12295_s3] ss:$0 sm:$0xff]  ;;  %s12310_s3 = smov 64  }
 0xd19   : > { %v10922_v5 = vmul.f32 0.35355338, %v2245_v2 }
 0xd1a   : > { %v8600_v61 = vpop.f32.mrb[28].mxu1  ;;  %v10917_v3 = vmul.f32 0.35355338, %v2240_v49 }
 0xd1b   : > { %v2371_v47 = vadd.f32 %v8600_v61, %v2267_v60  ;;  %v2365_v62 = vpop.f32.mrb[29].mxu1 }
 0xd1c   : > { %v2366_v40 = vadd.f32 %v2365_v62, %v2267_v60 }
 0xd1e   : > { %v10906_v41 = vpack.i.bf16 %v2371_v47, %v2366_v40  ;;  %v9260_v48 = vpack.c.bf16 %v2371_v47, %v2366_v40 }
 0xd20   : > { %9760 = vrot.lane.b32.xlu0 %v10906_v41, %s12264_s22  ;;  %9262 = vmatprep.subr.msk.bf16.mxu1 %vm10453_vm3, %v9260_v48  ;;  %s12303_s22 = smov 8  }
 0xd21   : > { %9265 = vmatpush3.bf16.xpose.msk.msra.mxu1 %vm10453_vm3, %v9260_v48 }
 0xd28   : > { %8606 = vmatmul.mubr.msk.f32.vlgmr.msra.gmra.mrb[30].mxu1 %vm795_vm2, %v2249_v0 }
 0xd29   : > { %8608 = vmatprep.mubr.msk.f32.mxu1 %vm795_vm2, %v10917_v3 }
 0xd2c   : > { %8609 = vmatmul.mubr.msk.f32.gmra.mrb[32].mxu1 %vm795_vm2, %v10922_v5 }
 0xd92   : > { %v9761_v15 = vpop.permute.xlu0 %9760 }
 0xd93   : > { %v9763_v7 = vunpack.i.h.bf16 %v9761_v15  ;;  %v9762_v13 = vunpack.i.l.bf16 %v9761_v15 }
 0xd95   : > { %v9266_v54 = vpack.c.bf16 %v9763_v7, %v9762_v13 }
 0xd97   : > { %9267 = vmatprep.subr.bf16.mxu1 %v9266_v54 }
 0xd98   : > { %9269 = vmatpush3.bf16.msra.mxu1 %v9266_v54 }
 0xdfb   : > { %v8607_v55 = vpop.f32.mrb[30].mxu1 }
 0xdfc   : > { %v2475_v8 = vadd.f32 %v8607_v55, %v10929_v6  ;;  %v2469_v9 = vpop.f32.mrb[31].mxu1 }
 0xdfd   : > { %v2470_v10 = vadd.f32 %v10929_v6, %v2469_v9 }
 0xdfe   : > { %v2491_v11 = vsel %vm1923_vm9, %v2475_v8, -inf }
 0xdff   : > { %2492 = vmax.xlane.f32.xlu0 %v2491_v11  ;;  %v8610_v12 = vpop.f32.mrb[32].mxu1  ;;  %v2488_v16 = vsel %vm1923_vm9, %v2470_v10, -inf }
 0xe00   : > { %v2479_v17 = vpop.f32.mrb[33].mxu1  ;;  %v2485_v20 = vadd.f32 %v8610_v12, %v10929_v6 }
 0xe01   : > { %v2480_v21 = vadd.f32 %v10929_v6, %v2479_v17 }
 0xe02   : > { %v2498_v24 = vsel %vm2497_vm12, %v2485_v20, -inf }
 0xe03   : > { %2489 = vmax.xlane.f32.xlu0 %v2488_v16  ;;  %v2494_v14 = vsel %vm1923_vm9, %v2480_v21, -inf }
 0xe07   : > { %2499 = vmax.xlane.f32.xlu0 %v2498_v24 }
 0xe0b   : > { %2495 = vmax.xlane.f32.xlu0 %v2494_v14 }
 0xe21   : > { %9765 = vrot.lane.b32.xlu0 %v10906_v41, %s12296_s20 }
 0xe8c   : > { %v2493_v34 = vpop.xlane.xlu0 %2492 }
 0xe8d   : > { %v2502_v25 = vsub.f32 %v2475_v8, %v2493_v34 }
 0xe8f   : > { %v2507_v30 = vmul.f32 1.442695, %v2502_v25 }
 0xe90   : > { %v2490_v31 = vpop.xlane.xlu0 %2489 }
 0xe91   : > { %9981 = vpow2.f32 %v2507_v30  ;;  %v2501_v32 = vsub.f32 %v2470_v10, %v2490_v31 }
 0xe93   : > { %v2505_v35 = vmul.f32 1.442695, %v2501_v32 }
 0xe94   : > { %v2500_v26 = vpop.xlane.xlu0 %2499 }
 0xe95   : > { %9983 = vpow2.f32 %v2505_v35  ;;  %v2504_v45 = vsub.f32 %v2485_v20, %v2500_v26 }
 0xe97   : > { %v2511_v42 = vmul.f32 1.442695, %v2504_v45 }
 0xe98   : > { %v2496_v36 = vpop.xlane.xlu0 %2495 }
 0xe99   : > { %v2503_v43 = vsub.f32 %v2480_v21, %v2496_v36  ;;  %9985 = vpow2.f32 %v2511_v42 }
 0xe9b   : > { %v9982_v63 = vpop.eup %9981  ;;  %v2509_v44 = vmul.f32 1.442695, %v2503_v43 }
 0xe9c   : > { %v9766_v37 = vpop.permute.xlu0 %9765  ;;  %v2516_v23 = vsel %vm1923_vm9, %v9982_v63, 0.0 }
 0xe9d   : > { %v9768_v33 = vunpack.i.h.bf16 %v9766_v37  ;;  %v9767_v29 = vunpack.i.l.bf16 %v9766_v37  ;;  %2517 = vadd.xlane.f32.xlu0 %v2516_v23  ;;  %9987 = vpow2.f32 %v2509_v44 }
 0xe9f   : > { %v9984_v1 = vpop.eup %9983  ;;  %v9270_v18 = vpack.c.bf16 %v9768_v33, %v9767_v29 }
 0xea0   : > { %v2513_v22 = vsel %vm1923_vm9, %v9984_v1, 0.0 }
 0xea1   : > { %2514 = vadd.xlane.f32.xlu1 %v2513_v22  ;;  %9272 = vmatprep.subr.msk.bf16.mxu1 %vm10453_vm3, %v9270_v18 }
 0xea3   : > { %v9986_v46 = vpop.eup %9985 }
 0xea4   : > { %v2522_v52 = vsel %vm2497_vm12, %v9986_v46, 0.0 }
 0xea7   : > { %v9988_v53 = vpop.eup %9987 }
 0xea8   : > { %v2519_v56 = vsel %vm1923_vm9, %v9988_v53, 0.0 }
 0xeb2   : > { %9770 = vrot.lane.b32.xlu1 %v10906_v41, %s12297_s21 }
 0xeb3   : > { %2636 = vrot.lane.b32.xlu0 %v10902_v57, %s12296_s20 }
 0xeb6   : > { %9775 = vrot.lane.b32.xlu1 %v10906_v41, %s12298_s23 }
 0xeb7   : > { %2638 = vrot.lane.b32.xlu0 %v2249_v0, %s12296_s20 }
 0xeba   : > { %2894 = vrot.lane.b32.xlu1 %v2249_v0, %s12297_s21 }
 0xebe   : > { %2898 = vrot.lane.b32.xlu1 %v10922_v5, %s12297_s21 }
 0xec2   : > { %3150 = vrot.lane.b32.xlu1 %v2249_v0, %s12298_s23 }
 0xec6   : > { %3154 = vrot.lane.b32.xlu1 %v10922_v5, %s12298_s23 }
 0xed6   : > { %2523 = vadd.xlane.f32.xlu0 %v2522_v52 }
 0xeda   : > { %2520 = vadd.xlane.f32.xlu0 %v2519_v56 }
 0xef0   : > { %2640 = vrot.lane.b32.xlu0 %v10917_v3, %s12296_s20 }
 0xef4   : > { %2642 = vrot.lane.b32.xlu0 %v10922_v5, %s12296_s20 }
 0xef8   : > { %2892 = vrot.lane.b32.xlu0 %v10902_v57, %s12297_s21 }
 0xefc   : > { %2896 = vrot.lane.b32.xlu0 %v10917_v3, %s12297_s21 }
 0xf00   : > { %3148 = vrot.lane.b32.xlu0 %v10902_v57, %s12298_s23 }
 0xf04   : > { %3152 = vrot.lane.b32.xlu0 %v10917_v3, %s12298_s23 }
 0xf2a   : > { %v2518_v58 = vpop.xlane.xlu0 %2517 }
 0xf2b   : > { %9989 = vrcp.f32 %v2518_v58 }
 0xf2e   : > { %v2515_v59 = vpop.xlane.xlu1 %2514  ;;  %v2637_v5 = vpop.permute.xlu0 %2636 }
 0xf2f   : > { %9991 = vrcp.f32 %v2515_v59 }
 0xf32   : > { %v9771_v60 = vpop.permute.xlu1 %9770  ;;  %v2639_v15 = vpop.permute.xlu0 %2638 }
 0xf33   : > { %v9773_v61 = vunpack.i.h.bf16 %v9771_v60  ;;  %v9772_v47 = vunpack.i.l.bf16 %v9771_v60 }
 0xf35   : > { %v9280_v62 = vpack.c.bf16 %v9773_v61, %v9772_v47  ;;  %v9990_v49 = vpop.eup %9989 }
 0xf36   : > { %v9776_v40 = vpop.permute.xlu1 %9775  ;;  %v2530_v3 = vmul.f32 %v9990_v49, %v9982_v63 }
 0xf37   : > { %v9778_v48 = vunpack.i.h.bf16 %v9776_v40  ;;  %v9777_v50 = vunpack.i.l.bf16 %v9776_v40  ;;  %9282 = vmatprep.subr.msk.bf16.mxu0 %vm10453_vm3, %v9280_v62 }
 0xf38   : > { %9285 = vmatpush3.bf16.xpose.msk.msra.mxu0 %vm10453_vm3, %v9280_v62 }
 0xf39   : > { %v9992_v57 = vpop.eup %9991  ;;  %v9290_v0 = vpack.c.bf16 %v9778_v48, %v9777_v50 }
 0xf3a   : > { %v2529_v2 = vmul.f32 %v9992_v57, %v9984_v1  ;;  %v2895_v55 = vpop.permute.xlu1 %2894 }
 0xf3b   : > { %9292 = vmatprep.subr.msk.bf16.mxu0 %vm10453_vm3, %v9290_v0 }
 0xf3c   : > { %8615 = vmatprep.mubr.msk.f32.mxu1 %vm1923_vm9, %v2529_v2 }
 0xf3d   : > { %8616 = vmatmul.mubr.msk.f32.vlgmr.msra.gmra.mrb[34].mxu1 %vm1923_vm9, %v2530_v3 }
 0xf3e   : > { %9275 = vmatpush3.bf16.xpose.msk.msra.mxu1 %vm10453_vm3, %v9270_v18  ;;  %v2899_v17 = vpop.permute.xlu1 %2898 }
 0xf42   : > { %v3151_v21 = vpop.permute.xlu1 %3150 }
 0xf46   : > { %v3155_v34 = vpop.permute.xlu1 %3154 }
 0xf63   : > { %v2524_v7 = vpop.xlane.xlu0 %2523 }
 0xf64   : > { %9993 = vrcp.f32 %v2524_v7 }
 0xf67   : > { %v2521_v13 = vpop.xlane.xlu0 %2520 }
 0xf68   : > { %9995 = vrcp.f32 %v2521_v13 }
 0xf6b   : > { %v2641_v54 = vpop.permute.xlu0 %2640 }
 0xf6e   : > { %v9994_v9 = vpop.eup %9993 }
 0xf6f   : > { %v2643_v8 = vpop.permute.xlu0 %2642  ;;  %v2532_v20 = vmul.f32 %v9994_v9, %v9986_v46 }
 0xf72   : > { %v9996_v10 = vpop.eup %9995 }
 0xf73   : > { %v2893_v11 = vpop.permute.xlu0 %2892  ;;  %v2531_v12 = vmul.f32 %v9996_v10, %v9988_v53 }
 0xf74   : > { %8645 = vmatprep.mubr.msk.f32.mxu0 %vm795_vm2, %v2893_v11 }
 0xf75   : > { %8618 = vmatprep.mubr.msk.f32.mxu1 %vm1923_vm9, %v2531_v12  ;;  %8646 = vmatmul.mubr.msk.f32.vlgmr.msra.gmra.mrb[16].mxu0 %vm795_vm2, %v2895_v55 }
 0xf76   : > { %9295 = vmatpush3.bf16.xpose.msk.msra.mxu0 %vm10453_vm3, %v9290_v0  ;;  %8619 = vmatmul.mubr.msk.f32.gmra.mrb[36].mxu1 %vm1923_vm9, %v2532_v20 }
 0xf77   : > { %8625 = vmatprep.mubr.msk.f32.mxu1 %vm795_vm2, %v2637_v5  ;;  %v2897_v16 = vpop.permute.xlu0 %2896 }
 0xf78   : > { %8648 = vmatprep.mubr.msk.f32.mxu0 %vm795_vm2, %v2897_v16 }
 0xf79   : > { %8649 = vmatmul.mubr.msk.f32.gmra.mrb[18].mxu0 %vm795_vm2, %v2899_v17 }
 0xf7a   : > { %8626 = vmatmul.mubr.msk.f32.vlgmr.msra.gmra.mrb[38].mxu1 %vm795_vm2, %v2639_v15 }
 0xf7b   : > { %v3149_v24 = vpop.permute.xlu0 %3148  ;;  %8628 = vmatprep.mubr.msk.f32.mxu1 %vm795_vm2, %v2641_v54 }
 0xf7c   : > { %8665 = vmatprep.mubr.msk.f32.mxu0 %vm795_vm2, %v3149_v24 }
 0xf7d   : > { %8666 = vmatmul.mubr.msk.f32.vlgmr.msra.gmra.mrb[20].mxu0 %vm795_vm2, %v3151_v21 }
 0xf7e   : > { %8629 = vmatmul.mubr.msk.f32.gmra.mrb[40].mxu1 %vm795_vm2, %v2643_v8 }
 0xf7f   : > { %v3153_v14 = vpop.permute.xlu0 %3152 }
 0xf80   : > { %8668 = vmatprep.mubr.msk.f32.mxu0 %vm795_vm2, %v3153_v14 }
 0xf81   : > { %8669 = vmatmul.mubr.msk.f32.gmra.mrb[22].mxu0 %vm795_vm2, %v3155_v34 }
0x1010   : > { %v10998_v25 = vpop.f32.mrb[34].mxu1 }
0x1011   : > { %v11000_v30 = vpop.f32.mrb[35].mxu1 }
0x1048   : > { %v8647_v31 = vpop.f32.mrb[16].mxu0 }
0x1049   : > { %v11002_v32 = vpop.f32.mrb[36].mxu1  ;;  %v2982_v35 = vpop.f32.mrb[17].mxu0  ;;  %v2988_v62 = vadd.f32 %v8647_v31, %v10929_v6 }
0x104a   : > { %v11004_v26 = vpop.f32.mrb[37].mxu1  ;;  %v2983_v1 = vadd.f32 %v10929_v6, %v2982_v35 }
0x104b   : > { %v3004_v57 = vsel %vm1923_vm9, %v2988_v62, -inf }
0x104c   : > { %v8650_v36 = vpop.f32.mrb[18].mxu0  ;;  %v3001_v56 = vsel %vm1923_vm9, %v2983_v1, -inf }
0x104d   : > { %v8627_v63 = vpop.f32.mrb[38].mxu1  ;;  %v2992_v37 = vpop.f32.mrb[19].mxu0  ;;  %v2998_v49 = vadd.f32 %v8650_v36, %v10929_v6 }
0x104e   : > { %v11007_v23 = vadd.f32 %v8627_v63, %v10929_v6  ;;  %v2726_v33 = vpop.f32.mrb[39].mxu1  ;;  %v2993_v52 = vadd.f32 %v10929_v6, %v2992_v37 }
0x104f   : > { %v11010_v29 = vadd.f32 %v10929_v6, %v2726_v33  ;;  %v3010_v3 = vsel %vm2497_vm12, %v2998_v49, -inf }
0x1050   : > { %v8667_v18 = vpop.f32.mrb[20].mxu0  ;;  %v2748_v22 = vsel %vm1923_vm9, %v11007_v23, -inf  ;;  %v3007_v47 = vsel %vm1923_vm9, %v2993_v52, -inf }
0x1051   : > { %v3238_v45 = vpop.f32.mrb[21].mxu0  ;;  %2749 = vmax.xlane.f32.xlu1 %v2748_v22  ;;  %v8630_v42 = vpop.f32.mrb[40].mxu1  ;;  %v2745_v43 = vsel %vm1923_vm9, %v11010_v29, -inf  ;;  %v3244_v2 = vadd.f32 %v8667_v18, %v10929_v6 }
0x1052   : > { %v2736_v44 = vpop.f32.mrb[41].mxu1  ;;  %2746 = vmax.xlane.f32.xlu0 %v2745_v43  ;;  %v11023_v58 = vadd.f32 %v8630_v42, %v10929_v6  ;;  %v3239_v61 = vadd.f32 %v10929_v6, %v3238_v45 }
0x1053   : > { %v11018_v46 = vadd.f32 %v10929_v6, %v2736_v44  ;;  %v3260_v15 = vsel %vm1923_vm9, %v3244_v2, -inf }
0x1054   : > { %v8670_v53 = vpop.f32.mrb[22].mxu0  ;;  %v2754_v40 = vsel %vm2497_vm12, %v11023_v58, -inf  ;;  %v3257_v50 = vsel %vm1923_vm9, %v3239_v61, -inf }
0x1055   : > { %v3248_v59 = vpop.f32.mrb[23].mxu0  ;;  %3002 = vmax.xlane.f32.xlu1 %v3001_v56  ;;  %v2751_v60 = vsel %vm1923_vm9, %v11018_v46, -inf  ;;  %v3254_v5 = vadd.f32 %v8670_v53, %v10929_v6 }
0x1056   : > { %2752 = vmax.xlane.f32.xlu0 %v2751_v60  ;;  %v3249_v48 = vadd.f32 %v10929_v6, %v3248_v59 }
0x1057   : > { %v3266_v7 = vsel %vm2497_vm12, %v3254_v5, -inf }
0x1058   : > { %v3263_v0 = vsel %vm1923_vm9, %v3249_v48, -inf }
0x1059   : > { %3008 = vmax.xlane.f32.xlu1 %v3007_v47 }
0x105a   : > { %2755 = vmax.xlane.f32.xlu0 %v2754_v40 }
0x105d   : > { %3258 = vmax.xlane.f32.xlu1 %v3257_v50 }
0x105e   : > { %3005 = vmax.xlane.f32.xlu0 %v3004_v57 }
0x1061   : > { %3264 = vmax.xlane.f32.xlu1 %v3263_v0 }
0x1062   : > { %3011 = vmax.xlane.f32.xlu0 %v3010_v3 }
0x1066   : > { %3261 = vmax.xlane.f32.xlu0 %v3260_v15 }
0x106a   : > { %3267 = vmax.xlane.f32.xlu0 %v3266_v7 }
0x10de   : > { %v2750_v13 = vpop.xlane.xlu1 %2749 }
0x10df   : > { %v11042_v54 = vpop.xlane.xlu0 %2746  ;;  %v2758_v60 = vsub.f32 %v11007_v23, %v2750_v13 }
0x10e2   : > { %v3003_v55 = vpop.xlane.xlu1 %3002 }
0x10e3   : > { %v3013_v8 = vsub.f32 %v2983_v1, %v3003_v55  ;;  %v11044_v9 = vpop.xlane.xlu0 %2752 }
0x10e5   : > { %v3017_v10 = vmul.f32 1.442695, %v3013_v8  ;;  %v2757_v8 = vsub.f32 %v11010_v29, %v11042_v54 }
0x10e6   : > { %v3009_v11 = vpop.xlane.xlu1 %3008 }
0x10e7   : > { %9997 = vpow2.f32 %v3017_v10  ;;  %v3015_v12 = vsub.f32 %v2993_v52, %v3009_v11  ;;  %v2756_v17 = vpop.xlane.xlu0 %2755  ;;  %v2761_v10 = vmul.f32 1.442695, %v2757_v8  ;;  %v2759_v11 = vsub.f32 %v11018_v46, %v11044_v9 }
0x10e8   : > { %v2760_v50 = vsub.f32 %v11023_v58, %v2756_v17 }
0x10e9   : > { %v3021_v20 = vmul.f32 1.442695, %v3015_v12  ;;  %v2765_v12 = vmul.f32 1.442695, %v2759_v11 }
0x10ea   : > { %v3259_v6 = vpop.xlane.xlu1 %3258  ;;  %v2767_v57 = vmul.f32 1.442695, %v2760_v50 }
0x10eb   : > { %9999 = vpow2.f32 %v3021_v20  ;;  %v3269_v16 = vsub.f32 %v3239_v61, %v3259_v6  ;;  %v3006_v21 = vpop.xlane.xlu0 %3005 }
0x10ec   : > { %v3014_v24 = vsub.f32 %v2988_v62, %v3006_v21 }
0x10ed   : > { %v3273_v14 = vmul.f32 1.442695, %v3269_v16 }
0x10ee   : > { %v3019_v34 = vmul.f32 1.442695, %v3014_v24  ;;  %v3265_v31 = vpop.xlane.xlu1 %3264 }
0x10ef   : > { %10001 = vpow2.f32 %v3273_v14  ;;  %v3012_v35 = vpop.xlane.xlu0 %3011  ;;  %v3271_v37 = vsub.f32 %v3249_v48, %v3265_v31  ;;  %v2763_v48 = vmul.f32 1.442695, %v2758_v60 }
0x10f0   : > { %10003 = vpow2.f32 %v3019_v34  ;;  %v3016_v36 = vsub.f32 %v2998_v49, %v3012_v35 }
0x10f1   : > { %v11046_v63 = vpop.eup %9997  ;;  %v3277_v42 = vmul.f32 1.442695, %v3271_v37 }
0x10f2   : > { %v3023_v33 = vmul.f32 1.442695, %v3016_v36  ;;  %v3025_v1 = vsel %vm1923_vm9, %v11046_v63, 0.0 }
0x10f3   : > { %3026 = vadd.xlane.f32.xlu1 %v3025_v1  ;;  %v3262_v18 = vpop.xlane.xlu0 %3261 }
0x10f4   : > { %10005 = vpow2.f32 %v3023_v33  ;;  %v3270_v22 = vsub.f32 %v3244_v2, %v3262_v18 }
0x10f5   : > { %v11050_v45 = vpop.eup %9999 }
0x10f6   : > { %v3275_v43 = vmul.f32 1.442695, %v3270_v22  ;;  %v3031_v44 = vsel %vm1923_vm9, %v11050_v45, 0.0 }
0x10f7   : > { %3032 = vadd.xlane.f32.xlu1 %v3031_v44  ;;  %v3268_v52 = vpop.xlane.xlu0 %3267 }
0x10f8   : > { %10007 = vpow2.f32 %v3275_v43  ;;  %v3272_v53 = vsub.f32 %v3254_v5, %v3268_v52 }
0x10f9   : > { %v11054_v56 = vpop.eup %10001  ;;  %10009 = vpow2.f32 %v3277_v42 }
0x10fa   : > { %v11056_v59 = vpop.eup %10003  ;;  %v3279_v61 = vmul.f32 1.442695, %v3272_v53  ;;  %v3281_v47 = vsel %vm1923_vm9, %v11054_v56, 0.0 }
0x10fb   : > { %3282 = vadd.xlane.f32.xlu1 %v3281_v47  ;;  %v3028_v62 = vsel %vm1923_vm9, %v11056_v59, 0.0 }
0x10fc   : > { %3029 = vadd.xlane.f32.xlu0 %v3028_v62  ;;  %10011 = vpow2.f32 %v3279_v61 }
0x10fd   : > { %10013 = vpow2.f32 %v2763_v48 }
0x10fe   : > { %v11063_v40 = vpop.eup %10005  ;;  %10015 = vpow2.f32 %v2767_v57 }
0x10ff   : > { %v3034_v49 = vsel %vm2497_vm12, %v11063_v40, 0.0  ;;  %10017 = vpow2.f32 %v2761_v10 }
0x1100   : > { %3035 = vadd.xlane.f32.xlu0 %v3034_v49  ;;  %10019 = vpow2.f32 %v2765_v12 }
0x1102   : > { %v11068_v23 = vpop.eup %10007 }
0x1103   : > { %v3284_v0 = vsel %vm1923_vm9, %v11068_v23, 0.0  ;;  %v11072_v2 = vpop.eup %10009 }
0x1104   : > { %3285 = vadd.xlane.f32.xlu0 %v3284_v0  ;;  %v3287_v3 = vsel %vm1923_vm9, %v11072_v2, 0.0 }
0x1106   : > { %v11076_v58 = vpop.eup %10011 }
0x1107   : > { %v3290_v5 = vsel %vm2497_vm12, %v11076_v58, 0.0  ;;  %v10014_v15 = vpop.eup %10013 }
0x1108   : > { %3288 = vadd.xlane.f32.xlu0 %v3287_v3  ;;  %v2772_v7 = vsel %vm1923_vm9, %v10014_v15, 0.0  ;;  %v11083_v13 = vpop.eup %10015 }
0x1109   : > { %v2778_v55 = vsel %vm2497_vm12, %v11083_v13, 0.0  ;;  %v10018_v17 = vpop.eup %10017 }
0x110a   : > { %v2769_v20 = vsel %vm1923_vm9, %v10018_v17, 0.0  ;;  %v10020_v6 = vpop.eup %10019 }
0x110b   : > { %v2775_v16 = vsel %vm1923_vm9, %v10020_v6, 0.0 }
0x110c   : > { %9780 = vrot.lane.b32.xlu1 %v10906_v41, %s12299_s26  ;;  %3291 = vadd.xlane.f32.xlu0 %v3290_v5 }
0x1110   : > { %2773 = vadd.xlane.f32.xlu0 %v2772_v7 }
0x1114   : > { %2779 = vadd.xlane.f32.xlu0 %v2778_v55 }
0x112a   : > { %9785 = vrot.lane.b32.xlu0 %v10906_v41, %s12300_s24 }
0x1130   : > { %2770 = vadd.xlane.f32.xlu1 %v2769_v20 }
0x1134   : > { %2776 = vadd.xlane.f32.xlu1 %v2775_v16 }
0x1145   : > { %9790 = vrot.lane.b32.xlu1 %v10906_v41, %s12301_s30 }
0x1180   : > { %v3027_v29 = vpop.xlane.xlu1 %3026 }
0x1184   : > { %v3033_v54 = vpop.xlane.xlu1 %3032 }
0x1188   : > { %v3283_v46 = vpop.xlane.xlu1 %3282 }
0x1189   : > { %v3030_v9 = vpop.xlane.xlu0 %3029 }
0x118c   : > { %v9781_v21 = vpop.permute.xlu1 %9780 }
0x118d   : > { %v9783_v24 = vunpack.i.h.bf16 %v9781_v21  ;;  %v9782_v14 = vunpack.i.l.bf16 %v9781_v21  ;;  %v3036_v34 = vpop.xlane.xlu0 %3035 }
0x118f   : > { %v9276_v31 = vpack.c.bf16 %v9783_v24, %v9782_v14 }
0x1191   : > { %9277 = vmatprep.subr.bf16.mxu1 %v9276_v31  ;;  %v3286_v35 = vpop.xlane.xlu0 %3285 }
0x1192   : > { %9279 = vmatpush3.bf16.msra.mxu1 %v9276_v31 }
0x1195   : > { %v3289_v36 = vpop.xlane.xlu0 %3288 }
0x1199   : > { %v3292_v37 = vpop.xlane.xlu0 %3291 }
0x119d   : > { %v2774_v33 = vpop.xlane.xlu0 %2773 }
0x119e   : > { %10021 = vrcp.f32 %v2774_v33 }
0x11a1   : > { %v2780_v1 = vpop.xlane.xlu0 %2779 }
0x11a5   : > { %v9786_v18 = vpop.permute.xlu0 %9785 }
0x11a6   : > { %v9788_v22 = vunpack.i.h.bf16 %v9786_v18  ;;  %v9787_v42 = vunpack.i.l.bf16 %v9786_v18 }
0x11a8   : > { %v9286_v41 = vpack.c.bf16 %v9788_v22, %v9787_v42  ;;  %v10022_v53 = vpop.eup %10021 }
0x11a9   : > { %v2786_v50 = vmul.f32 %v10022_v53, %v10014_v15 }
0x11aa   : > { %9287 = vmatprep.subr.bf16.mxu1 %v9286_v41 }
0x11bd   : > { %v2771_v43 = vpop.xlane.xlu1 %2770 }
0x11be   : > { %10023 = vrcp.f32 %v2771_v43 }
0x11bf   : > { %10025 = vrcp.f32 %v3027_v29 }
0x11c0   : > { %10027 = vrcp.f32 %v2780_v1 }
0x11c1   : > { %v2777_v44 = vpop.xlane.xlu1 %2776 }
0x11c2   : > { %10029 = vrcp.f32 %v2777_v44 }
0x11c3   : > { %10031 = vrcp.f32 %v3030_v9 }
0x11c4   : > { %10033 = vrcp.f32 %v3033_v54 }
0x11c5   : > { %v9791_v52 = vpop.permute.xlu1 %9790  ;;  %10035 = vrcp.f32 %v3036_v34 }
0x11c6   : > { %v9793_v61 = vunpack.i.h.bf16 %v9791_v52  ;;  %v9792_v47 = vunpack.i.l.bf16 %v9791_v52  ;;  %10037 = vrcp.f32 %v3283_v46 }
0x11c7   : > { %10039 = vrcp.f32 %v3286_v35 }
0x11c8   : > { %v10024_v60 = vpop.eup %10023  ;;  %v9296_v0 = vpack.c.bf16 %v9793_v61, %v9792_v47  ;;  %10041 = vrcp.f32 %v3289_v36 }
0x11c9   : > { %v2785_v62 = vmul.f32 %v10024_v60, %v10018_v17  ;;  %v10026_v48 = vpop.eup %10025  ;;  %10043 = vrcp.f32 %v3292_v37 }
0x11ca   : > { %v10028_v49 = vpop.eup %10027  ;;  %v3041_v55 = vmul.f32 %v10026_v48, %v11046_v63 }
0x11cb   : > { %8635 = vmatprep.mubr.msk.f32.mxu1 %vm1923_vm9, %v2785_v62  ;;  %v2788_v5 = vmul.f32 %v10028_v49, %v11083_v13 }
0x11cc   : > { %v10030_v57 = vpop.eup %10029  ;;  %8636 = vmatmul.mubr.msk.f32.vlgmr.msra.gmra.mrb[42].mxu1 %vm1923_vm9, %v2786_v50 }
0x11cd   : > { %9289 = vmatpush3.bf16.msra.mxu1 %v9286_v41  ;;  %v2787_v3 = vmul.f32 %v10030_v57, %v10020_v6  ;;  %v10032_v7 = vpop.eup %10031 }
0x11ce   : > { %9297 = vmatprep.subr.bf16.mxu1 %v9296_v0  ;;  %v10034_v15 = vpop.eup %10033  ;;  %v3042_v8 = vmul.f32 %v10032_v7, %v11056_v59 }
0x11cf   : > { %8638 = vmatprep.mubr.msk.f32.mxu1 %vm1923_vm9, %v2787_v3  ;;  %v10036_v10 = vpop.eup %10035  ;;  %v3043_v11 = vmul.f32 %v10034_v15, %v11050_v45 }
0x11d0   : > { %8639 = vmatmul.mubr.msk.f32.gmra.mrb[44].mxu1 %vm1923_vm9, %v2788_v5  ;;  %v10038_v12 = vpop.eup %10037  ;;  %v3044_v13 = vmul.f32 %v10036_v10, %v11063_v40  ;;  %v2375_v40 = vld [vmem:[%s12302_s10 + $0x8] sm:$0xff] }
0x11d1   : > { %8655 = vmatprep.mubr.msk.f32.mxu1 %vm1923_vm9, %v3041_v55  ;;  %v10040_v63 = vpop.eup %10039  ;;  %v3297_v17 = vmul.f32 %v10038_v12, %v11054_v56  ;;  %v2374_v56 = vld [vmem:[%s12302_s10] sm:$0xff] }
0x11d2   : > { %v10042_v20 = vpop.eup %10041  ;;  %v3298_v59 = vmul.f32 %v10040_v63, %v11068_v23  ;;  %v9300_v23 = vpack.c.bf16 %v2375_v40, %v2374_v56  ;;  %v3660_v40 = vld [vmem:[%s12235_s12 + $0x8] sm:$0xff] }
0x11d3   : > { %v10044_v6 = vpop.eup %10043  ;;  %v3299_v45 = vmul.f32 %v10042_v20, %v11072_v2  ;;  %v2376_v2 = vld [vmem:[%s12302_s10 + $0x10] sm:$0xff] }
0x11d4   : > { %8656 = vmatmul.mubr.msk.f32.vlgmr.msra.gmra.mrb[46].mxu1 %vm1923_vm9, %v3042_v8  ;;  %v3300_v16 = vmul.f32 %v10044_v6, %v11076_v58  ;;  %9302 = vmatprep.subr.msk.bf16.mxu0 %vm10363_vm1, %v9300_v23  ;;  %v2377_v58 = vld [vmem:[%s12302_s10 + $0x18] sm:$0xff]  ;;  %s12311_s10 = smov 56  }
0x11d5   : > { %9299 = vmatpush3.bf16.msra.mxu1 %v9296_v0  ;;  %8658 = vmatprep.mubr.msk.f32.mxu1 %vm1923_vm9, %v3043_v11  ;;  %v9306_v29 = vpack.c.bf16 %v2377_v58, %v2376_v2 }
0x11d6   : > { %9305 = vmatpush3.bf16.xpose.msk.msra.mxu0 %vm10363_vm1, %v9300_v23 }
0x11d7   : > { %9308 = vmatprep.subr.msk.bf16.mxu0 %vm10363_vm1, %v9306_v29 }
0x11d8   : > { %8659 = vmatmul.mubr.msk.f32.gmra.mrb[48].mxu1 %vm1923_vm9, %v3044_v13 }
0x11d9   : > { %8675 = vmatprep.mubr.msk.f32.mxu1 %vm1923_vm9, %v3297_v17 }
0x11dc   : > { %8676 = vmatmul.mubr.msk.f32.vlgmr.msra.gmra.mrb[50].mxu1 %vm1923_vm9, %v3298_v59 }
0x11dd   : > { %8678 = vmatprep.mubr.msk.f32.mxu1 %vm1923_vm9, %v3299_v45 }
0x11de   : > { %9311 = vmatpush3.bf16.xpose.msk.msra.mxu0 %vm10363_vm1, %v9306_v29 }
0x11e0   : > { %8679 = vmatmul.mubr.msk.f32.gmra.mrb[52].mxu1 %vm1923_vm9, %v3300_v16 }
0x129f   : > { %v8637_v54 = vpop.f32.mrb[42].mxu1 }
0x12a0   : > { %3410 = vrot.lane.b32.xlu1 %v8637_v54, %s12303_s22  ;;  %v2873_v46 = vpop.f32.mrb[43].mxu1 }
0x12a3   : > { %v8640_v9 = vpop.f32.mrb[44].mxu1 }
0x12a4   : > { %3408 = vrot.lane.b32.xlu1 %v2873_v46, %s12303_s22  ;;  %3414 = vrot.lane.b32.xlu0 %v8640_v9, %s12303_s22  ;;  %v2883_v21 = vpop.f32.mrb[45].mxu1 }
0x12a7   : > { %v8657_v24 = vpop.f32.mrb[46].mxu1 }
0x12a8   : > { %3412 = vrot.lane.b32.xlu1 %v2883_v21, %s12303_s22  ;;  %3426 = vrot.lane.b32.xlu0 %v8657_v24, %s12304_s18  ;;  %v3129_v14 = vpop.f32.mrb[47].mxu1 }
0x12ab   : > { %v8660_v34 = vpop.f32.mrb[48].mxu1 }
0x12ac   : > { %3424 = vrot.lane.b32.xlu1 %v3129_v14, %s12304_s18  ;;  %v3139_v31 = vpop.f32.mrb[49].mxu1 }
0x12af   : > { %v8677_v35 = vpop.f32.mrb[50].mxu1 }
0x12b0   : > { %3442 = vrot.lane.b32.xlu0 %v8677_v35, %s12305_s27  ;;  %v3385_v36 = vpop.f32.mrb[51].mxu1 }
0x12b1   : > { %3440 = vrot.lane.b32.xlu1 %v3385_v36, %s12305_s27 }
0x12b3   : > { %v8680_v37 = vpop.f32.mrb[52].mxu1 }
0x12b4   : > { %3430 = vrot.lane.b32.xlu0 %v8660_v34, %s12304_s18  ;;  %v3395_v33 = vpop.f32.mrb[53].mxu1 }
0x12b5   : > { %3428 = vrot.lane.b32.xlu1 %v3139_v31, %s12304_s18 }
0x12b8   : > { %3446 = vrot.lane.b32.xlu0 %v8680_v37, %s12305_s27 }
0x12b9   : > { %3444 = vrot.lane.b32.xlu1 %v3395_v33, %s12305_s27 }
0x1312   : > { %v3411_v1 = vpop.permute.xlu1 %3410 }
0x1313   : > { %v3453_v53 = vsel %vm795_vm2, %v10998_v25, %v3411_v1 }
0x1316   : > { %v3409_v18 = vpop.permute.xlu1 %3408  ;;  %v3415_v22 = vpop.permute.xlu0 %3414 }
0x1317   : > { %v3452_v44 = vsel %vm795_vm2, %v11000_v30, %v3409_v18  ;;  %v3455_v25 = vsel %vm795_vm2, %v11002_v32, %v3415_v22 }
0x131a   : > { %v3413_v42 = vpop.permute.xlu1 %3412  ;;  %v3427_v41 = vpop.permute.xlu0 %3426 }
0x131b   : > { %v3457_v47 = vsel %vm1923_vm9, %v3453_v53, %v3427_v41  ;;  %v3454_v30 = vsel %vm795_vm2, %v11004_v26, %v3413_v42  ;;  %v7732_v26 = vld [vmem:[%s12306_s11] ss:$0 sm:$0xff]  ;;  %s12312_s11 = smov 48  }
0x131e   : > { %v3425_v43 = vpop.permute.xlu1 %3424 }
0x131f   : > { %v3456_v60 = vsel %vm1923_vm9, %v3452_v44, %v3425_v43  ;;  %v3663_v44 = vld [vmem:[%s12235_s12 + $0x20] sm:$0xff] }
0x1322   : > { %v3443_v52 = vpop.permute.xlu0 %3442 }
0x1323   : > { %v3441_v61 = vpop.permute.xlu1 %3440  ;;  %v3461_v48 = vsel %vm1928_vm10, %v3457_v47, %v3443_v52  ;;  %v3664_v52 = vld [vmem:[%s12235_s12 + $0x28] sm:$0xff] }
0x1324   : > { %v3460_v62 = vsel %vm1928_vm10, %v3456_v60, %v3441_v61  ;;  %v9324_v53 = vpack.c.bf16 %v3664_v52, %v3663_v44  ;;  %v3665_v60 = vld [vmem:[%s12235_s12 + $0x30] sm:$0xff]  ;;  %v3666_v61 = vld [vmem:[%s12235_s12 + $0x38] sm:$0xff] }
0x1325   : > { %8689 = vmatprep.mubr.msk.f32.mxu0 %vm640_vm0, %v3460_v62  ;;  %v9330_v47 = vpack.c.bf16 %v3666_v61, %v3665_v60  ;;  %v3799_v62 = vld [vmem:[%s12237_s14] sm:$0xff] }
0x1326   : > { %v3431_v50 = vpop.permute.xlu0 %3430  ;;  %8690 = vmatmul.mubr.msk.f32.vlgmr.msra.gmra.mrb[24].mxu0 %vm640_vm0, %v3461_v48  ;;  %v3800_v48 = vld [vmem:[%s12237_s14 + $0x8] sm:$0xff] }
0x1327   : > { %v3429_v49 = vpop.permute.xlu1 %3428  ;;  %v3459_v5 = vsel %vm1923_vm9, %v3455_v25, %v3431_v50  ;;  %v3801_v50 = vld [vmem:[%s12237_s14 + $0x10] sm:$0xff] }
0x1328   : > { %v3458_v0 = vsel %vm1923_vm9, %v3454_v30, %v3429_v49  ;;  %v9336_v49 = vpack.c.bf16 %v3800_v48, %v3799_v62 }
0x132a   : > { %v3447_v57 = vpop.permute.xlu0 %3446  ;;  %9338 = vmatprep.subr.msk.bf16.mxu0 %vm11236_vm14, %v9336_v49 }
0x132b   : > { %v3445_v3 = vpop.permute.xlu1 %3444  ;;  %v3463_v55 = vsel %vm1928_vm10, %v3459_v5, %v3447_v57  ;;  %v3802_v57 = vld [vmem:[%s12237_s14 + $0x18] sm:$0xff]  ;;  %9341 = vmatpush3.bf16.xpose.msk.msra.mxu0 %vm11236_vm14, %v9336_v49 }
0x132c   : > { %v3462_v7 = vsel %vm1928_vm10, %v3458_v0, %v3445_v3  ;;  %v9342_v25 = vpack.c.bf16 %v3802_v57, %v3801_v50 }
0x132d   : > { %8692 = vmatprep.mubr.msk.f32.mxu0 %vm640_vm0, %v3462_v7 }
0x132e   : > { %8693 = vmatmul.mubr.msk.f32.gmra.mrb[26].mxu0 %vm640_vm0, %v3463_v55  ;;  %9344 = vmatprep.subr.msk.bf16.mxu0 %vm11236_vm14, %v9342_v25 }
0x1333   : > { %9347 = vmatpush3.bf16.xpose.msk.msra.mxu0 %vm11236_vm14, %v9342_v25 }
0x13f9   : > { %v8691_v15 = vpop.f32.mrb[24].mxu0 }
0x13fa   : > { %v3566_v8 = vadd.f32 %v8691_v15, %v7732_v26  ;;  %v3560_v32 = vpop.f32.mrb[25].mxu0 }
0x13fb   : > { %v3561_v10 = vadd.f32 %v7732_v26, %v3560_v32 }
0x13fc   : > { %v3580_v11 = vadd.f32 %v3566_v8, %v10851_v28 }
0x13fd   : > { %v3579_v12 = vadd.f32 %v3561_v10, %v10849_v27  ;;  %v3659_v27 = vld [vmem:[%s12235_s12] sm:$0xff] }
0x13fe   : > { %v3590_v13 = vsel %vm640_vm0, %v3580_v11, 0.0  ;;  %v9312_v23 = vpack.c.bf16 %v3660_v40, %v3659_v27 }
0x13ff   : > { %3591 = vadd.xlane.f32.xlu0 %v3590_v13  ;;  %v3587_v63 = vsel %vm640_vm0, %v3579_v12, 0.0 }
0x1400   : > { %3588 = vadd.xlane.f32.xlu1 %v3587_v63  ;;  %9314 = vmatprep.subr.msk.bf16.mxu1 %vm10363_vm1, %v9312_v23  ;;  %v7743_v63 = vld [vmem:[%s12239_s16 + $0x1] ss:$0 sm:$0xff] }
0x1401   : > { %v8694_v17 = vpop.f32.mrb[26].mxu0  ;;  %9317 = vmatpush3.bf16.xpose.msk.msra.mxu1 %vm10363_vm1, %v9312_v23 }
0x1402   : > { %v3576_v20 = vadd.f32 %v8694_v17, %v7732_v26  ;;  %v3570_v59 = vpop.f32.mrb[27].mxu0 }
0x1403   : > { %v3571_v6 = vadd.f32 %v7732_v26, %v3570_v59 }
0x1404   : > { %v3582_v45 = vadd.f32 %v3576_v20, %v10893_v51  ;;  %v3661_v51 = vld [vmem:[%s12235_s12 + $0x10] sm:$0xff] }
0x1405   : > { %v3581_v16 = vadd.f32 %v3571_v6, %v10884_v39  ;;  %v3662_v39 = vld [vmem:[%s12235_s12 + $0x18] sm:$0xff]  ;;  %v7744_v6 = vld [vmem:[%s12240_s17 + $0x1] ss:$0 sm:$0xff] }
0x1406   : > { %v3596_v56 = vsel %vm2063_vm11, %v3582_v45, 0.0  ;;  %v9318_v2 = vpack.c.bf16 %v3662_v39, %v3661_v51 }
0x1407   : > { %3597 = vadd.xlane.f32.xlu1 %v3596_v56  ;;  %v3593_v28 = vsel %vm640_vm0, %v3581_v16, 0.0 }
0x1408   : > { %3594 = vadd.xlane.f32.xlu0 %v3593_v28  ;;  %9320 = vmatprep.subr.msk.bf16.mxu1 %vm10363_vm1, %v9318_v2 }
0x1409   : > { %9323 = vmatpush3.bf16.xpose.msk.msra.mxu1 %vm10363_vm1, %v9318_v2 }
0x140a   : > { %9326 = vmatprep.subr.msk.bf16.mxu1 %vm10363_vm1, %v9324_v53 }
0x1411   : > { %9329 = vmatpush3.bf16.xpose.msk.msra.mxu1 %vm10363_vm1, %v9324_v53 }
0x1412   : > { %9332 = vmatprep.subr.msk.bf16.mxu1 %vm10363_vm1, %v9330_v47 }
0x1419   : > { %9335 = vmatpush3.bf16.xpose.msk.msra.mxu1 %vm10363_vm1, %v9330_v47 }
0x148c   : > { %v3592_v58 = vpop.xlane.xlu0 %3591 }
0x148d   : > { %v3600_v29 = vmul.f32 0.03125, %v3592_v58  ;;  %v3589_v54 = vpop.xlane.xlu1 %3588 }
0x148e   : > { %v3599_v46 = vmul.f32 0.03125, %v3589_v54  ;;  %v7745_v54 = vld [vmem:[%s12236_s13] ss:$0 sm:$0xff] }
0x148f   : > { %v3604_v9 = vsub.f32 %v3580_v11, %v3600_v29 }
0x1490   : > { %v3603_v21 = vsub.f32 %v3579_v12, %v3599_v46 }
0x1491   : > { %v3608_v24 = vmul.f32 %v3604_v9, %v3604_v9 }
0x1492   : > { %v3607_v14 = vmul.f32 %v3603_v21, %v3603_v21 }
0x1493   : > { %v3614_v34 = vsel %vm640_vm0, %v3608_v24, 0.0 }
0x1494   : > { %3615 = vadd.xlane.f32.xlu1 %v3614_v34  ;;  %v3598_v31 = vpop.xlane.xlu1 %3597  ;;  %v3611_v35 = vsel %vm640_vm0, %v3607_v14, 0.0 }
0x1495   : > { %v3602_v36 = vmul.f32 0.03125, %v3598_v31  ;;  %v3595_v37 = vpop.xlane.xlu0 %3594  ;;  %3612 = vadd.xlane.f32.xlu0 %v3611_v35 }
0x1496   : > { %v3601_v33 = vmul.f32 0.03125, %v3595_v37 }
0x1497   : > { %v3606_v1 = vsub.f32 %v3582_v45, %v3602_v36 }
0x1498   : > { %v3605_v18 = vsub.f32 %v3581_v16, %v3601_v33 }
0x1499   : > { %v3610_v22 = vmul.f32 %v3606_v1, %v3606_v1 }
0x149a   : > { %v3609_v42 = vmul.f32 %v3605_v18, %v3605_v18 }
0x149b   : > { %v3620_v41 = vsel %vm2063_vm11, %v3610_v22, 0.0 }
0x149c   : > { %3621 = vadd.xlane.f32.xlu1 %v3620_v41  ;;  %v3617_v43 = vsel %vm640_vm0, %v3609_v42, 0.0 }
0x149d   : > { %3618 = vadd.xlane.f32.xlu0 %v3617_v43 }
0x1521   : > { %v3616_v0 = vpop.xlane.xlu1 %3615 }
0x1522   : > { %v3624_v3 = vmul.f32 0.03125, %v3616_v0  ;;  %v3613_v5 = vpop.xlane.xlu0 %3612  ;;  %v7771_v0 = vld [vmem:[%s12284_s4 + $0x60] sm:$0xff] }
0x1523   : > { %v3623_v7 = vmul.f32 0.03125, %v3613_v5  ;;  %v7773_v5 = vld [vmem:[%s12284_s4 + $0x70] sm:$0xff] }
0x1524   : > { %v3628_v55 = vadd.f32 1e-05, %v3624_v3  ;;  %v7772_v3 = vld [vmem:[%s12284_s4 + $0x68] sm:$0xff] }
0x1525   : > { %v3627_v26 = vadd.f32 1e-05, %v3623_v7  ;;  %v9348_v7 = vpack.c.bf16 %v7772_v3, %v7771_v0 }
0x1526   : > { %10045 = vrsqrt.f32 %v3628_v55  ;;  %v7774_v55 = vld [vmem:[%s12284_s4 + $0x78] sm:$0xff] }
0x1527   : > { %10047 = vrsqrt.f32 %v3627_v26  ;;  %v9354_v26 = vpack.c.bf16 %v7774_v55, %v7773_v5  ;;  %9350 = vmatprep.subr.msk.bf16.mxu0 %vm10363_vm1, %v9348_v7 }
0x1529   : > { %v3622_v15 = vpop.xlane.xlu1 %3621 }
0x152a   : > { %v3626_v8 = vmul.f32 0.03125, %v3622_v15  ;;  %v3619_v32 = vpop.xlane.xlu0 %3618  ;;  %v7775_v15 = vld [vmem:[%s12284_s4 + $0x80] sm:$0xff] }
0x152b   : > { %v3625_v10 = vmul.f32 0.03125, %v3619_v32 }
0x152c   : > { %v3630_v11 = vadd.f32 1e-05, %v3626_v8  ;;  %v7776_v8 = vld [vmem:[%s12284_s4 + $0x88] sm:$0xff] }
0x152d   : > { %v3629_v12 = vadd.f32 1e-05, %v3625_v10  ;;  %v9360_v32 = vpack.c.bf16 %v7776_v8, %v7775_v15  ;;  %v7777_v10 = vld [vmem:[%s12284_s4 + $0x90] sm:$0xff] }
0x152e   : > { %10049 = vrsqrt.f32 %v3630_v11  ;;  %v7778_v11 = vld [vmem:[%s12284_s4 + $0x98] sm:$0xff] }
0x152f   : > { %10051 = vrsqrt.f32 %v3629_v12  ;;  %v9366_v12 = vpack.c.bf16 %v7778_v11, %v7777_v10 }
0x1530   : > { %v10046_v13 = vpop.eup %10045 }
0x1531   : > { %v10048_v17 = vpop.eup %10047  ;;  %v3636_v20 = vmul.f32 %v10046_v13, %v3604_v9 }
0x1532   : > { %v3635_v59 = vmul.f32 %v10048_v17, %v3603_v21 }
0x1533   : > { %v3646_v45 = vmul.f32 %v7743_v63, %v3636_v20 }
0x1534   : > { %v3645_v16 = vmul.f32 %v7743_v63, %v3635_v59 }
0x1535   : > { %v3656_v28 = vadd.f32 %v7744_v6, %v3646_v45 }
0x1536   : > { %v3655_v56 = vadd.f32 %v7744_v6, %v3645_v16 }
0x1538   : > { %v10050_v27 = vpop.eup %10049  ;;  %8711 = vmatprep.mubr.msk.f32.mxu1 %vm640_vm0, %v3655_v56 }
0x1539   : > { %v10052_v40 = vpop.eup %10051  ;;  %8712 = vmatmul.mubr.msk.f32.vlgmr.msra.gmra.mrb[54].mxu1 %vm640_vm0, %v3656_v28  ;;  %v3638_v51 = vmul.f32 %v10050_v27, %v3606_v1 }
0x153a   : > { %v3637_v23 = vmul.f32 %v10052_v40, %v3605_v18  ;;  %v7758_v18 = vld [vmem:[%s12238_s15] ss:$0 sm:$0xff] }
0x153b   : > { %v3648_v39 = vmul.f32 %v7743_v63, %v3638_v51 }
0x153c   : > { %v3647_v2 = vmul.f32 %v7743_v63, %v3637_v23 }
0x153d   : > { %v3658_v29 = vadd.f32 %v7744_v6, %v3648_v39 }
0x153e   : > { %v3657_v58 = vadd.f32 %v7744_v6, %v3647_v2 }
0x1540   : > { %8714 = vmatprep.mubr.msk.f32.mxu1 %vm640_vm0, %v3657_v58 }
0x1541   : > { %8715 = vmatmul.mubr.msk.f32.gmra.mrb[56].mxu1 %vm640_vm0, %v3658_v29 }
0x160c   : > { %v8713_v46 = vpop.f32.mrb[54].mxu1 }
0x160d   : > { %v3782_v9 = vadd.f32 %v8713_v46, %v7745_v54  ;;  %v3776_v21 = vpop.f32.mrb[55].mxu1 }
0x160e   : > { %v3777_v24 = vadd.f32 %v7745_v54, %v3776_v21  ;;  %v7780_v21 = vld [vmem:[%s12284_s4 + $0xa8] sm:$0xff] }
0x160f   : > { %v3796_v34 = vmax.f32 %v3782_v9, 0.0  ;;  %v7779_v9 = vld [vmem:[%s12284_s4 + $0xa0] sm:$0xff] }
0x1610   : > { %v3795_v14 = vmax.f32 %v3777_v24, 0.0  ;;  %v9372_v24 = vpack.c.bf16 %v7780_v21, %v7779_v9  ;;  %v11399_v9 = vld [vmem:[%s12291_s25 + $0x8] sm:$0xff] }
0x1612   : > { %8725 = vmatprep.mubr.msk.f32.mxu0 %vm3810_vm13, %v3795_v14  ;;  %v7781_v14 = vld [vmem:[%s12284_s4 + $0xb0] sm:$0xff] }
0x1613   : > { %8726 = vmatmul.mubr.msk.f32.vlgmr.msra.gmra.mrb[28].mxu0 %vm3810_vm13, %v3796_v34  ;;  %v7782_v34 = vld [vmem:[%s12284_s4 + $0xb8] sm:$0xff]  ;;  %s12319_s4 = sld [smem:[#allocation11_spill]] }
0x1614   : > { %v8716_v31 = vpop.f32.mrb[56].mxu1  ;;  %9353 = vmatpush3.bf16.xpose.msk.msra.mxu0 %vm10363_vm1, %v9348_v7 }
0x1615   : > { %v3792_v35 = vadd.f32 %v8716_v31, %v7745_v54  ;;  %v3786_v36 = vpop.f32.mrb[57].mxu1  ;;  %9356 = vmatprep.subr.msk.bf16.mxu0 %vm10363_vm1, %v9354_v26  ;;  %v9378_v31 = vpack.c.bf16 %v7782_v34, %v7781_v14  ;;  %v11405_v14 = vld [vmem:[%s12291_s25] sm:$0xff] }
0x1616   : > { %v3787_v37 = vadd.f32 %v7745_v54, %v3786_v36 }
0x1617   : > { %v3798_v1 = vmax.f32 %v3792_v35, 0.0 }
0x1618   : > { %v3797_v33 = vmax.f32 %v3787_v37, 0.0 }
0x161a   : > { %8728 = vmatprep.mubr.msk.f32.mxu0 %vm3810_vm13, %v3797_v33 }
0x161b   : > { %8729 = vmatmul.mubr.msk.f32.gmra.mrb[30].mxu0 %vm3810_vm13, %v3798_v1 }
0x161c   : > { %9359 = vmatpush3.bf16.xpose.msk.msra.mxu0 %vm10363_vm1, %v9354_v26 }
0x161d   : > { %9362 = vmatprep.subr.msk.bf16.mxu0 %vm10363_vm1, %v9360_v32 }
0x1624   : > { %9365 = vmatpush3.bf16.xpose.msk.msra.mxu0 %vm10363_vm1, %v9360_v32  ;;  %v7784_v32 = vld [vmem:[%s12228_s5 + $0x1] ss:$0 sm:$0xff] }
0x1625   : > { %9368 = vmatprep.subr.msk.bf16.mxu0 %vm10363_vm1, %v9366_v12 }
0x162c   : > { %9371 = vmatpush3.bf16.xpose.msk.msra.mxu0 %vm10363_vm1, %v9366_v12 }
0x162d   : > { %9374 = vmatprep.subr.msk.bf16.mxu0 %vm10363_vm1, %v9372_v24 }
0x1634   : > { %9377 = vmatpush3.bf16.xpose.msk.msra.mxu0 %vm10363_vm1, %v9372_v24 }
0x1635   : > { %9380 = vmatprep.subr.msk.bf16.mxu0 %vm10363_vm1, %v9378_v31 }
0x163c   : > { %9383 = vmatpush3.bf16.xpose.msk.msra.mxu0 %vm10363_vm1, %v9378_v31 }
0x16e6   : > { %v8727_v22 = vpop.f32.mrb[28].mxu0 }
0x16e7   : > { %v3907_v42 = vadd.f32 %v8727_v22, %v7758_v18  ;;  %v3901_v41 = vpop.f32.mrb[29].mxu0 }
0x16e8   : > { %v3902_v43 = vadd.f32 %v7758_v18, %v3901_v41 }
0x16e9   : > { %v3921_v44 = vadd.f32 %v3907_v42, %v3656_v28 }
0x16ea   : > { %v3920_v52 = vadd.f32 %v3902_v43, %v3655_v56 }
0x16eb   : > { %v3931_v53 = vsel %vm640_vm0, %v3921_v44, 0.0 }
0x16ec   : > { %3932 = vadd.xlane.f32.xlu1 %v3931_v53  ;;  %v3928_v60 = vsel %vm640_vm0, %v3920_v52, 0.0 }
0x16ed   : > { %3929 = vadd.xlane.f32.xlu0 %v3928_v60  ;;  %v7769_v60 = vld [vmem:[%s12239_s16 + $0x2] ss:$0 sm:$0xff] }
0x16ee   : > { %v8730_v61 = vpop.f32.mrb[30].mxu0 }
0x16ef   : > { %v3917_v47 = vadd.f32 %v8730_v61, %v7758_v18  ;;  %v3911_v62 = vpop.f32.mrb[31].mxu0 }
0x16f0   : > { %v3912_v48 = vadd.f32 %v7758_v18, %v3911_v62 }
0x16f1   : > { %v3923_v50 = vadd.f32 %v3917_v47, %v3658_v29 }
0x16f2   : > { %v3922_v49 = vadd.f32 %v3912_v48, %v3657_v58  ;;  %v7770_v48 = vld [vmem:[%s12240_s17 + $0x2] ss:$0 sm:$0xff] }
0x16f3   : > { %v3937_v57 = vsel %vm2063_vm11, %v3923_v50, 0.0 }
0x16f4   : > { %3938 = vadd.xlane.f32.xlu1 %v3937_v57  ;;  %v3934_v25 = vsel %vm640_vm0, %v3922_v49, 0.0 }
0x16f5   : > { %3935 = vadd.xlane.f32.xlu0 %v3934_v25 }
0x1779   : > { %v3933_v13 = vpop.xlane.xlu1 %3932 }
0x177a   : > { %v3941_v63 = vmul.f32 0.03125, %v3933_v13  ;;  %v3930_v17 = vpop.xlane.xlu0 %3929 }
0x177b   : > { %v3940_v20 = vmul.f32 0.03125, %v3930_v17 }
0x177c   : > { %v3945_v59 = vsub.f32 %v3921_v44, %v3941_v63 }
0x177d   : > { %v3944_v6 = vsub.f32 %v3920_v52, %v3940_v20 }
0x177e   : > { %v3949_v45 = vmul.f32 %v3945_v59, %v3945_v59 }
0x177f   : > { %v3948_v16 = vmul.f32 %v3944_v6, %v3944_v6 }
0x1780   : > { %v3955_v56 = vsel %vm640_vm0, %v3949_v45, 0.0 }
0x1781   : > { %3956 = vadd.xlane.f32.xlu1 %v3955_v56  ;;  %v3939_v28 = vpop.xlane.xlu1 %3938  ;;  %v3952_v27 = vsel %vm640_vm0, %v3948_v16, 0.0 }
0x1782   : > { %v3943_v40 = vmul.f32 0.03125, %v3939_v28  ;;  %3953 = vadd.xlane.f32.xlu0 %v3952_v27  ;;  %v3936_v51 = vpop.xlane.xlu0 %3935 }
0x1783   : > { %v3942_v23 = vmul.f32 0.03125, %v3936_v51 }
0x1784   : > { %v3947_v39 = vsub.f32 %v3923_v50, %v3943_v40 }
0x1785   : > { %v3946_v2 = vsub.f32 %v3922_v49, %v3942_v23 }
0x1786   : > { %v3951_v58 = vmul.f32 %v3947_v39, %v3947_v39 }
0x1787   : > { %v3950_v29 = vmul.f32 %v3946_v2, %v3946_v2 }
0x1788   : > { %v3961_v54 = vsel %vm2063_vm11, %v3951_v58, 0.0 }
0x1789   : > { %3962 = vadd.xlane.f32.xlu1 %v3961_v54  ;;  %v3958_v46 = vsel %vm640_vm0, %v3950_v29, 0.0 }
0x178a   : > { %3959 = vadd.xlane.f32.xlu0 %v3958_v46 }
0x180e   : > { %v3957_v35 = vpop.xlane.xlu1 %3956 }
0x180f   : > { %v3965_v36 = vmul.f32 0.03125, %v3957_v35  ;;  %v3954_v37 = vpop.xlane.xlu0 %3953 }
0x1810   : > { %v3964_v33 = vmul.f32 0.03125, %v3954_v37  ;;  %v11413_v37 = vld [vmem:[%s12291_s25 + $0x18] sm:$0x7] }
0x1811   : > { %v3969_v1 = vadd.f32 1e-05, %v3965_v36 }
0x1812   : > { %v3968_v18 = vadd.f32 1e-05, %v3964_v33 }
0x1813   : > { %10053 = vrsqrt.f32 %v3969_v1 }
0x1814   : > { %10055 = vrsqrt.f32 %v3968_v18  ;;  %v11419_v18 = vld [vmem:[%s12291_s25 + $0x10] sm:$0xff] }
0x1816   : > { %v3963_v22 = vpop.xlane.xlu1 %3962 }
0x1817   : > { %v3967_v42 = vmul.f32 0.03125, %v3963_v22  ;;  %v3960_v41 = vpop.xlane.xlu0 %3959 }
0x1818   : > { %v3966_v43 = vmul.f32 0.03125, %v3960_v41 }
0x1819   : > { %v3971_v44 = vadd.f32 1e-05, %v3967_v42 }
0x181a   : > { %v3970_v52 = vadd.f32 1e-05, %v3966_v43 }
0x181b   : > { %10057 = vrsqrt.f32 %v3971_v44 }
0x181c   : > { %10059 = vrsqrt.f32 %v3970_v52 }
0x181d   : > { %v10054_v53 = vpop.eup %10053 }
0x181e   : > { %v10056_v61 = vpop.eup %10055  ;;  %v3977_v47 = vmul.f32 %v10054_v53, %v3945_v59 }
0x181f   : > { %v3976_v62 = vmul.f32 %v10056_v61, %v3944_v6 }
0x1820   : > { %v3987_v50 = vmul.f32 %v7769_v60, %v3977_v47 }
0x1821   : > { %v3986_v49 = vmul.f32 %v7769_v60, %v3976_v62 }
0x1822   : > { %v11347_v25 = vadd.f32 %v7770_v48, %v3987_v50 }
0x1823   : > { %v11345_v57 = vadd.f32 %v7770_v48, %v3986_v49 }
0x1825   : > { %v10058_v0 = vpop.eup %10057  ;;  %8755 = vmatprep.mubr.msk.f32.mxu0 %vm640_vm0, %v11345_v57 }
0x1826   : > { %v10060_v3 = vpop.eup %10059  ;;  %8756 = vmatmul.mubr.msk.f32.vlgmr.msra.gmra.mrb[32].mxu0 %vm640_vm0, %v11347_v25  ;;  %v3979_v5 = vmul.f32 %v10058_v0, %v3947_v39 }
0x1827   : > { %v3978_v7 = vmul.f32 %v10060_v3, %v3946_v2 }
0x1828   : > { %v3989_v55 = vmul.f32 %v7769_v60, %v3979_v5 }
0x1829   : > { %v3988_v26 = vmul.f32 %v7769_v60, %v3978_v7 }
0x182a   : > { %v11355_v8 = vadd.f32 %v7770_v48, %v3989_v55 }
0x182b   : > { %v11353_v15 = vadd.f32 %v7770_v48, %v3988_v26 }
0x182d   : > { %8758 = vmatprep.mubr.msk.f32.mxu0 %vm640_vm0, %v11353_v15 }
0x182e   : > { %8759 = vmatmul.mubr.msk.f32.gmra.mrb[34].mxu0 %vm640_vm0, %v11355_v8 }
0x18f9   : > { %v8757_v10 = vpop.f32.mrb[32].mxu0 }
0x18fa   : > { %v4141_v11 = vadd.f32 %v8757_v10, %v7784_v32  ;;  %v4135_v12 = vpop.f32.mrb[33].mxu0 }
0x18fb   : > { %v4136_v13 = vadd.f32 %v7784_v32, %v4135_v12 }
0x18fc   : > { %v11384_v58 = vmul.f32 0.35355338, %v4141_v11 }
0x18fd   : > { %v11364_v63 = vpack.i.bf16 %v4141_v11, %v4136_v13  ;;  %v11366_v17 = vmul.f32 0.35355338, %v4136_v13 }
0x18ff   : > { %9795 = vrot.lane.b32.xlu0 %v11364_v63, %s12309_s28  ;;  %8769 = vmatprep.mubr.msk.f32.mxu1 %vm795_vm2, %v11366_v17 }
0x1901   : > { %v8760_v20 = vpop.f32.mrb[34].mxu0 }
0x1902   : > { %v4151_v59 = vadd.f32 %v8760_v20, %v7784_v32  ;;  %v4145_v6 = vpop.f32.mrb[35].mxu0 }
0x1903   : > { %v4146_v45 = vadd.f32 %v7784_v32, %v4145_v6 }
0x1904   : > { %v11392_v54 = vmul.f32 0.35355338, %v4151_v59 }
0x1905   : > { %v11372_v16 = vpack.i.bf16 %v4151_v59, %v4146_v45  ;;  %v11386_v29 = vmul.f32 0.35355338, %v4146_v45 }
0x1907   : > { %9800 = vrot.lane.b32.xlu1 %v11372_v16, %s12309_s28 }
0x1971   : > { %v9796_v56 = vpop.permute.xlu0 %9795 }
0x1972   : > { %v9798_v28 = vunpack.i.h.bf16 %v9796_v56  ;;  %v9797_v27 = vunpack.i.l.bf16 %v9796_v56 }
0x1974   : > { %v9384_v40 = vpack.c.bf16 %v9798_v28, %v9797_v27 }
0x1976   : > { %9386 = vmatprep.subr.msk.bf16.mxu1 %vm10453_vm3, %v9384_v40 }
0x1977   : > { %9389 = vmatpush3.bf16.xpose.msk.msra.mxu1 %vm10453_vm3, %v9384_v40 }
0x1979   : > { %v9801_v51 = vpop.permute.xlu1 %9800 }
0x197a   : > { %v9803_v23 = vunpack.i.h.bf16 %v9801_v51  ;;  %v9802_v39 = vunpack.i.l.bf16 %v9801_v51 }
0x197c   : > { %v9390_v2 = vpack.c.bf16 %v9803_v23, %v9802_v39 }
0x197e   : > { %9392 = vmatprep.subr.msk.bf16.mxu1 %vm10453_vm3, %v9390_v2 }
0x197f   : > { %9395 = vmatpush3.bf16.xpose.msk.msra.mxu1 %vm10453_vm3, %v9390_v2 }
0x1986   : > { %8770 = vmatmul.mubr.msk.f32.vlgmr.msra.gmra.mrb[58].mxu1 %vm795_vm2, %v11384_v58 }
0x1987   : > { %8772 = vmatprep.mubr.msk.f32.mxu1 %vm795_vm2, %v11386_v29 }
0x198a   : > { %8773 = vmatmul.mubr.msk.f32.gmra.mrb[60].mxu1 %vm795_vm2, %v11392_v54 }
0x1a59   : > { %v8771_v46 = vpop.f32.mrb[58].mxu1 }
0x1a5a   : > { %v4269_v21 = vadd.f32 %v11399_v9, %v8771_v46  ;;  %v4263_v24 = vpop.f32.mrb[59].mxu1 }
0x1a5b   : > { %v4264_v34 = vadd.f32 %v11405_v14, %v4263_v24 }
0x1a5c   : > { %v4285_v31 = vsel %vm901_vm4, %v4269_v21, -inf }
0x1a5d   : > { %4286 = vmax.xlane.f32.xlu0 %v4285_v31  ;;  %v8774_v35 = vpop.f32.mrb[60].mxu1  ;;  %v4282_v36 = vsel %vm901_vm4, %v4264_v34, -inf }
0x1a5e   : > { %v4279_v33 = vadd.f32 %v11413_v37, %v8774_v35  ;;  %4283 = vmax.xlane.f32.xlu1 %v4282_v36  ;;  %v4273_v1 = vpop.f32.mrb[61].mxu1 }
0x1a5f   : > { %v4274_v22 = vadd.f32 %v11419_v18, %v4273_v1 }
0x1a60   : > { %v4291_v42 = vsel %vm911_vm5, %v4279_v33, -inf }
0x1a61   : > { %v4288_v41 = vsel %vm901_vm4, %v4274_v22, -inf }
0x1a62   : > { %4292 = vmax.xlane.f32.xlu1 %v4291_v42  ;;  %4289 = vmax.xlane.f32.xlu0 %v4288_v41 }
0x1a73   : > { %9810 = vrot.lane.b32.xlu1 %v11372_v16, %s12310_s3 }
0x1a77   : > { %9815 = vrot.lane.b32.xlu1 %v11364_v63, %s12299_s26 }
0x1a78   : > { %9805 = vrot.lane.b32.xlu0 %v11364_v63, %s12310_s3 }
0x1aea   : > { %v4287_v43 = vpop.xlane.xlu0 %4286 }
0x1aeb   : > { %v4295_v44 = vsub.f32 %v4269_v21, %v4287_v43  ;;  %v4284_v52 = vpop.xlane.xlu1 %4283 }
0x1aec   : > { %v4294_v53 = vsub.f32 %v4264_v34, %v4284_v52 }
0x1aed   : > { %v4300_v60 = vmul.f32 1.442695, %v4295_v44 }
0x1aee   : > { %v4298_v61 = vmul.f32 1.442695, %v4294_v53 }
0x1aef   : > { %10061 = vpow2.f32 %v4300_v60  ;;  %v4293_v47 = vpop.xlane.xlu1 %4292  ;;  %v4290_v62 = vpop.xlane.xlu0 %4289 }
0x1af0   : > { %10063 = vpow2.f32 %v4298_v61  ;;  %v4297_v6 = vsub.f32 %v4279_v33, %v4293_v47  ;;  %v4296_v45 = vsub.f32 %v4274_v22, %v4290_v62 }
0x1af2   : > { %v4304_v56 = vmul.f32 1.442695, %v4297_v6  ;;  %v4302_v28 = vmul.f32 1.442695, %v4296_v45 }
0x1af3   : > { %v9811_v48 = vpop.permute.xlu1 %9810  ;;  %v9806_v50 = vpop.permute.xlu0 %9805 }
0x1af4   : > { %v9808_v49 = vunpack.i.h.bf16 %v9806_v50  ;;  %v9813_v0 = vunpack.i.h.bf16 %v9811_v48  ;;  %v9812_v3 = vunpack.i.l.bf16 %v9811_v48  ;;  %v9807_v5 = vunpack.i.l.bf16 %v9806_v50 }
0x1af5   : > { %10065 = vpow2.f32 %v4304_v56 }
0x1af6   : > { %v9396_v55 = vpack.c.bf16 %v9808_v49, %v9807_v5  ;;  %v9400_v32 = vpack.c.bf16 %v9813_v0, %v9812_v3  ;;  %10067 = vpow2.f32 %v4302_v28 }
0x1af7   : > { %v9816_v7 = vpop.permute.xlu1 %9815 }
0x1af8   : > { %v9818_v10 = vunpack.i.h.bf16 %v9816_v7  ;;  %v9817_v11 = vunpack.i.l.bf16 %v9816_v7  ;;  %9397 = vmatprep.subr.bf16.mxu1 %v9396_v55 }
0x1af9   : > { %v10062_v26 = vpop.eup %10061  ;;  %9399 = vmatpush3.bf16.msra.mxu1 %v9396_v55 }
0x1afa   : > { %v10064_v12 = vpop.eup %10063  ;;  %v4309_v13 = vsel %vm901_vm4, %v10062_v26, 0.0  ;;  %9402 = vmatprep.subr.msk.bf16.mxu1 %vm10532_vm8, %v9400_v32  ;;  %v9406_v59 = vpack.c.bf16 %v9818_v10, %v9817_v11 }
0x1afb   : > { %4310 = vadd.xlane.f32.xlu1 %v4309_v13  ;;  %v4306_v20 = vsel %vm901_vm4, %v10064_v12, 0.0 }
0x1afc   : > { %4307 = vadd.xlane.f32.xlu0 %v4306_v20 }
0x1afd   : > { %9405 = vmatpush3.bf16.msk.msra.mxu1 %vm10532_vm8, %v9400_v32 }
0x1afe   : > { %9408 = vmatprep.subr.msk.bf16.mxu1 %vm10453_vm3, %v9406_v59 }
0x1aff   : > { %v10066_v27 = vpop.eup %10065 }
0x1b00   : > { %v10068_v40 = vpop.eup %10067  ;;  %v4315_v51 = vsel %vm911_vm5, %v10066_v27, 0.0 }
0x1b01   : > { %v4312_v23 = vsel %vm901_vm4, %v10068_v40, 0.0 }
0x1b0c   : > { %9825 = vrot.lane.b32.xlu1 %v11364_v63, %s12300_s24 }
0x1b12   : > { %9820 = vrot.lane.b32.xlu0 %v11372_v16, %s12299_s26 }
0x1b30   : > { %4316 = vadd.xlane.f32.xlu1 %v4315_v51 }
0x1b31   : > { %4313 = vadd.xlane.f32.xlu0 %v4312_v23 }
0x1b41   : > { %4438 = vrot.lane.b32.xlu1 %v11384_v58, %s12296_s20 }
0x1b45   : > { %4440 = vrot.lane.b32.xlu1 %v11386_v29, %s12296_s20 }
0x1b47   : > { %4436 = vrot.lane.b32.xlu0 %v11366_v17, %s12296_s20 }
0x1b49   : > { %4707 = vrot.lane.b32.xlu1 %v11366_v17, %s12297_s21 }
0x1b4b   : > { %9830 = vrot.lane.b32.xlu0 %v11372_v16, %s12300_s24 }
0x1b4d   : > { %4711 = vrot.lane.b32.xlu1 %v11386_v29, %s12297_s21 }
0x1b4f   : > { %4442 = vrot.lane.b32.xlu0 %v11392_v54, %s12296_s20 }
0x1b53   : > { %4709 = vrot.lane.b32.xlu0 %v11384_v58, %s12297_s21 }
0x1b57   : > { %4713 = vrot.lane.b32.xlu0 %v11392_v54, %s12297_s21 }
0x1b88   : > { %v4311_v39 = vpop.xlane.xlu1 %4310 }
0x1b89   : > { %10069 = vrcp.f32 %v4311_v39  ;;  %v4308_v2 = vpop.xlane.xlu0 %4307 }
0x1b8a   : > { %10071 = vrcp.f32 %v4308_v2 }
0x1b8c   : > { %v9826_v46 = vpop.permute.xlu1 %9825 }
0x1b8d   : > { %v9828_v21 = vunpack.i.h.bf16 %v9826_v46  ;;  %v9827_v24 = vunpack.i.l.bf16 %v9826_v46  ;;  %v9821_v31 = vpop.permute.xlu0 %9820 }
0x1b8e   : > { %v9823_v33 = vunpack.i.h.bf16 %v9821_v31  ;;  %v9822_v1 = vunpack.i.l.bf16 %v9821_v31 }
0x1b8f   : > { %v9428_v34 = vpack.c.bf16 %v9828_v21, %v9827_v24 }
0x1b90   : > { %v9412_v41 = vpack.c.bf16 %v9823_v33, %v9822_v1 }
0x1b91   : > { %9430 = vmatprep.subr.msk.bf16.mxu0 %vm10453_vm3, %v9428_v34 }
0x1b92   : > { %9433 = vmatpush3.bf16.xpose.msk.msra.mxu0 %vm10453_vm3, %v9428_v34 }
0x1b93   : > { %v10070_v35 = vpop.eup %10069 }
0x1b94   : > { %v10072_v36 = vpop.eup %10071  ;;  %v4323_v42 = vmul.f32 %v10070_v35, %v10062_v26 }
0x1b95   : > { %v4322_v22 = vmul.f32 %v10072_v36, %v10064_v12 }
0x1b97   : > { %8783 = vmatprep.mubr.msk.f32.mxu1 %vm901_vm4, %v4322_v22 }
0x1b98   : > { %8784 = vmatmul.mubr.msk.f32.vlgmr.msra.gmra.mrb[62].mxu1 %vm901_vm4, %v4323_v42 }
0x1b99   : > { %9411 = vmatpush3.bf16.xpose.msk.msra.mxu1 %vm10453_vm3, %v9406_v59 }
0x1b9a   : > { %9414 = vmatprep.subr.msk.bf16.mxu1 %vm10453_vm3, %v9412_v41 }
0x1ba1   : > { %9417 = vmatpush3.bf16.xpose.msk.msra.mxu1 %vm10453_vm3, %v9412_v41 }
0x1bbd   : > { %v4317_v43 = vpop.xlane.xlu1 %4316 }
0x1bbe   : > { %10073 = vrcp.f32 %v4317_v43  ;;  %v4314_v44 = vpop.xlane.xlu0 %4313 }
0x1bbf   : > { %10075 = vrcp.f32 %v4314_v44 }
0x1bc1   : > { %v4439_v52 = vpop.permute.xlu1 %4438 }
0x1bc2   : > { %v4437_v53 = vpop.permute.xlu0 %4436 }
0x1bc5   : > { %v4441_v60 = vpop.permute.xlu1 %4440 }
0x1bc6   : > { %v9831_v61 = vpop.permute.xlu0 %9830 }
0x1bc7   : > { %v9833_v47 = vunpack.i.h.bf16 %v9831_v61  ;;  %v9832_v62 = vunpack.i.l.bf16 %v9831_v61 }
0x1bc8   : > { %v10074_v48 = vpop.eup %10073 }
0x1bc9   : > { %v10076_v50 = vpop.eup %10075  ;;  %v9434_v49 = vpack.c.bf16 %v9833_v47, %v9832_v62  ;;  %v4708_v0 = vpop.permute.xlu1 %4707  ;;  %v4325_v7 = vmul.f32 %v10074_v48, %v10066_v27 }
0x1bca   : > { %8825 = vmatprep.mubr.msk.f32.mxu0 %vm795_vm2, %v4708_v0  ;;  %v4443_v3 = vpop.permute.xlu0 %4442  ;;  %v4324_v5 = vmul.f32 %v10076_v50, %v10068_v40 }
0x1bcb   : > { %9436 = vmatprep.subr.msk.bf16.mxu0 %vm10453_vm3, %v9434_v49 }
0x1bcc   : > { %8786 = vmatprep.mubr.msk.f32.mxu1 %vm901_vm4, %v4324_v5  ;;  %9439 = vmatpush3.bf16.xpose.msk.msra.mxu0 %vm10453_vm3, %v9434_v49 }
0x1bcd   : > { %8787 = vmatmul.mubr.msk.f32.gmra.mrb[64].mxu1 %vm901_vm4, %v4325_v7  ;;  %v4712_v26 = vpop.permute.xlu1 %4711 }
0x1bce   : > { %8797 = vmatprep.mubr.msk.f32.mxu1 %vm795_vm2, %v4437_v53  ;;  %v4710_v55 = vpop.permute.xlu0 %4709 }
0x1bd1   : > { %8798 = vmatmul.mubr.msk.f32.vlgmr.msra.gmra.mrb[66].mxu1 %vm795_vm2, %v4439_v52 }
0x1bd2   : > { %8800 = vmatprep.mubr.msk.f32.mxu1 %vm795_vm2, %v4441_v60  ;;  %v4714_v32 = vpop.permute.xlu0 %4713 }
0x1bd3   : > { %8826 = vmatmul.mubr.msk.f32.vlgmr.msra.gmra.mrb[36].mxu0 %vm795_vm2, %v4710_v55 }
0x1bd4   : > { %8828 = vmatprep.mubr.msk.f32.mxu0 %vm795_vm2, %v4712_v26 }
0x1bd5   : > { %8801 = vmatmul.mubr.msk.f32.gmra.mrb[68].mxu1 %vm795_vm2, %v4443_v3 }
0x1bd7   : > { %8829 = vmatmul.mubr.msk.f32.gmra.mrb[38].mxu0 %vm795_vm2, %v4714_v32 }
0x1c6b   : > { %v11488_v10 = vpop.f32.mrb[62].mxu1 }
0x1c6c   : > { %v11490_v11 = vpop.f32.mrb[63].mxu1 }
0x1ca0   : > { %v11492_v12 = vpop.f32.mrb[64].mxu1 }
0x1ca1   : > { %v11494_v13 = vpop.f32.mrb[65].mxu1 }
0x1ca4   : > { %v8799_v20 = vpop.f32.mrb[66].mxu1 }
0x1ca5   : > { %v4540_v59 = vadd.f32 %v11399_v9, %v8799_v20  ;;  %v4534_v6 = vpop.f32.mrb[67].mxu1 }
0x1ca6   : > { %v4535_v45 = vadd.f32 %v11405_v14, %v4534_v6  ;;  %v8827_v56 = vpop.f32.mrb[36].mxu0 }
0x1ca7   : > { %v4805_v28 = vpop.f32.mrb[37].mxu0  ;;  %v4556_v27 = vsel %vm901_vm4, %v4540_v59, -inf  ;;  %v4811_v34 = vadd.f32 %v11399_v9, %v8827_v56 }
0x1ca8   : > { %4557 = vmax.xlane.f32.xlu0 %v4556_v27  ;;  %v8802_v40 = vpop.f32.mrb[68].mxu1  ;;  %v4553_v51 = vsel %vm901_vm4, %v4535_v45, -inf  ;;  %v4806_v31 = vadd.f32 %v11405_v14, %v4805_v28 }
0x1ca9   : > { %v4550_v23 = vadd.f32 %v11413_v37, %v8802_v40  ;;  %v4544_v39 = vpop.f32.mrb[69].mxu1  ;;  %4554 = vmax.xlane.f32.xlu1 %v4553_v51  ;;  %v4827_v22 = vsel %vm901_vm4, %v4811_v34, -inf }
0x1caa   : > { %v4545_v2 = vadd.f32 %v11419_v18, %v4544_v39  ;;  %v8830_v46 = vpop.f32.mrb[38].mxu0  ;;  %v4824_v1 = vsel %vm901_vm4, %v4806_v31, -inf }
0x1cab   : > { %v4815_v21 = vpop.f32.mrb[39].mxu0  ;;  %v4562_v24 = vsel %vm911_vm5, %v4550_v23, -inf  ;;  %v4821_v36 = vadd.f32 %v11413_v37, %v8830_v46 }
0x1cac   : > { %v4559_v35 = vsel %vm901_vm4, %v4545_v2, -inf  ;;  %v4816_v33 = vadd.f32 %v11419_v18, %v4815_v21 }
0x1cad   : > { %4560 = vmax.xlane.f32.xlu0 %v4559_v35  ;;  %4563 = vmax.xlane.f32.xlu1 %v4562_v24  ;;  %v4833_v41 = vsel %vm911_vm5, %v4821_v36, -inf }
0x1cae   : > { %v4830_v42 = vsel %vm901_vm4, %v4816_v33, -inf }
0x1cb1   : > { %4825 = vmax.xlane.f32.xlu0 %v4824_v1  ;;  %4828 = vmax.xlane.f32.xlu1 %v4827_v22 }
0x1cb5   : > { %4831 = vmax.xlane.f32.xlu0 %v4830_v42  ;;  %4834 = vmax.xlane.f32.xlu1 %v4833_v41 }
0x1d35   : > { %v4558_v43 = vpop.xlane.xlu0 %4557 }
0x1d36   : > { %v4555_v44 = vpop.xlane.xlu1 %4554  ;;  %v4566_v56 = vsub.f32 %v4540_v59, %v4558_v43 }
0x1d37   : > { %v4565_v20 = vsub.f32 %v4535_v45, %v4555_v44 }
0x1d38   : > { %v4571_v51 = vmul.f32 1.442695, %v4566_v56 }
0x1d39   : > { %v4569_v27 = vmul.f32 1.442695, %v4565_v20 }
0x1d3a   : > { %v4561_v52 = vpop.xlane.xlu0 %4560  ;;  %v4564_v53 = vpop.xlane.xlu1 %4563 }
0x1d3b   : > { %v4567_v40 = vsub.f32 %v4545_v2, %v4561_v52  ;;  %v4568_v39 = vsub.f32 %v4550_v23, %v4564_v53 }
0x1d3d   : > { %v4573_v46 = vmul.f32 1.442695, %v4567_v40  ;;  %v4575_v21 = vmul.f32 1.442695, %v4568_v39 }
0x1d3e   : > { %v4826_v60 = vpop.xlane.xlu0 %4825  ;;  %v4829_v61 = vpop.xlane.xlu1 %4828 }
0x1d3f   : > { %v4836_v47 = vsub.f32 %v4806_v31, %v4826_v60  ;;  %v4837_v62 = vsub.f32 %v4811_v34, %v4829_v61 }
0x1d41   : > { %v4840_v48 = vmul.f32 1.442695, %v4836_v47  ;;  %v4842_v50 = vmul.f32 1.442695, %v4837_v62 }
0x1d42   : > { %v4835_v7 = vpop.xlane.xlu1 %4834  ;;  %v4832_v55 = vpop.xlane.xlu0 %4831 }
0x1d43   : > { %10077 = vpow2.f32 %v4840_v48  ;;  %v4839_v26 = vsub.f32 %v4821_v36, %v4835_v7  ;;  %v4838_v32 = vsub.f32 %v4816_v33, %v4832_v55 }
0x1d44   : > { %10079 = vpow2.f32 %v4842_v50 }
0x1d45   : > { %v4846_v6 = vmul.f32 1.442695, %v4839_v26  ;;  %v4844_v28 = vmul.f32 1.442695, %v4838_v32 }
0x1d47   : > { %10081 = vpow2.f32 %v4846_v6 }
0x1d48   : > { %10083 = vpow2.f32 %v4844_v28 }
0x1d49   : > { %10085 = vpow2.f32 %v4569_v27 }
0x1d4a   : > { %10087 = vpow2.f32 %v4571_v51 }
0x1d4b   : > { %10089 = vpow2.f32 %v4573_v46 }
0x1d4c   : > { %10091 = vpow2.f32 %v4575_v21 }
0x1d4d   : > { %v11512_v49 = vpop.eup %10077 }
0x1d4e   : > { %v11514_v0 = vpop.eup %10079  ;;  %v4848_v3 = vsel %vm901_vm4, %v11512_v49, 0.0 }
0x1d4f   : > { %4849 = vadd.xlane.f32.xlu0 %v4848_v3  ;;  %v4851_v5 = vsel %vm901_vm4, %v11514_v0, 0.0 }
0x1d50   : > { %4852 = vadd.xlane.f32.xlu1 %v4851_v5 }
0x1d51   : > { %v11524_v24 = vpop.eup %10081 }
0x1d52   : > { %v11526_v34 = vpop.eup %10083  ;;  %v4857_v59 = vsel %vm911_vm5, %v11524_v24, 0.0 }
0x1d53   : > { %v10086_v45 = vpop.eup %10085  ;;  %v4854_v2 = vsel %vm901_vm4, %v11526_v34, 0.0 }
0x1d54   : > { %v10088_v23 = vpop.eup %10087  ;;  %v4577_v31 = vsel %vm901_vm4, %v10086_v45, 0.0 }
0x1d55   : > { %v11533_v35 = vpop.eup %10089  ;;  %v4580_v36 = vsel %vm901_vm4, %v10088_v23, 0.0 }
0x1d56   : > { %v11536_v33 = vpop.eup %10091  ;;  %v4583_v1 = vsel %vm901_vm4, %v11533_v35, 0.0 }
0x1d57   : > { %v4586_v22 = vsel %vm911_vm5, %v11536_v33, 0.0 }
0x1d61   : > { %9840 = vrot.lane.b32.xlu1 %v11372_v16, %s12311_s10 }
0x1d65   : > { %9835 = vrot.lane.b32.xlu0 %v11364_v63, %s12311_s10 }
0x1d84   : > { %4858 = vadd.xlane.f32.xlu0 %v4857_v59 }
0x1d85   : > { %4855 = vadd.xlane.f32.xlu1 %v4854_v2 }
0x1d88   : > { %4578 = vadd.xlane.f32.xlu0 %v4577_v31 }
0x1d89   : > { %4581 = vadd.xlane.f32.xlu1 %v4580_v36 }
0x1d8c   : > { %4584 = vadd.xlane.f32.xlu0 %v4583_v1 }
0x1d8d   : > { %4587 = vadd.xlane.f32.xlu1 %v4586_v22 }
0x1d9e   : > { %9850 = vrot.lane.b32.xlu1 %v11372_v16, %s12312_s11 }
0x1da2   : > { %9855 = vrot.lane.b32.xlu1 %v11364_v63, %s12301_s30  ;;  %9845 = vrot.lane.b32.xlu0 %v11364_v63, %s12312_s11 }
0x1da6   : > { %4978 = vrot.lane.b32.xlu1 %v11366_v17, %s12298_s23  ;;  %9860 = vrot.lane.b32.xlu0 %v11372_v16, %s12301_s30 }
0x1daa   : > { %4982 = vrot.lane.b32.xlu1 %v11386_v29, %s12298_s23  ;;  %4980 = vrot.lane.b32.xlu0 %v11384_v58, %s12298_s23 }
0x1dae   : > { %4984 = vrot.lane.b32.xlu0 %v11392_v54, %s12298_s23 }
0x1ddc   : > { %v4850_v42 = vpop.xlane.xlu0 %4849 }
0x1ddd   : > { %v4853_v41 = vpop.xlane.xlu1 %4852 }
0x1de0   : > { %v9836_v43 = vpop.permute.xlu0 %9835 }
0x1de1   : > { %v9838_v44 = vunpack.i.h.bf16 %v9836_v43  ;;  %v9837_v52 = vunpack.i.l.bf16 %v9836_v43  ;;  %v9841_v53 = vpop.permute.xlu1 %9840 }
0x1de2   : > { %v9843_v60 = vunpack.i.h.bf16 %v9841_v53  ;;  %v9842_v17 = vunpack.i.l.bf16 %v9841_v53 }
0x1de3   : > { %v9418_v61 = vpack.c.bf16 %v9838_v44, %v9837_v52 }
0x1de4   : > { %v9422_v47 = vpack.c.bf16 %v9843_v60, %v9842_v17 }
0x1de5   : > { %9419 = vmatprep.subr.bf16.mxu1 %v9418_v61 }
0x1de6   : > { %9421 = vmatpush3.bf16.msra.mxu1 %v9418_v61 }
0x1de7   : > { %9424 = vmatprep.subr.msk.bf16.mxu1 %vm10532_vm8, %v9422_v47 }
0x1dea   : > { %9427 = vmatpush3.bf16.msk.msra.mxu1 %vm10532_vm8, %v9422_v47 }
0x1e11   : > { %v4859_v58 = vpop.xlane.xlu0 %4858 }
0x1e12   : > { %v4856_v29 = vpop.xlane.xlu1 %4855 }
0x1e15   : > { %v4579_v54 = vpop.xlane.xlu0 %4578 }
0x1e16   : > { %10093 = vrcp.f32 %v4579_v54  ;;  %v4582_v62 = vpop.xlane.xlu1 %4581 }
0x1e17   : > { %10095 = vrcp.f32 %v4582_v62 }
0x1e18   : > { %10097 = vrcp.f32 %v4850_v42 }
0x1e19   : > { %v4585_v48 = vpop.xlane.xlu0 %4584 }
0x1e1a   : > { %10099 = vrcp.f32 %v4585_v48  ;;  %v4588_v50 = vpop.xlane.xlu1 %4587 }
0x1e1b   : > { %10101 = vrcp.f32 %v4588_v50 }
0x1e1c   : > { %10103 = vrcp.f32 %v4853_v41 }
0x1e1d   : > { %v9846_v3 = vpop.permute.xlu0 %9845  ;;  %10105 = vrcp.f32 %v4856_v29 }
0x1e1e   : > { %v9848_v5 = vunpack.i.h.bf16 %v9846_v3  ;;  %v9847_v7 = vunpack.i.l.bf16 %v9846_v3  ;;  %v9851_v55 = vpop.permute.xlu1 %9850  ;;  %10107 = vrcp.f32 %v4859_v58 }
0x1e1f   : > { %v9853_v32 = vunpack.i.h.bf16 %v9851_v55  ;;  %v9852_v20 = vunpack.i.l.bf16 %v9851_v55 }
0x1e20   : > { %v10094_v26 = vpop.eup %10093  ;;  %v9440_v6 = vpack.c.bf16 %v9848_v5, %v9847_v7 }
0x1e21   : > { %v10096_v56 = vpop.eup %10095  ;;  %v4593_v28 = vmul.f32 %v10094_v26, %v10086_v45  ;;  %v9444_v46 = vpack.c.bf16 %v9853_v32, %v9852_v20  ;;  %v9861_v42 = vpop.permute.xlu0 %9860 }
0x1e22   : > { %v4594_v27 = vmul.f32 %v10096_v56, %v10088_v23  ;;  %v9856_v40 = vpop.permute.xlu1 %9855  ;;  %9441 = vmatprep.subr.bf16.mxu1 %v9440_v6  ;;  %v10098_v51 = vpop.eup %10097  ;;  %v9862_v43 = vunpack.i.l.bf16 %v9861_v42 }
0x1e23   : > { %8811 = vmatprep.mubr.msk.f32.mxu1 %vm901_vm4, %v4593_v28  ;;  %v9858_v21 = vunpack.i.h.bf16 %v9856_v40  ;;  %v9857_v59 = vunpack.i.l.bf16 %v9856_v40  ;;  %v4864_v36 = vmul.f32 %v10098_v51, %v11512_v49  ;;  %v9863_v49 = vunpack.i.h.bf16 %v9861_v42 }
0x1e24   : > { %v10100_v39 = vpop.eup %10099  ;;  %8812 = vmatmul.mubr.msk.f32.vlgmr.msra.gmra.mrb[70].mxu1 %vm901_vm4, %v4594_v27 }
0x1e25   : > { %v10102_v2 = vpop.eup %10101  ;;  %9443 = vmatpush3.bf16.msra.mxu1 %v9440_v6  ;;  %v4595_v31 = vmul.f32 %v10100_v39, %v11533_v35  ;;  %v9450_v22 = vpack.c.bf16 %v9858_v21, %v9857_v59  ;;  %v9456_v53 = vpack.c.bf16 %v9863_v49, %v9862_v43 }
0x1e26   : > { %9446 = vmatprep.subr.msk.bf16.mxu1 %vm10532_vm8, %v9444_v46  ;;  %v4596_v45 = vmul.f32 %v10102_v2, %v11536_v33  ;;  %v10104_v23 = vpop.eup %10103  ;;  %v4979_v52 = vpop.permute.xlu1 %4978 }
0x1e27   : > { %8814 = vmatprep.mubr.msk.f32.mxu1 %vm901_vm4, %v4595_v31  ;;  %v10106_v1 = vpop.eup %10105  ;;  %v4865_v35 = vmul.f32 %v10104_v23, %v11514_v0  ;;  %v4981_v0 = vpop.permute.xlu0 %4980 }
0x1e28   : > { %8815 = vmatmul.mubr.msk.f32.gmra.mrb[72].mxu1 %vm901_vm4, %v4596_v45  ;;  %v10108_v33 = vpop.eup %10107  ;;  %v4866_v41 = vmul.f32 %v10106_v1, %v11526_v34 }
0x1e29   : > { %9449 = vmatpush3.bf16.msk.msra.mxu1 %vm10532_vm8, %v9444_v46  ;;  %8839 = vmatprep.mubr.msk.f32.mxu1 %vm901_vm4, %v4864_v36  ;;  %v4867_v44 = vmul.f32 %v10108_v33, %v11524_v24 }
0x1e2a   : > { %9452 = vmatprep.subr.msk.bf16.mxu1 %vm10453_vm3, %v9450_v22  ;;  %v4983_v34 = vpop.permute.xlu1 %4982 }
0x1e2b   : > { %v4985_v24 = vpop.permute.xlu0 %4984 }
0x1e2c   : > { %8840 = vmatmul.mubr.msk.f32.vlgmr.msra.gmra.mrb[74].mxu1 %vm901_vm4, %v4865_v35 }
0x1e2d   : > { %8842 = vmatprep.mubr.msk.f32.mxu1 %vm901_vm4, %v4866_v41 }
0x1e30   : > { %8843 = vmatmul.mubr.msk.f32.gmra.mrb[76].mxu1 %vm901_vm4, %v4867_v44 }
0x1e31   : > { %8853 = vmatprep.mubr.msk.f32.mxu1 %vm795_vm2, %v4979_v52 }
0x1e32   : > { %9455 = vmatpush3.bf16.xpose.msk.msra.mxu1 %vm10453_vm3, %v9450_v22 }
0x1e33   : > { %9458 = vmatprep.subr.msk.bf16.mxu1 %vm10453_vm3, %v9456_v53 }
0x1e3a   : > { %9461 = vmatpush3.bf16.xpose.msk.msra.mxu1 %vm10453_vm3, %v9456_v53 }
0x1e41   : > { %8854 = vmatmul.mubr.msk.f32.vlgmr.msra.gmra.mrb[78].mxu1 %vm795_vm2, %v4981_v0 }
0x1e42   : > { %8856 = vmatprep.mubr.msk.f32.mxu1 %vm795_vm2, %v4983_v34 }
0x1e45   : > { %8857 = vmatmul.mubr.msk.f32.gmra.mrb[80].mxu1 %vm795_vm2, %v4985_v24 }
0x1ef7   : > { %v8813_v60 = vpop.f32.mrb[70].mxu1 }
0x1ef8   : > { %v4688_v17 = vpop.f32.mrb[71].mxu1 }
0x1efb   : > { %v8816_v61 = vpop.f32.mrb[72].mxu1 }
0x1efc   : > { %v4698_v47 = vpop.f32.mrb[73].mxu1 }
0x1eff   : > { %v8841_v58 = vpop.f32.mrb[74].mxu1 }
0x1f00   : > { %v4959_v29 = vpop.f32.mrb[75].mxu1 }
0x1f03   : > { %v8844_v54 = vpop.f32.mrb[76].mxu1 }
0x1f04   : > { %v4969_v62 = vpop.f32.mrb[77].mxu1 }
0x1f14   : > { %v8855_v48 = vpop.f32.mrb[78].mxu1 }
0x1f15   : > { %v5082_v50 = vadd.f32 %v11399_v9, %v8855_v48  ;;  %v5076_v3 = vpop.f32.mrb[79].mxu1  ;;  %v7801_v48 = vld [vmem:[%s12229_s6 + $0x20] sm:$0xff] }
0x1f16   : > { %v5077_v5 = vadd.f32 %v11405_v14, %v5076_v3 }
0x1f17   : > { %v5098_v7 = vsel %vm901_vm4, %v5082_v50, -inf }
0x1f18   : > { %5099 = vmax.xlane.f32.xlu0 %v5098_v7  ;;  %v8858_v55 = vpop.f32.mrb[80].mxu1  ;;  %v5095_v26 = vsel %vm901_vm4, %v5077_v5, -inf }
0x1f19   : > { %v5092_v32 = vadd.f32 %v11413_v37, %v8858_v55  ;;  %v5086_v20 = vpop.f32.mrb[81].mxu1  ;;  %5096 = vmax.xlane.f32.xlu1 %v5095_v26 }
0x1f1a   : > { %v5087_v6 = vadd.f32 %v11419_v18, %v5086_v20 }
0x1f1b   : > { %v5104_v56 = vsel %vm911_vm5, %v5092_v32, -inf }
0x1f1c   : > { %v5101_v28 = vsel %vm901_vm4, %v5087_v6, -inf }
0x1f1d   : > { %5102 = vmax.xlane.f32.xlu0 %v5101_v28  ;;  %5105 = vmax.xlane.f32.xlu1 %v5104_v56 }
0x1fa5   : > { %v5100_v9 = vpop.xlane.xlu0 %5099 }
0x1fa6   : > { %v5108_v14 = vsub.f32 %v5082_v50, %v5100_v9  ;;  %v5097_v27 = vpop.xlane.xlu1 %5096  ;;  %v7802_v50 = vld [vmem:[%s12229_s6 + $0x28] sm:$0xff] }
0x1fa7   : > { %v5107_v40 = vsub.f32 %v5077_v5, %v5097_v27  ;;  %v9472_v3 = vpack.c.bf16 %v7802_v50, %v7801_v48  ;;  %v7804_v5 = vld [vmem:[%s12229_s6 + $0x38] sm:$0xff] }
0x1fa8   : > { %v5113_v51 = vmul.f32 1.442695, %v5108_v14  ;;  %v9478_v7 = vpack.c.bf16 %v7804_v5, %v7803_v19 }
0x1fa9   : > { %v5111_v39 = vmul.f32 1.442695, %v5107_v40 }
0x1faa   : > { %10109 = vpow2.f32 %v5113_v51  ;;  %v5103_v46 = vpop.xlane.xlu0 %5102  ;;  %v5106_v21 = vpop.xlane.xlu1 %5105 }
0x1fab   : > { %10111 = vpow2.f32 %v5111_v39  ;;  %v5109_v37 = vsub.f32 %v5087_v6, %v5103_v46  ;;  %v5110_v59 = vsub.f32 %v5092_v32, %v5106_v21 }
0x1fad   : > { %v5115_v2 = vmul.f32 1.442695, %v5109_v37  ;;  %v5117_v18 = vmul.f32 1.442695, %v5110_v59 }
0x1faf   : > { %10113 = vpow2.f32 %v5115_v2 }
0x1fb0   : > { %10115 = vpow2.f32 %v5117_v18 }
0x1fb4   : > { %v10110_v31 = vpop.eup %10109 }
0x1fb5   : > { %v10112_v45 = vpop.eup %10111  ;;  %v5122_v23 = vsel %vm901_vm4, %v10110_v31, 0.0 }
0x1fb6   : > { %5123 = vadd.xlane.f32.xlu1 %v5122_v23  ;;  %v5119_v36 = vsel %vm901_vm4, %v10112_v45, 0.0 }
0x1fb7   : > { %5120 = vadd.xlane.f32.xlu0 %v5119_v36 }
0x1fb9   : > { %v10114_v1 = vpop.eup %10113 }
0x1fba   : > { %v10116_v22 = vpop.eup %10115  ;;  %v5125_v35 = vsel %vm901_vm4, %v10114_v1, 0.0 }
0x1fbb   : > { %5126 = vadd.xlane.f32.xlu0 %v5125_v35  ;;  %v5128_v42 = vsel %vm911_vm5, %v10116_v22, 0.0 }
0x1fbc   : > { %5129 = vadd.xlane.f32.xlu1 %v5128_v42 }
0x1fcd   : > { %9870 = vrot.lane.b32.xlu1 %v11372_v16, %s12313_s19 }
0x1fd1   : > { %5253 = vrot.lane.b32.xlu1 %v4688_v17, %s12303_s22  ;;  %9865 = vrot.lane.b32.xlu0 %v11364_v63, %s12313_s19 }
0x1fd5   : > { %5269 = vrot.lane.b32.xlu1 %v4959_v29, %s12304_s18  ;;  %5255 = vrot.lane.b32.xlu0 %v8813_v60, %s12303_s22 }
0x1fd9   : > { %5257 = vrot.lane.b32.xlu1 %v4698_v47, %s12303_s22  ;;  %5271 = vrot.lane.b32.xlu0 %v8841_v58, %s12304_s18 }
0x1fdd   : > { %5273 = vrot.lane.b32.xlu1 %v4969_v62, %s12304_s18  ;;  %5259 = vrot.lane.b32.xlu0 %v8816_v61, %s12303_s22 }
0x1fe1   : > { %5275 = vrot.lane.b32.xlu0 %v8844_v54, %s12304_s18 }
0x2043   : > { %v5124_v16 = vpop.xlane.xlu1 %5123 }
0x2044   : > { %v5121_v33 = vpop.xlane.xlu0 %5120 }
0x2045   : > { %10117 = vrcp.f32 %v5121_v33 }
0x2046   : > { %10119 = vrcp.f32 %v5124_v16 }
0x2048   : > { %v5127_v41 = vpop.xlane.xlu0 %5126 }
0x2049   : > { %v5130_v49 = vpop.xlane.xlu1 %5129  ;;  %10121 = vrcp.f32 %v5127_v41 }
0x204a   : > { %10123 = vrcp.f32 %v5130_v49 }
0x204c   : > { %v9866_v63 = vpop.permute.xlu0 %9865 }
0x204d   : > { %v9868_v43 = vunpack.i.h.bf16 %v9866_v63  ;;  %v9867_v44 = vunpack.i.l.bf16 %v9866_v63  ;;  %v9871_v52 = vpop.permute.xlu1 %9870 }
0x204e   : > { %v9873_v53 = vunpack.i.h.bf16 %v9871_v52  ;;  %v9872_v0 = vunpack.i.l.bf16 %v9871_v52 }
0x204f   : > { %v10118_v34 = vpop.eup %10117  ;;  %v9462_v24 = vpack.c.bf16 %v9868_v43, %v9867_v44 }
0x2050   : > { %v5135_v60 = vmul.f32 %v10118_v34, %v10112_v45  ;;  %v9466_v17 = vpack.c.bf16 %v9873_v53, %v9872_v0  ;;  %v10120_v61 = vpop.eup %10119  ;;  %v5256_v6 = vpop.permute.xlu0 %5255 }
0x2051   : > { %9463 = vmatprep.subr.bf16.mxu0 %v9462_v24  ;;  %v5136_v58 = vmul.f32 %v10120_v61, %v10110_v31  ;;  %v5254_v56 = vpop.permute.xlu1 %5253  ;;  %v5298_v21 = vsel %vm795_vm2, %v11488_v10, %v5256_v6  ;;  %v7886_v61 = vld [vmem:[%s12231_s8 + $0x88] sm:$0xff] }
0x2052   : > { %9465 = vmatpush3.bf16.msra.mxu0 %v9462_v24  ;;  %8867 = vmatprep.mubr.msk.f32.mxu0 %vm901_vm4, %v5135_v60  ;;  %v5297_v39 = vsel %vm795_vm2, %v11490_v11, %v5254_v56 }
0x2053   : > { %9468 = vmatprep.subr.msk.bf16.mxu0 %vm10532_vm8, %v9466_v17  ;;  %v10122_v47 = vpop.eup %10121 }
0x2054   : > { %v10124_v29 = vpop.eup %10123  ;;  %v5137_v54 = vmul.f32 %v10122_v47, %v10114_v1  ;;  %v5272_v28 = vpop.permute.xlu0 %5271 }
0x2055   : > { %v5138_v62 = vmul.f32 %v10124_v29, %v10116_v22  ;;  %v5270_v9 = vpop.permute.xlu1 %5269  ;;  %v5302_v2 = vsel %vm1923_vm9, %v5298_v21, %v5272_v28  ;;  %v7889_v29 = vld [vmem:[%s12231_s8 + $0xa0] sm:$0xff]  ;;  %v7891_v21 = vld [vmem:[%s12231_s8 + $0xb0] sm:$0xff] }
0x2056   : > { %9471 = vmatpush3.bf16.msk.msra.mxu0 %vm10532_vm8, %v9466_v17  ;;  %v5301_v37 = vsel %vm1923_vm9, %v5297_v39, %v5270_v9 }
0x2057   : > { %9474 = vmatprep.subr.msk.bf16.mxu0 %vm10363_vm1, %v9472_v3 }
0x2058   : > { %v5260_v14 = vpop.permute.xlu0 %5259 }
0x2059   : > { %8868 = vmatmul.mubr.msk.f32.vlgmr.msra.gmra.mrb[40].mxu0 %vm901_vm4, %v5136_v58  ;;  %v5258_v27 = vpop.permute.xlu1 %5257  ;;  %v5300_v10 = vsel %vm795_vm2, %v11492_v12, %v5260_v14  ;;  %v7858_v12 = vld [vmem:[%s12230_s7 + $0x1] ss:$0 sm:$0xff] }
0x205a   : > { %8870 = vmatprep.mubr.msk.f32.mxu0 %vm901_vm4, %v5137_v54  ;;  %v5299_v45 = vsel %vm795_vm2, %v11494_v13, %v5258_v27  ;;  %v10221_v13 = vld [vmem:[%s10889_s29] sm:$0xff]  ;;  %v7890_v54 = vld [vmem:[%s12231_s8 + $0xa8] sm:$0xff] }
0x205c   : > { %v5276_v40 = vpop.permute.xlu0 %5275 }
0x205d   : > { %8871 = vmatmul.mubr.msk.f32.gmra.mrb[42].mxu0 %vm901_vm4, %v5138_v62  ;;  %v5274_v51 = vpop.permute.xlu1 %5273  ;;  %v5304_v1 = vsel %vm1923_vm9, %v5300_v10, %v5276_v40  ;;  %v9508_v62 = vpack.c.bf16 %v7890_v54, %v7889_v29 }
0x205e   : > { %v5303_v23 = vsel %vm1923_vm9, %v5299_v45, %v5274_v51  ;;  %v7873_v45 = vld [vmem:[%s12231_s8 + $0x70] sm:$0xff] }
0x205f   : > { %9477 = vmatpush3.bf16.xpose.msk.msra.mxu0 %vm10363_vm1, %v9472_v3 }
0x2060   : > { %9480 = vmatprep.subr.msk.bf16.mxu0 %vm10363_vm1, %v9478_v7 }
0x2067   : > { %9483 = vmatpush3.bf16.xpose.msk.msra.mxu0 %vm10363_vm1, %v9478_v7 }
0x212c   : > { %v8869_v55 = vpop.f32.mrb[40].mxu0 }
0x212d   : > { %5287 = vrot.lane.b32.xlu0 %v8869_v55, %s12305_s27  ;;  %v5230_v26 = vpop.f32.mrb[41].mxu0 }
0x212e   : > { %5285 = vrot.lane.b32.xlu1 %v5230_v26, %s12305_s27 }
0x2130   : > { %v8872_v32 = vpop.f32.mrb[42].mxu0 }
0x2131   : > { %5291 = vrot.lane.b32.xlu0 %v8872_v32, %s12305_s27  ;;  %v5240_v20 = vpop.f32.mrb[43].mxu0 }
0x2132   : > { %5289 = vrot.lane.b32.xlu1 %v5240_v20, %s12305_s27 }
0x219f   : > { %v5288_v46 = vpop.permute.xlu0 %5287 }
0x21a0   : > { %v5286_v59 = vpop.permute.xlu1 %5285  ;;  %v5306_v31 = vsel %vm1928_vm10, %v5302_v2, %v5288_v46  ;;  %v7871_v2 = vld [vmem:[%s12231_s8 + $0x60] sm:$0xff] }
0x21a1   : > { %v5305_v18 = vsel %vm1928_vm10, %v5301_v37, %v5286_v59  ;;  %v7892_v37 = vld [vmem:[%s12231_s8 + $0xb8] sm:$0xff] }
0x21a2   : > { %8881 = vmatprep.mubr.msk.f32.mxu0 %vm640_vm0, %v5305_v18  ;;  %v9514_v59 = vpack.c.bf16 %v7892_v37, %v7891_v21  ;;  %v7872_v18 = vld [vmem:[%s12231_s8 + $0x68] sm:$0xff]  ;;  %v11798_v21 = vld [vmem:[%s12314_s1] ss:$0 sm:$0xff] }
0x21a3   : > { %8882 = vmatmul.mubr.msk.f32.vlgmr.msra.gmra.mrb[44].mxu0 %vm640_vm0, %v5306_v31  ;;  %v5292_v11 = vpop.permute.xlu0 %5291  ;;  %v9484_v31 = vpack.c.bf16 %v7872_v18, %v7871_v2 }
0x21a4   : > { %v5290_v36 = vpop.permute.xlu1 %5289  ;;  %v5308_v35 = vsel %vm1928_vm10, %v5304_v1, %v5292_v11  ;;  %v7874_v11 = vld [vmem:[%s12231_s8 + $0x78] sm:$0xff] }
0x21a5   : > { %v5307_v22 = vsel %vm1928_vm10, %v5303_v23, %v5290_v36  ;;  %9486 = vmatprep.subr.msk.bf16.mxu1 %vm10363_vm1, %v9484_v31  ;;  %v9490_v10 = vpack.c.bf16 %v7874_v11, %v7873_v45  ;;  %v10222_v23 = vld [vmem:[%s10889_s29 + $0x8] sm:$0xff]  ;;  %v7894_v36 = vld [vmem:[%s12232_s9 + $0x1] ss:$0 sm:$0xff] }
0x21a6   : > { %8884 = vmatprep.mubr.msk.f32.mxu0 %vm640_vm0, %v5307_v22  ;;  %9489 = vmatpush3.bf16.xpose.msk.msra.mxu1 %vm10363_vm1, %v9484_v31 }
0x21a7   : > { %8885 = vmatmul.mubr.msk.f32.gmra.mrb[46].mxu0 %vm640_vm0, %v5308_v35  ;;  %9492 = vmatprep.subr.msk.bf16.mxu1 %vm10363_vm1, %v9490_v10 }
0x21a8   : > { %8917 = vmatprep.mubr.msk.f32.mxu0 %vm640_vm0, %v10221_v13 }
0x21ae   : > { %9495 = vmatpush3.bf16.xpose.msk.msra.mxu1 %vm10363_vm1, %v9490_v10 }
0x2276   : > { %v8883_v42 = vpop.f32.mrb[44].mxu0 }
0x2277   : > { %v5411_v16 = vadd.f32 %v8883_v42, %v7858_v12  ;;  %v5405_v33 = vpop.f32.mrb[45].mxu0 }
0x2278   : > { %v5406_v41 = vadd.f32 %v7858_v12, %v5405_v33 }
0x2279   : > { %v5425_v49 = vadd.f32 %v5411_v16, %v11347_v25 }
0x227a   : > { %v5424_v63 = vadd.f32 %v5406_v41, %v11345_v57  ;;  %v8886_v43 = vpop.f32.mrb[46].mxu0  ;;  %v7885_v57 = vld [vmem:[%s12231_s8 + $0x80] sm:$0xff] }
0x227b   : > { %v5421_v44 = vadd.f32 %v8886_v43, %v7858_v12  ;;  %v5415_v52 = vpop.f32.mrb[47].mxu0  ;;  %v5435_v53 = vsel %vm640_vm0, %v5425_v49, 0.0  ;;  %v9496_v47 = vpack.c.bf16 %v7886_v61, %v7885_v57 }
0x227c   : > { %v5416_v0 = vadd.f32 %v7858_v12, %v5415_v52  ;;  %5436 = vadd.xlane.f32.xlu0 %v5435_v53  ;;  %v5432_v34 = vsel %vm640_vm0, %v5424_v63, 0.0  ;;  %v7869_v52 = vld [vmem:[%s12239_s16 + $0x3] ss:$0 sm:$0xff] }
0x227d   : > { %v5427_v24 = vadd.f32 %v5421_v44, %v11355_v8  ;;  %5433 = vadd.xlane.f32.xlu1 %v5432_v34  ;;  %v7887_v8 = vld [vmem:[%s12231_s8 + $0x90] sm:$0xff]  ;;  %9498 = vmatprep.subr.msk.bf16.mxu0 %vm10363_vm1, %v9496_v47 }
0x227e   : > { %v5426_v60 = vadd.f32 %v5416_v0, %v11353_v15  ;;  %v7888_v15 = vld [vmem:[%s12231_s8 + $0x98] sm:$0xff]  ;;  %9501 = vmatpush3.bf16.xpose.msk.msra.mxu0 %vm10363_vm1, %v9496_v47 }
0x227f   : > { %v5441_v17 = vsel %vm2063_vm11, %v5427_v24, 0.0  ;;  %v9502_v58 = vpack.c.bf16 %v7888_v15, %v7887_v8 }
0x2280   : > { %v5438_v25 = vsel %vm640_vm0, %v5426_v60, 0.0 }
0x2281   : > { %5439 = vadd.xlane.f32.xlu0 %v5438_v25  ;;  %5442 = vadd.xlane.f32.xlu1 %v5441_v17 }
0x2282   : > { %9504 = vmatprep.subr.msk.bf16.mxu0 %vm10363_vm1, %v9502_v58 }
0x2286   : > { %9507 = vmatpush3.bf16.xpose.msk.msra.mxu0 %vm10363_vm1, %v9502_v58 }
0x2287   : > { %9510 = vmatprep.subr.msk.bf16.mxu0 %vm10363_vm1, %v9508_v62 }
0x228e   : > { %9513 = vmatpush3.bf16.xpose.msk.msra.mxu0 %vm10363_vm1, %v9508_v62 }
0x228f   : > { %9516 = vmatprep.subr.msk.bf16.mxu0 %vm10363_vm1, %v9514_v59 }
0x2296   : > { %9519 = vmatpush3.bf16.xpose.msk.msra.mxu0 %vm10363_vm1, %v9514_v59 }
0x229d   : > { %8918 = vmatmul.mubr.msk.f32.vlgmr.msra.gmra.mrb[48].mxu0 %vm640_vm0, %v10222_v23 }
0x2309   : > { %v5437_v48 = vpop.xlane.xlu0 %5436 }
0x230a   : > { %v5445_v50 = vmul.f32 0.03125, %v5437_v48  ;;  %v5434_v19 = vpop.xlane.xlu1 %5433 }
0x230b   : > { %v5444_v3 = vmul.f32 0.03125, %v5434_v19 }
0x230c   : > { %v5449_v5 = vsub.f32 %v5425_v49, %v5445_v50 }
0x230d   : > { %v5448_v7 = vsub.f32 %v5424_v63, %v5444_v3 }
0x230e   : > { %v5440_v55 = vpop.xlane.xlu0 %5439  ;;  %v5443_v26 = vpop.xlane.xlu1 %5442  ;;  %v5453_v32 = vmul.f32 %v5449_v5, %v5449_v5 }
0x230f   : > { %v5446_v20 = vmul.f32 0.03125, %v5440_v55  ;;  %v5447_v6 = vmul.f32 0.03125, %v5443_v26  ;;  %v5452_v56 = vmul.f32 %v5448_v7, %v5448_v7 }
0x2310   : > { %v5459_v28 = vsel %vm640_vm0, %v5453_v32, 0.0 }
0x2311   : > { %v5450_v9 = vsub.f32 %v5426_v60, %v5446_v20  ;;  %v5451_v14 = vsub.f32 %v5427_v24, %v5447_v6  ;;  %5460 = vadd.xlane.f32.xlu1 %v5459_v28  ;;  %v5456_v27 = vsel %vm640_vm0, %v5452_v56, 0.0  ;;  %v7870_v24 = vld [vmem:[%s12240_s17 + $0x3] ss:$0 sm:$0xff] }
0x2312   : > { %5457 = vadd.xlane.f32.xlu0 %v5456_v27 }
0x2313   : > { %v5454_v40 = vmul.f32 %v5450_v9, %v5450_v9  ;;  %v5455_v51 = vmul.f32 %v5451_v14, %v5451_v14 }
0x2315   : > { %v5462_v39 = vsel %vm640_vm0, %v5454_v40, 0.0  ;;  %v5465_v46 = vsel %vm2063_vm11, %v5455_v51, 0.0 }
0x2316   : > { %5463 = vadd.xlane.f32.xlu0 %v5462_v39  ;;  %5466 = vadd.xlane.f32.xlu1 %v5465_v46 }
0x232c   : > { %5644 = vrot.lane.b32.xlu0 %v7894_v36, %s12309_s28 }
0x2370   : > { %v8919_v50 = vpop.f32.mrb[48].mxu0 }
0x2371   : > { %v5737_v19 = vpop.f32.mrb[49].mxu0 }
0x239e   : > { %v5461_v1 = vpop.xlane.xlu1 %5460 }
0x239f   : > { %v5469_v22 = vmul.f32 0.03125, %v5461_v1  ;;  %v5458_v35 = vpop.xlane.xlu0 %5457 }
0x23a0   : > { %v5468_v13 = vmul.f32 0.03125, %v5458_v35 }
0x23a1   : > { %v5473_v12 = vadd.f32 1e-05, %v5469_v22 }
0x23a2   : > { %v5472_v42 = vadd.f32 1e-05, %v5468_v13 }
0x23a3   : > { %10125 = vrsqrt.f32 %v5473_v12  ;;  %v5464_v16 = vpop.xlane.xlu0 %5463  ;;  %v5467_v33 = vpop.xlane.xlu1 %5466 }
0x23a4   : > { %10127 = vrsqrt.f32 %v5472_v42  ;;  %v5470_v41 = vmul.f32 0.03125, %v5464_v16  ;;  %v5471_v49 = vmul.f32 0.03125, %v5467_v33 }
0x23a6   : > { %v5474_v63 = vadd.f32 1e-05, %v5470_v41  ;;  %v5475_v43 = vadd.f32 1e-05, %v5471_v49 }
0x23a7   : > { %v5645_v48 = vpop.permute.xlu0 %5644 }
0x23a8   : > { %10129 = vrsqrt.f32 %v5474_v63  ;;  %v5743_v3 = vadd.f32 %v8919_v50, %v5645_v48 }
0x23a9   : > { %10131 = vrsqrt.f32 %v5475_v43 }
0x23ad   : > { %v10126_v44 = vpop.eup %10125 }
0x23ae   : > { %v10128_v53 = vpop.eup %10127  ;;  %v5481_v0 = vmul.f32 %v10126_v44, %v5449_v5  ;;  %v5738_v5 = vadd.f32 %v5737_v19, %v5645_v48 }
0x23af   : > { %v5480_v34 = vmul.f32 %v10128_v53, %v5448_v7 }
0x23b0   : > { %v5491_v60 = vmul.f32 %v7869_v52, %v5481_v0  ;;  %v9520_v7 = vpack.c.bf16 %v5743_v3, %v5738_v5  ;;  %v11773_v55 = vpack.i.bf16 %v5743_v3, %v5738_v5 }
0x23b1   : > { %v5490_v17 = vmul.f32 %v7869_v52, %v5480_v34 }
0x23b2   : > { %v10130_v25 = vpop.eup %10129  ;;  %v11759_v47 = vadd.f32 %v7870_v24, %v5491_v60  ;;  %9522 = vmatprep.subr.msk.bf16.mxu1 %vm10453_vm3, %v9520_v7 }
0x23b3   : > { %v10132_v57 = vpop.eup %10131  ;;  %v11757_v61 = vadd.f32 %v7870_v24, %v5490_v17  ;;  %v5482_v8 = vmul.f32 %v10130_v25, %v5450_v9 }
0x23b4   : > { %v5483_v15 = vmul.f32 %v10132_v57, %v5451_v14 }
0x23b5   : > { %8895 = vmatprep.mubr.msk.f32.mxu1 %vm640_vm0, %v11757_v61  ;;  %v5492_v58 = vmul.f32 %v7869_v52, %v5482_v8 }
0x23b6   : > { %8896 = vmatmul.mubr.msk.f32.vlgmr.msra.gmra.mrb[82].mxu1 %vm640_vm0, %v11759_v47  ;;  %v5493_v29 = vmul.f32 %v7869_v52, %v5483_v15 }
0x23b7   : > { %v11765_v54 = vadd.f32 %v7870_v24, %v5492_v58  ;;  %9525 = vmatpush3.bf16.xpose.msk.msra.mxu1 %vm10453_vm3, %v9520_v7 }
0x23b8   : > { %v11767_v62 = vadd.f32 %v7870_v24, %v5493_v29 }
0x23b9   : > { %8898 = vmatprep.mubr.msk.f32.mxu1 %vm640_vm0, %v11765_v54 }
0x23ba   : > { %8899 = vmatmul.mubr.msk.f32.gmra.mrb[84].mxu1 %vm640_vm0, %v11767_v62 }
0x2489   : > { %v8897_v26 = vpop.f32.mrb[82].mxu1 }
0x248a   : > { %v5613_v32 = vadd.f32 %v8897_v26, %v7894_v36  ;;  %v5607_v20 = vpop.f32.mrb[83].mxu1 }
0x248b   : > { %v5608_v6 = vadd.f32 %v7894_v36, %v5607_v20 }
0x248c   : > { %v11781_v9 = vmul.f32 0.35355338, %v5613_v32 }
0x248d   : > { %v11779_v56 = vmul.f32 0.35355338, %v5608_v6  ;;  %v8900_v28 = vpop.f32.mrb[84].mxu1 }
0x248e   : > { %v5623_v14 = vadd.f32 %v8900_v28, %v7894_v36  ;;  %v5617_v27 = vpop.f32.mrb[85].mxu1 }
0x248f   : > { %v5618_v40 = vadd.f32 %v7894_v36, %v5617_v27  ;;  %8924 = vmatprep.mubr.msk.f32.mxu1 %vm795_vm2, %v11779_v56 }
0x2490   : > { %8925 = vmatmul.mubr.msk.f32.vlgmr.msra.gmra.mrb[86].mxu1 %vm795_vm2, %v11781_v9  ;;  %v11789_v39 = vmul.f32 0.35355338, %v5623_v14 }
0x2491   : > { %v11787_v51 = vmul.f32 0.35355338, %v5618_v40 }
0x2493   : > { %8927 = vmatprep.mubr.msk.f32.mxu1 %vm795_vm2, %v11787_v51 }
0x2494   : > { %8928 = vmatmul.mubr.msk.f32.gmra.mrb[88].mxu1 %vm795_vm2, %v11789_v39 }
0x2563   : > { %v8926_v46 = vpop.f32.mrb[86].mxu1 }
0x2564   : > { %v5843_v37 = vadd.f32 %v11798_v21, %v8926_v46  ;;  %v5837_v59 = vpop.f32.mrb[87].mxu1 }
0x2565   : > { %v5838_v2 = vadd.f32 %v11798_v21, %v5837_v59 }
0x2566   : > { %v5859_v18 = vsel %vm1923_vm9, %v5843_v37, -inf }
0x2567   : > { %5860 = vmax.xlane.f32.xlu1 %v5859_v18  ;;  %v8929_v31 = vpop.f32.mrb[88].mxu1  ;;  %v5856_v10 = vsel %vm1923_vm9, %v5838_v2, -inf }
0x2568   : > { %v5847_v45 = vpop.f32.mrb[89].mxu1  ;;  %v5853_v23 = vadd.f32 %v11798_v21, %v8929_v31 }
0x2569   : > { %v5848_v11 = vadd.f32 %v11798_v21, %v5847_v45 }
0x256a   : > { %v5865_v1 = vsel %vm2497_vm12, %v5853_v23, -inf }
0x256b   : > { %5857 = vmax.xlane.f32.xlu1 %v5856_v10  ;;  %v5862_v36 = vsel %vm1923_vm9, %v5848_v11, -inf }
0x256f   : > { %5863 = vmax.xlane.f32.xlu1 %v5862_v36 }
0x2573   : > { %5866 = vmax.xlane.f32.xlu1 %v5865_v1 }
0x2584   : > { %9875 = vrot.lane.b32.xlu1 %v11773_v55, %s12309_s28 }
0x2588   : > { %9880 = vrot.lane.b32.xlu1 %v11773_v55, %s12296_s20 }
0x258c   : > { %9885 = vrot.lane.b32.xlu1 %v11773_v55, %s12297_s21 }
0x2590   : > { %6005 = vrot.lane.b32.xlu1 %v11781_v9, %s12296_s20 }
0x2594   : > { %6007 = vrot.lane.b32.xlu1 %v11787_v51, %s12296_s20 }
0x2598   : > { %6009 = vrot.lane.b32.xlu1 %v11789_v39, %s12296_s20 }
0x25f4   : > { %v5861_v22 = vpop.xlane.xlu1 %5860 }
0x25f5   : > { %v5869_v35 = vsub.f32 %v5843_v37, %v5861_v22 }
0x25f7   : > { %v5874_v13 = vmul.f32 1.442695, %v5869_v35 }
0x25f8   : > { %v5858_v12 = vpop.xlane.xlu1 %5857 }
0x25f9   : > { %10133 = vpow2.f32 %v5874_v13  ;;  %v5868_v42 = vsub.f32 %v5838_v2, %v5858_v12 }
0x25fb   : > { %v5872_v16 = vmul.f32 1.442695, %v5868_v42 }
0x25fc   : > { %v5864_v33 = vpop.xlane.xlu1 %5863 }
0x25fd   : > { %10135 = vpow2.f32 %v5872_v16  ;;  %v5870_v41 = vsub.f32 %v5848_v11, %v5864_v33 }
0x25ff   : > { %v5876_v44 = vmul.f32 1.442695, %v5870_v41 }
0x2600   : > { %v5867_v49 = vpop.xlane.xlu1 %5866 }
0x2601   : > { %v5871_v63 = vsub.f32 %v5853_v23, %v5867_v49 }
0x2603   : > { %v10134_v43 = vpop.eup %10133  ;;  %v5878_v52 = vmul.f32 1.442695, %v5871_v63 }
0x2604   : > { %v9876_v53 = vpop.permute.xlu1 %9875  ;;  %v5883_v0 = vsel %vm1923_vm9, %v10134_v43, 0.0 }
0x2605   : > { %10137 = vpow2.f32 %v5878_v52  ;;  %v9878_v34 = vunpack.i.h.bf16 %v9876_v53  ;;  %v9877_v24 = vunpack.i.l.bf16 %v9876_v53  ;;  %5884 = vadd.xlane.f32.xlu0 %v5883_v0 }
0x2606   : > { %10139 = vpow2.f32 %v5876_v44 }
0x2607   : > { %v10136_v60 = vpop.eup %10135  ;;  %v9526_v17 = vpack.c.bf16 %v9878_v34, %v9877_v24 }
0x2608   : > { %v9881_v25 = vpop.permute.xlu1 %9880  ;;  %v5880_v57 = vsel %vm1923_vm9, %v10136_v60, 0.0 }
0x2609   : > { %v9883_v8 = vunpack.i.h.bf16 %v9881_v25  ;;  %v9882_v15 = vunpack.i.l.bf16 %v9881_v25  ;;  %5881 = vadd.xlane.f32.xlu1 %v5880_v57  ;;  %9527 = vmatprep.subr.bf16.mxu1 %v9526_v17 }
0x260a   : > { %9529 = vmatpush3.bf16.msra.mxu1 %v9526_v17 }
0x260b   : > { %v9530_v58 = vpack.c.bf16 %v9883_v8, %v9882_v15 }
0x260c   : > { %v9886_v29 = vpop.permute.xlu1 %9885 }
0x260d   : > { %v9888_v48 = vunpack.i.h.bf16 %v9886_v29  ;;  %v9887_v50 = vunpack.i.l.bf16 %v9886_v29  ;;  %9532 = vmatprep.subr.msk.bf16.mxu1 %vm10453_vm3, %v9530_v58 }
0x260f   : > { %v10138_v19 = vpop.eup %10137  ;;  %v9540_v3 = vpack.c.bf16 %v9888_v48, %v9887_v50 }
0x2610   : > { %v5889_v5 = vsel %vm2497_vm12, %v10138_v19, 0.0  ;;  %v10140_v7 = vpop.eup %10139  ;;  %v6006_v32 = vpop.permute.xlu1 %6005 }
0x2611   : > { %5890 = vadd.xlane.f32.xlu1 %v5889_v5  ;;  %9542 = vmatprep.subr.msk.bf16.mxu0 %vm10453_vm3, %v9540_v3  ;;  %v5886_v26 = vsel %vm1923_vm9, %v10140_v7, 0.0 }
0x2612   : > { %9545 = vmatpush3.bf16.xpose.msk.msra.mxu0 %vm10453_vm3, %v9540_v3 }
0x2614   : > { %v6008_v20 = vpop.permute.xlu1 %6007 }
0x2615   : > { %5887 = vadd.xlane.f32.xlu1 %v5886_v26 }
0x2618   : > { %v6010_v6 = vpop.permute.xlu1 %6009 }
0x261b   : > { %6003 = vrot.lane.b32.xlu0 %v11779_v56, %s12296_s20 }
0x261f   : > { %6261 = vrot.lane.b32.xlu0 %v11781_v9, %s12297_s21 }
0x2623   : > { %6265 = vrot.lane.b32.xlu0 %v11789_v39, %s12297_s21 }
0x2626   : > { %9890 = vrot.lane.b32.xlu1 %v11773_v55, %s12298_s23 }
0x2627   : > { %6517 = vrot.lane.b32.xlu0 %v11781_v9, %s12298_s23 }
0x262a   : > { %6259 = vrot.lane.b32.xlu1 %v11779_v56, %s12297_s21 }
0x262b   : > { %6521 = vrot.lane.b32.xlu0 %v11789_v39, %s12298_s23 }
0x262e   : > { %6263 = vrot.lane.b32.xlu1 %v11787_v51, %s12297_s21 }
0x2632   : > { %6515 = vrot.lane.b32.xlu1 %v11779_v56, %s12298_s23 }
0x2636   : > { %6519 = vrot.lane.b32.xlu1 %v11787_v51, %s12298_s23  ;;  %s12315_s23 = sld [smem:[#allocation9_spill]] }
0x2692   : > { %v5885_v28 = vpop.xlane.xlu0 %5884 }
0x2693   : > { %10141 = vrcp.f32 %v5885_v28 }
0x2696   : > { %v5882_v9 = vpop.xlane.xlu1 %5881  ;;  %v6004_v27 = vpop.permute.xlu0 %6003 }
0x2697   : > { %10143 = vrcp.f32 %v5882_v9 }
0x269a   : > { %v6262_v56 = vpop.permute.xlu0 %6261 }
0x269d   : > { %v10142_v40 = vpop.eup %10141 }
0x269e   : > { %v5891_v14 = vpop.xlane.xlu1 %5890  ;;  %v5897_v59 = vmul.f32 %v10142_v40, %v10134_v43  ;;  %v6266_v11 = vpop.permute.xlu0 %6265 }
0x269f   : > { %10145 = vrcp.f32 %v5891_v14 }
0x26a1   : > { %v10144_v39 = vpop.eup %10143 }
0x26a2   : > { %v5888_v46 = vpop.xlane.xlu1 %5887  ;;  %v5896_v37 = vmul.f32 %v10144_v39, %v10136_v60  ;;  %v6518_v35 = vpop.permute.xlu0 %6517 }
0x26a3   : > { %10147 = vrcp.f32 %v5888_v46 }
0x26a4   : > { %8934 = vmatprep.mubr.msk.f32.mxu1 %vm1923_vm9, %v5896_v37 }
0x26a5   : > { %8935 = vmatmul.mubr.msk.f32.vlgmr.msra.gmra.mrb[90].mxu1 %vm1923_vm9, %v5897_v59 }
0x26a6   : > { %9535 = vmatpush3.bf16.xpose.msk.msra.mxu1 %vm10453_vm3, %v9530_v58  ;;  %v9891_v51 = vpop.permute.xlu1 %9890  ;;  %v6522_v12 = vpop.permute.xlu0 %6521 }
0x26a7   : > { %v9893_v2 = vunpack.i.h.bf16 %v9891_v51  ;;  %v9892_v18 = vunpack.i.l.bf16 %v9891_v51 }
0x26a9   : > { %v9550_v31 = vpack.c.bf16 %v9893_v2, %v9892_v18  ;;  %v10146_v10 = vpop.eup %10145 }
0x26aa   : > { %v6260_v45 = vpop.permute.xlu1 %6259  ;;  %v5899_v22 = vmul.f32 %v10146_v10, %v10138_v19 }
0x26ab   : > { %8964 = vmatprep.mubr.msk.f32.mxu0 %vm795_vm2, %v6260_v45  ;;  %9552 = vmatprep.subr.msk.bf16.mxu0 %vm10453_vm3, %v9550_v31 }
0x26ac   : > { %8965 = vmatmul.mubr.msk.f32.vlgmr.msra.gmra.mrb[50].mxu0 %vm795_vm2, %v6262_v56 }
0x26ad   : > { %v10148_v23 = vpop.eup %10147  ;;  %9555 = vmatpush3.bf16.xpose.msk.msra.mxu0 %vm10453_vm3, %v9550_v31 }
0x26ae   : > { %v6264_v36 = vpop.permute.xlu1 %6263  ;;  %v5898_v1 = vmul.f32 %v10148_v23, %v10140_v7 }
0x26af   : > { %8967 = vmatprep.mubr.msk.f32.mxu0 %vm795_vm2, %v6264_v36 }
0x26b0   : > { %8937 = vmatprep.mubr.msk.f32.mxu1 %vm1923_vm9, %v5898_v1  ;;  %8968 = vmatmul.mubr.msk.f32.gmra.mrb[52].mxu0 %vm795_vm2, %v6266_v11 }
0x26b1   : > { %8938 = vmatmul.mubr.msk.f32.gmra.mrb[92].mxu1 %vm1923_vm9, %v5899_v22 }
0x26b2   : > { %v6516_v13 = vpop.permute.xlu1 %6515  ;;  %8944 = vmatprep.mubr.msk.f32.mxu1 %vm795_vm2, %v6004_v27 }
0x26b3   : > { %8984 = vmatprep.mubr.msk.f32.mxu0 %vm795_vm2, %v6516_v13 }
0x26b4   : > { %8985 = vmatmul.mubr.msk.f32.vlgmr.msra.gmra.mrb[54].mxu0 %vm795_vm2, %v6518_v35 }
0x26b5   : > { %8945 = vmatmul.mubr.msk.f32.vlgmr.msra.gmra.mrb[94].mxu1 %vm795_vm2, %v6006_v32 }
0x26b6   : > { %v6520_v38 = vpop.permute.xlu1 %6519  ;;  %8947 = vmatprep.mubr.msk.f32.mxu1 %vm795_vm2, %v6008_v20 }
0x26b7   : > { %8987 = vmatprep.mubr.msk.f32.mxu0 %vm795_vm2, %v6520_v38 }
0x26b8   : > { %8988 = vmatmul.mubr.msk.f32.gmra.mrb[56].mxu0 %vm795_vm2, %v6522_v12 }
0x26b9   : > { %8948 = vmatmul.mubr.msk.f32.gmra.mrb[96].mxu1 %vm795_vm2, %v6010_v6 }
0x2778   : > { %v11872_v42 = vpop.f32.mrb[90].mxu1 }
0x2779   : > { %v11874_v16 = vpop.f32.mrb[91].mxu1 }
0x277f   : > { %v8966_v33 = vpop.f32.mrb[50].mxu0 }
0x2780   : > { %v6349_v41 = vpop.f32.mrb[51].mxu0  ;;  %v6355_v19 = vadd.f32 %v11798_v21, %v8966_v33 }
0x2781   : > { %v6350_v3 = vadd.f32 %v11798_v21, %v6349_v41 }
0x2782   : > { %v6371_v20 = vsel %vm1923_vm9, %v6355_v19, -inf }
0x2783   : > { %v8969_v49 = vpop.f32.mrb[52].mxu0  ;;  %v6368_v32 = vsel %vm1923_vm9, %v6350_v3, -inf }
0x2784   : > { %v11876_v63 = vpop.f32.mrb[92].mxu1  ;;  %v6359_v43 = vpop.f32.mrb[53].mxu0  ;;  %v6365_v7 = vadd.f32 %v11798_v21, %v8969_v49 }
0x2785   : > { %v11878_v44 = vpop.f32.mrb[93].mxu1  ;;  %v6360_v26 = vadd.f32 %v11798_v21, %v6359_v43 }
0x2786   : > { %v6377_v14 = vsel %vm2497_vm12, %v6365_v7, -inf }
0x2787   : > { %v8986_v52 = vpop.f32.mrb[54].mxu0  ;;  %v6374_v9 = vsel %vm1923_vm9, %v6360_v26, -inf }
0x2788   : > { %v8946_v53 = vpop.f32.mrb[94].mxu1  ;;  %v6605_v0 = vpop.f32.mrb[55].mxu0  ;;  %v6611_v6 = vadd.f32 %v11798_v21, %v8986_v52 }
0x2789   : > { %v11881_v34 = vadd.f32 %v11798_v21, %v8946_v53  ;;  %v6093_v24 = vpop.f32.mrb[95].mxu1  ;;  %v6606_v28 = vadd.f32 %v11798_v21, %v6605_v0 }
0x278a   : > { %v11884_v60 = vadd.f32 %v11798_v21, %v6093_v24  ;;  %v6627_v46 = vsel %vm1923_vm9, %v6611_v6, -inf }
0x278b   : > { %v8989_v17 = vpop.f32.mrb[56].mxu0  ;;  %v6115_v25 = vsel %vm1923_vm9, %v11881_v34, -inf  ;;  %v6624_v39 = vsel %vm1923_vm9, %v6606_v28, -inf }
0x278c   : > { %v6615_v57 = vpop.f32.mrb[57].mxu0  ;;  %6116 = vmax.xlane.f32.xlu0 %v6115_v25  ;;  %v8949_v8 = vpop.f32.mrb[96].mxu1  ;;  %v6112_v15 = vsel %vm1923_vm9, %v11884_v60, -inf  ;;  %v6621_v27 = vadd.f32 %v11798_v21, %v8989_v17 }
0x278d   : > { %v11891_v58 = vadd.f32 %v11798_v21, %v8949_v8  ;;  %v6103_v29 = vpop.f32.mrb[97].mxu1  ;;  %6113 = vmax.xlane.f32.xlu1 %v6112_v15  ;;  %v6616_v40 = vadd.f32 %v11798_v21, %v6615_v57 }
0x278e   : > { %v11894_v48 = vadd.f32 %v11798_v21, %v6103_v29  ;;  %v6633_v59 = vsel %vm2497_vm12, %v6621_v27, -inf }
0x278f   : > { %v6121_v50 = vsel %vm2497_vm12, %v11891_v58, -inf  ;;  %v6630_v37 = vsel %vm1923_vm9, %v6616_v40, -inf }
0x2790   : > { %v6118_v5 = vsel %vm1923_vm9, %v11894_v48, -inf }
0x2791   : > { %6119 = vmax.xlane.f32.xlu0 %v6118_v5  ;;  %6122 = vmax.xlane.f32.xlu1 %v6121_v50 }
0x2795   : > { %6369 = vmax.xlane.f32.xlu0 %v6368_v32  ;;  %6372 = vmax.xlane.f32.xlu1 %v6371_v20 }
0x2799   : > { %6375 = vmax.xlane.f32.xlu0 %v6374_v9  ;;  %6378 = vmax.xlane.f32.xlu1 %v6377_v14 }
0x279d   : > { %6625 = vmax.xlane.f32.xlu0 %v6624_v39  ;;  %6628 = vmax.xlane.f32.xlu1 %v6627_v46 }
0x27a1   : > { %6631 = vmax.xlane.f32.xlu0 %v6630_v37  ;;  %6634 = vmax.xlane.f32.xlu1 %v6633_v59 }
0x2819   : > { %v6117_v56 = vpop.xlane.xlu0 %6116 }
0x281a   : > { %v6114_v51 = vpop.xlane.xlu1 %6113  ;;  %v6125_v0 = vsub.f32 %v11881_v34, %v6117_v56 }
0x281b   : > { %v6124_v43 = vsub.f32 %v11884_v60, %v6114_v51 }
0x281c   : > { %v6130_v60 = vmul.f32 1.442695, %v6125_v0 }
0x281d   : > { %v6128_v15 = vmul.f32 1.442695, %v6124_v43 }
0x281e   : > { %v6120_v2 = vpop.xlane.xlu0 %6119  ;;  %v6123_v18 = vpop.xlane.xlu1 %6122 }
0x281f   : > { %v6126_v29 = vsub.f32 %v11894_v48, %v6120_v2  ;;  %v6127_v5 = vsub.f32 %v11891_v58, %v6123_v18 }
0x2821   : > { %v6132_v48 = vmul.f32 1.442695, %v6126_v29  ;;  %v6134_v20 = vmul.f32 1.442695, %v6127_v5 }
0x2822   : > { %v6370_v31 = vpop.xlane.xlu0 %6369  ;;  %v6373_v45 = vpop.xlane.xlu1 %6372 }
0x2823   : > { %v6380_v11 = vsub.f32 %v6350_v3, %v6370_v31  ;;  %v6381_v21 = vsub.f32 %v6355_v19, %v6373_v45 }
0x2825   : > { %v6384_v10 = vmul.f32 1.442695, %v6380_v11  ;;  %v6386_v23 = vmul.f32 1.442695, %v6381_v21 }
0x2826   : > { %v6376_v36 = vpop.xlane.xlu0 %6375  ;;  %v6379_v1 = vpop.xlane.xlu1 %6378 }
0x2827   : > { %10149 = vpow2.f32 %v6384_v10  ;;  %v6382_v22 = vsub.f32 %v6360_v26, %v6376_v36  ;;  %v6383_v35 = vsub.f32 %v6365_v7, %v6379_v1 }
0x2828   : > { %10151 = vpow2.f32 %v6386_v23 }
0x2829   : > { %v6388_v13 = vmul.f32 1.442695, %v6382_v22  ;;  %v6390_v38 = vmul.f32 1.442695, %v6383_v35 }
0x282a   : > { %v6626_v12 = vpop.xlane.xlu0 %6625  ;;  %v6629_v33 = vpop.xlane.xlu1 %6628 }
0x282b   : > { %10153 = vpow2.f32 %v6388_v13  ;;  %v6636_v41 = vsub.f32 %v6606_v28, %v6626_v12  ;;  %v6637_v49 = vsub.f32 %v6611_v6, %v6629_v33 }
0x282c   : > { %10155 = vpow2.f32 %v6390_v38 }
0x282d   : > { %v6640_v52 = vmul.f32 1.442695, %v6636_v41  ;;  %v6642_v53 = vmul.f32 1.442695, %v6637_v49 }
0x282e   : > { %v6632_v24 = vpop.xlane.xlu0 %6631  ;;  %v6635_v17 = vpop.xlane.xlu1 %6634 }
0x282f   : > { %10157 = vpow2.f32 %v6640_v52  ;;  %v6638_v25 = vsub.f32 %v6616_v40, %v6632_v24  ;;  %v6639_v57 = vsub.f32 %v6621_v27, %v6635_v17 }
0x2830   : > { %10159 = vpow2.f32 %v6642_v53 }
0x2831   : > { %v11918_v8 = vpop.eup %10149  ;;  %v6644_v50 = vmul.f32 1.442695, %v6638_v25  ;;  %v6646_v19 = vmul.f32 1.442695, %v6639_v57 }
0x2832   : > { %v11921_v3 = vpop.eup %10151  ;;  %v6392_v34 = vsel %vm1923_vm9, %v11918_v8, 0.0 }
0x2833   : > { %10161 = vpow2.f32 %v6644_v50  ;;  %6393 = vadd.xlane.f32.xlu0 %v6392_v34  ;;  %v6395_v7 = vsel %vm1923_vm9, %v11921_v3, 0.0 }
0x2834   : > { %10163 = vpow2.f32 %v6646_v19  ;;  %6396 = vadd.xlane.f32.xlu1 %v6395_v7 }
0x2835   : > { %v11928_v26 = vpop.eup %10153  ;;  %10165 = vpow2.f32 %v6128_v15 }
0x2836   : > { %v11930_v32 = vpop.eup %10155  ;;  %10167 = vpow2.f32 %v6130_v60  ;;  %v6398_v58 = vsel %vm1923_vm9, %v11928_v26, 0.0 }
0x2837   : > { %6399 = vadd.xlane.f32.xlu0 %v6398_v58  ;;  %v6401_v6 = vsel %vm2497_vm12, %v11930_v32, 0.0  ;;  %10169 = vpow2.f32 %v6132_v48 }
0x2838   : > { %6402 = vadd.xlane.f32.xlu1 %v6401_v6  ;;  %10171 = vpow2.f32 %v6134_v20 }
0x2839   : > { %v11936_v28 = vpop.eup %10157 }
0x283a   : > { %v11938_v9 = vpop.eup %10159  ;;  %v6648_v14 = vsel %vm1923_vm9, %v11936_v28, 0.0 }
0x283b   : > { %6649 = vadd.xlane.f32.xlu0 %v6648_v14  ;;  %v6651_v27 = vsel %vm1923_vm9, %v11938_v9, 0.0 }
0x283c   : > { %6652 = vadd.xlane.f32.xlu1 %v6651_v27 }
0x283d   : > { %v11944_v40 = vpop.eup %10161 }
0x283e   : > { %v11946_v39 = vpop.eup %10163  ;;  %v6654_v46 = vsel %vm1923_vm9, %v11944_v40, 0.0 }
0x283f   : > { %v10166_v37 = vpop.eup %10165  ;;  %6655 = vadd.xlane.f32.xlu0 %v6654_v46  ;;  %v6657_v59 = vsel %vm2497_vm12, %v11946_v39, 0.0 }
0x2840   : > { %v10168_v56 = vpop.eup %10167  ;;  %6658 = vadd.xlane.f32.xlu1 %v6657_v59  ;;  %v6136_v51 = vsel %vm1923_vm9, %v10166_v37, 0.0 }
0x2841   : > { %v10170_v2 = vpop.eup %10169  ;;  %v6139_v18 = vsel %vm1923_vm9, %v10168_v56, 0.0 }
0x2842   : > { %v10172_v31 = vpop.eup %10171  ;;  %v6142_v45 = vsel %vm1923_vm9, %v10170_v2, 0.0 }
0x2843   : > { %6137 = vadd.xlane.f32.xlu0 %v6136_v51  ;;  %v6145_v11 = vsel %vm2497_vm12, %v10172_v31, 0.0 }
0x2844   : > { %6140 = vadd.xlane.f32.xlu1 %v6139_v18 }
0x2847   : > { %6143 = vadd.xlane.f32.xlu0 %v6142_v45 }
0x2848   : > { %6146 = vadd.xlane.f32.xlu1 %v6145_v11 }
0x2859   : > { %9900 = vrot.lane.b32.xlu1 %v11773_v55, %s12300_s24 }
0x285d   : > { %9905 = vrot.lane.b32.xlu1 %v11773_v55, %s12301_s30  ;;  %9895 = vrot.lane.b32.xlu0 %v11773_v55, %s12299_s26 }
0x28c0   : > { %v6394_v21 = vpop.xlane.xlu0 %6393 }
0x28c1   : > { %v6397_v10 = vpop.xlane.xlu1 %6396 }
0x28c4   : > { %v6400_v23 = vpop.xlane.xlu0 %6399 }
0x28c5   : > { %v6403_v36 = vpop.xlane.xlu1 %6402 }
0x28c8   : > { %v6650_v1 = vpop.xlane.xlu0 %6649 }
0x28c9   : > { %v6653_v22 = vpop.xlane.xlu1 %6652 }
0x28cc   : > { %v6656_v35 = vpop.xlane.xlu0 %6655 }
0x28cd   : > { %v6659_v13 = vpop.xlane.xlu1 %6658 }
0x28d0   : > { %v6138_v38 = vpop.xlane.xlu0 %6137 }
0x28d1   : > { %10173 = vrcp.f32 %v6138_v38  ;;  %v6141_v12 = vpop.xlane.xlu1 %6140 }
0x28d2   : > { %10175 = vrcp.f32 %v6141_v12 }
0x28d4   : > { %v6144_v33 = vpop.xlane.xlu0 %6143 }
0x28d5   : > { %10177 = vrcp.f32 %v6144_v33  ;;  %v6147_v41 = vpop.xlane.xlu1 %6146 }
0x28d6   : > { %10179 = vrcp.f32 %v6147_v41 }
0x28d7   : > { %10181 = vrcp.f32 %v6394_v21 }
0x28d8   : > { %v9896_v49 = vpop.permute.xlu0 %9895  ;;  %10183 = vrcp.f32 %v6397_v10 }
0x28d9   : > { %v9898_v43 = vunpack.i.h.bf16 %v9896_v49  ;;  %v9897_v55 = vunpack.i.l.bf16 %v9896_v49  ;;  %v9901_v52 = vpop.permute.xlu1 %9900  ;;  %10185 = vrcp.f32 %v6400_v23 }
0x28da   : > { %v9903_v53 = vunpack.i.h.bf16 %v9901_v52  ;;  %v9902_v0 = vunpack.i.l.bf16 %v9901_v52  ;;  %10187 = vrcp.f32 %v6403_v36 }
0x28db   : > { %v10174_v24 = vpop.eup %10173  ;;  %v9536_v17 = vpack.c.bf16 %v9898_v43, %v9897_v55  ;;  %10189 = vrcp.f32 %v6650_v1 }
0x28dc   : > { %v10176_v25 = vpop.eup %10175  ;;  %v6152_v57 = vmul.f32 %v10174_v24, %v10166_v37  ;;  %v9546_v15 = vpack.c.bf16 %v9903_v53, %v9902_v0  ;;  %10191 = vrcp.f32 %v6653_v22 }
0x28dd   : > { %v9906_v29 = vpop.permute.xlu1 %9905  ;;  %9537 = vmatprep.subr.bf16.mxu1 %v9536_v17  ;;  %v6153_v5 = vmul.f32 %v10176_v25, %v10168_v56  ;;  %10193 = vrcp.f32 %v6656_v35 }
0x28de   : > { %v9908_v50 = vunpack.i.h.bf16 %v9906_v29  ;;  %v9907_v19 = vunpack.i.l.bf16 %v9906_v29  ;;  %9539 = vmatpush3.bf16.msra.mxu1 %v9536_v17  ;;  %8954 = vmatprep.mubr.msk.f32.mxu1 %vm1923_vm9, %v6152_v57  ;;  %10195 = vrcp.f32 %v6659_v13 }
0x28df   : > { %v10178_v60 = vpop.eup %10177  ;;  %9547 = vmatprep.subr.bf16.mxu1 %v9546_v15 }
0x28e0   : > { %v10180_v34 = vpop.eup %10179  ;;  %v6154_v7 = vmul.f32 %v10178_v60, %v10170_v2  ;;  %v9556_v20 = vpack.c.bf16 %v9908_v50, %v9907_v19 }
0x28e1   : > { %v10182_v48 = vpop.eup %10181  ;;  %8955 = vmatmul.mubr.msk.f32.vlgmr.msra.gmra.mrb[98].mxu1 %vm1923_vm9, %v6153_v5  ;;  %v6155_v58 = vmul.f32 %v10180_v34, %v10172_v31 }
0x28e2   : > { %8957 = vmatprep.mubr.msk.f32.mxu1 %vm1923_vm9, %v6154_v7  ;;  %9549 = vmatpush3.bf16.msra.mxu1 %v9546_v15  ;;  %v10184_v6 = vpop.eup %10183  ;;  %v6408_v14 = vmul.f32 %v10182_v48, %v11918_v8 }
0x28e3   : > { %9557 = vmatprep.subr.bf16.mxu1 %v9556_v20  ;;  %v10186_v27 = vpop.eup %10185  ;;  %v6409_v46 = vmul.f32 %v10184_v6, %v11921_v3 }
0x28e4   : > { %v10188_v37 = vpop.eup %10187  ;;  %v6410_v59 = vmul.f32 %v10186_v27, %v11928_v26 }
0x28e5   : > { %8958 = vmatmul.mubr.msk.f32.gmra.mrb[100].mxu1 %vm1923_vm9, %v6155_v58  ;;  %v10190_v56 = vpop.eup %10189  ;;  %v6411_v51 = vmul.f32 %v10188_v37, %v11930_v32  ;;  %v7905_v32 = vld [vmem:[%s12315_s23 + $0x20] sm:$0xff] }
0x28e6   : > { %8974 = vmatprep.mubr.msk.f32.mxu1 %vm1923_vm9, %v6408_v14  ;;  %v10192_v8 = vpop.eup %10191  ;;  %v6664_v2 = vmul.f32 %v10190_v56, %v11936_v28  ;;  %v7906_v28 = vld [vmem:[%s12315_s23 + $0x28] sm:$0xff] }
0x28e7   : > { %v10194_v18 = vpop.eup %10193  ;;  %v6665_v3 = vmul.f32 %v10192_v8, %v11938_v9  ;;  %v9560_v9 = vpack.c.bf16 %v7906_v28, %v7905_v32  ;;  %v7964_v32 = vld [vmem:[%s12235_s12 + $0x48] sm:$0xff] }
0x28e8   : > { %v10196_v31 = vpop.eup %10195  ;;  %v6666_v26 = vmul.f32 %v10194_v18, %v11944_v40  ;;  %v7907_v40 = vld [vmem:[%s12315_s23 + $0x30] sm:$0xff] }
0x28e9   : > { %8975 = vmatmul.mubr.msk.f32.vlgmr.msra.gmra.mrb[102].mxu1 %vm1923_vm9, %v6409_v46  ;;  %v6667_v45 = vmul.f32 %v10196_v31, %v11946_v39  ;;  %9562 = vmatprep.subr.msk.bf16.mxu0 %vm10363_vm1, %v9560_v9  ;;  %v7908_v39 = vld [vmem:[%s12315_s23 + $0x38] sm:$0xff] }
0x28ea   : > { %9559 = vmatpush3.bf16.msra.mxu1 %v9556_v20  ;;  %8977 = vmatprep.mubr.msk.f32.mxu1 %vm1923_vm9, %v6410_v59  ;;  %v9566_v11 = vpack.c.bf16 %v7908_v39, %v7907_v40 }
0x28eb   : > { %9565 = vmatpush3.bf16.xpose.msk.msra.mxu0 %vm10363_vm1, %v9560_v9 }
0x28ec   : > { %9568 = vmatprep.subr.msk.bf16.mxu0 %vm10363_vm1, %v9566_v11 }
0x28ed   : > { %8978 = vmatmul.mubr.msk.f32.gmra.mrb[104].mxu1 %vm1923_vm9, %v6411_v51 }
0x28ee   : > { %8994 = vmatprep.mubr.msk.f32.mxu1 %vm1923_vm9, %v6664_v2 }
0x28f1   : > { %8995 = vmatmul.mubr.msk.f32.vlgmr.msra.gmra.mrb[106].mxu1 %vm1923_vm9, %v6665_v3 }
0x28f2   : > { %8997 = vmatprep.mubr.msk.f32.mxu1 %vm1923_vm9, %v6666_v26 }
0x28f3   : > { %9571 = vmatpush3.bf16.xpose.msk.msra.mxu0 %vm10363_vm1, %v9566_v11 }
0x28f5   : > { %8998 = vmatmul.mubr.msk.f32.gmra.mrb[108].mxu1 %vm1923_vm9, %v6667_v45 }
0x29b4   : > { %v8956_v21 = vpop.f32.mrb[98].mxu1 }
0x29b5   : > { %6777 = vrot.lane.b32.xlu1 %v8956_v21, %s12303_s22  ;;  %v6240_v10 = vpop.f32.mrb[99].mxu1 }
0x29b6   : > { %6775 = vrot.lane.b32.xlu0 %v6240_v10, %s12303_s22 }
0x29b8   : > { %v8959_v23 = vpop.f32.mrb[100].mxu1 }
0x29b9   : > { %6781 = vrot.lane.b32.xlu1 %v8959_v23, %s12303_s22  ;;  %v6250_v36 = vpop.f32.mrb[101].mxu1 }
0x29ba   : > { %6779 = vrot.lane.b32.xlu0 %v6250_v36, %s12303_s22 }
0x29bc   : > { %v8976_v1 = vpop.f32.mrb[102].mxu1 }
0x29bd   : > { %6793 = vrot.lane.b32.xlu1 %v8976_v1, %s12304_s18  ;;  %v6496_v22 = vpop.f32.mrb[103].mxu1 }
0x29be   : > { %6791 = vrot.lane.b32.xlu0 %v6496_v22, %s12304_s18 }
0x29c0   : > { %v8979_v35 = vpop.f32.mrb[104].mxu1 }
0x29c1   : > { %6797 = vrot.lane.b32.xlu1 %v8979_v35, %s12304_s18  ;;  %v6506_v13 = vpop.f32.mrb[105].mxu1 }
0x29c2   : > { %6795 = vrot.lane.b32.xlu0 %v6506_v13, %s12304_s18 }
0x29c4   : > { %v8996_v38 = vpop.f32.mrb[106].mxu1 }
0x29c5   : > { %6809 = vrot.lane.b32.xlu1 %v8996_v38, %s12305_s27  ;;  %v6752_v12 = vpop.f32.mrb[107].mxu1 }
0x29c6   : > { %6807 = vrot.lane.b32.xlu0 %v6752_v12, %s12305_s27 }
0x29c8   : > { %v8999_v33 = vpop.f32.mrb[108].mxu1 }
0x29c9   : > { %6813 = vrot.lane.b32.xlu1 %v8999_v33, %s12305_s27  ;;  %v6762_v41 = vpop.f32.mrb[109].mxu1 }
0x29ca   : > { %6811 = vrot.lane.b32.xlu0 %v6762_v41, %s12305_s27  ;;  %s12316_s27 = sld [smem:[#allocation10_spill]] }
0x2a27   : > { %v6778_v49 = vpop.permute.xlu1 %6777 }
0x2a28   : > { %v6776_v43 = vpop.permute.xlu0 %6775  ;;  %v6820_v15 = vsel %vm795_vm2, %v11872_v42, %v6778_v49 }
0x2a29   : > { %v6819_v25 = vsel %vm795_vm2, %v11874_v16, %v6776_v43 }
0x2a2b   : > { %v6782_v55 = vpop.permute.xlu1 %6781 }
0x2a2c   : > { %v6780_v52 = vpop.permute.xlu0 %6779  ;;  %v6822_v42 = vsel %vm795_vm2, %v11876_v63, %v6782_v55 }
0x2a2d   : > { %v6821_v34 = vsel %vm795_vm2, %v11878_v44, %v6780_v52  ;;  %v7950_v44 = vld [vmem:[%s12316_s27 + $0x1] ss:$0 sm:$0xff]  ;;  %s12317_s27 = sld [smem:[#allocation3_spill]] }
0x2a2f   : > { %v6794_v53 = vpop.permute.xlu1 %6793 }
0x2a30   : > { %v6792_v0 = vpop.permute.xlu0 %6791  ;;  %v6824_v19 = vsel %vm1923_vm9, %v6820_v15, %v6794_v53 }
0x2a31   : > { %v6823_v29 = vsel %vm1923_vm9, %v6819_v25, %v6792_v0  ;;  %v7967_v0 = vld [vmem:[%s12235_s12 + $0x60] sm:$0xff]  ;;  %v7969_v25 = vld [vmem:[%s12235_s12 + $0x70] sm:$0xff] }
0x2a33   : > { %v6798_v24 = vpop.permute.xlu1 %6797  ;;  %s12318_s10 = sshll.u32 %s12317_s27, 5 }
0x2a34   : > { %v6796_v17 = vpop.permute.xlu0 %6795  ;;  %v6826_v20 = vsel %vm1923_vm9, %v6822_v42, %v6798_v24  ;;  %v7968_v24 = vld [vmem:[%s12235_s12 + $0x68] sm:$0xff]  ;;  %s595_s2 = scalar_lea.vmem %s12319_s4, %s12318_s10 }
0x2a35   : > { %v6825_v7 = vsel %vm1923_vm9, %v6821_v34, %v6796_v17  ;;  %v9584_v17 = vpack.c.bf16 %v7968_v24, %v7967_v0  ;;  %v10225_v42 = vld [vmem:[%s10889_s29 + $0x8] sm:$0xff] }
0x2a37   : > { %v6810_v57 = vpop.permute.xlu1 %6809 }
0x2a38   : > { %v6808_v50 = vpop.permute.xlu0 %6807  ;;  %v6828_v5 = vsel %vm1928_vm10, %v6824_v19, %v6810_v57  ;;  %v7970_v57 = vld [vmem:[%s12235_s12 + $0x78] sm:$0xff]  ;;  %v7987_v19 = vld [vmem:[%s12237_s14 + $0x30] sm:$0xff] }
0x2a39   : > { %v6827_v60 = vsel %vm1928_vm10, %v6823_v29, %v6808_v50  ;;  %v9590_v15 = vpack.c.bf16 %v7970_v57, %v7969_v25  ;;  %v7985_v29 = vld [vmem:[%s12237_s14 + $0x20] sm:$0xff]  ;;  %v7986_v50 = vld [vmem:[%s12237_s14 + $0x28] sm:$0xff] }
0x2a3a   : > { %9008 = vmatprep.mubr.msk.f32.mxu0 %vm640_vm0, %v6827_v60  ;;  %v9596_v60 = vpack.c.bf16 %v7986_v50, %v7985_v29 }
0x2a3b   : > { %9009 = vmatmul.mubr.msk.f32.vlgmr.msra.gmra.mrb[58].mxu0 %vm640_vm0, %v6828_v5  ;;  %v6814_v16 = vpop.permute.xlu1 %6813  ;;  %v7988_v5 = vld [vmem:[%s12237_s14 + $0x38] sm:$0xff] }
0x2a3c   : > { %v6812_v48 = vpop.permute.xlu0 %6811  ;;  %v6830_v6 = vsel %vm1928_vm10, %v6826_v20, %v6814_v16  ;;  %v9602_v34 = vpack.c.bf16 %v7988_v5, %v7987_v19  ;;  %9598 = vmatprep.subr.msk.bf16.mxu0 %vm11236_vm14, %v9596_v60  ;;  %v10224_v16 = vld [vmem:[%s10889_s29] sm:$0xff] }
0x2a3d   : > { %v6829_v58 = vsel %vm1928_vm10, %v6825_v7, %v6812_v48  ;;  %9601 = vmatpush3.bf16.xpose.msk.msra.mxu0 %vm11236_vm14, %v9596_v60  ;;  %v9608_v7 = vpack.c.bf16 %v10225_v42, %v10224_v16  ;;  %v602_v16 = vld [vmem:[%s10889_s29 + $0x10] sm:$0xff]  ;;  %v603_v42 = vld [vmem:[%s10889_s29 + $0x18] sm:$0xff] }
0x2a3e   : > { %9011 = vmatprep.mubr.msk.f32.mxu0 %vm640_vm0, %v6829_v58  ;;  %9604 = vmatprep.subr.msk.bf16.mxu0 %vm11236_vm14, %v9602_v34 }
0x2a3f   : > { %9012 = vmatmul.mubr.msk.f32.gmra.mrb[60].mxu0 %vm640_vm0, %v6830_v6 }
0x2a45   : > { %9607 = vmatpush3.bf16.xpose.msk.msra.mxu0 %vm11236_vm14, %v9602_v34 }
0x2a46   : > { %9610 = vmatprep.subr.msk.bf16.mxu0 %vm10363_vm1, %v9608_v7 }
0x2b0e   : > { %v9010_v14 = vpop.f32.mrb[58].mxu0 }
0x2b0f   : > { %v6933_v27 = vadd.f32 %v9010_v14, %v7950_v44  ;;  %v6927_v63 = vpop.f32.mrb[59].mxu0 }
0x2b10   : > { %v6928_v46 = vadd.f32 %v7950_v44, %v6927_v63 }
0x2b11   : > { %v6947_v37 = vadd.f32 %v6933_v27, %v11759_v47 }
0x2b12   : > { %v6946_v59 = vadd.f32 %v6928_v46, %v11757_v61  ;;  %v9013_v56 = vpop.f32.mrb[60].mxu0  ;;  %v7963_v61 = vld [vmem:[%s12235_s12 + $0x40] sm:$0xff] }
0x2b13   : > { %v6937_v51 = vpop.f32.mrb[61].mxu0  ;;  %v6957_v8 = vsel %vm640_vm0, %v6947_v37, 0.0  ;;  %v6943_v2 = vadd.f32 %v9013_v56, %v7950_v44  ;;  %v9572_v28 = vpack.c.bf16 %v7964_v32, %v7963_v61 }
0x2b14   : > { %v6938_v18 = vadd.f32 %v7950_v44, %v6937_v51  ;;  %6958 = vadd.xlane.f32.xlu1 %v6957_v8  ;;  %v6954_v3 = vsel %vm640_vm0, %v6946_v59, 0.0  ;;  %v7961_v51 = vld [vmem:[%s12239_s16 + $0x4] ss:$0 sm:$0xff] }
0x2b15   : > { %6955 = vadd.xlane.f32.xlu0 %v6954_v3  ;;  %v6949_v26 = vadd.f32 %v6943_v2, %v11767_v62  ;;  %v7966_v62 = vld [vmem:[%s12235_s12 + $0x58] sm:$0xff]  ;;  %9574 = vmatprep.subr.msk.bf16.mxu1 %vm10363_vm1, %v9572_v28  ;;  %v7962_v3 = vld [vmem:[%s12240_s17 + $0x4] ss:$0 sm:$0xff] }
0x2b16   : > { %v6948_v31 = vadd.f32 %v6938_v18, %v11765_v54  ;;  %v7965_v54 = vld [vmem:[%s12235_s12 + $0x50] sm:$0xff]  ;;  %9577 = vmatpush3.bf16.xpose.msk.msra.mxu1 %vm10363_vm1, %v9572_v28 }
0x2b17   : > { %v6963_v47 = vsel %vm2063_vm11, %v6949_v26, 0.0  ;;  %v9578_v9 = vpack.c.bf16 %v7966_v62, %v7965_v54 }
0x2b18   : > { %v6960_v45 = vsel %vm640_vm0, %v6948_v31, 0.0 }
0x2b19   : > { %6961 = vadd.xlane.f32.xlu0 %v6960_v45  ;;  %9580 = vmatprep.subr.msk.bf16.mxu1 %vm10363_vm1, %v9578_v9 }
0x2b1d   : > { %6964 = vadd.xlane.f32.xlu0 %v6963_v47 }
0x2b1e   : > { %9583 = vmatpush3.bf16.xpose.msk.msra.mxu1 %vm10363_vm1, %v9578_v9 }
0x2b1f   : > { %9586 = vmatprep.subr.msk.bf16.mxu1 %vm10363_vm1, %v9584_v17 }
0x2b26   : > { %9589 = vmatpush3.bf16.xpose.msk.msra.mxu1 %vm10363_vm1, %v9584_v17 }
0x2b27   : > { %9592 = vmatprep.subr.msk.bf16.mxu1 %vm10363_vm1, %v9590_v15 }
0x2b2e   : > { %9595 = vmatpush3.bf16.xpose.msk.msra.mxu1 %vm10363_vm1, %v9590_v15 }
0x2ba1   : > { %v6959_v40 = vpop.xlane.xlu1 %6958 }
0x2ba2   : > { %v6967_v39 = vmul.f32 0.03125, %v6959_v40  ;;  %v6956_v11 = vpop.xlane.xlu0 %6955 }
0x2ba3   : > { %v6966_v21 = vmul.f32 0.03125, %v6956_v11  ;;  %v7972_v11 = vld [vmem:[%s12236_s13 + $0x1] ss:$0 sm:$0xff] }
0x2ba4   : > { %v12065_v10 = vsub.f32 %v6947_v37, %v6967_v39 }
0x2ba5   : > { %v12067_v23 = vsub.f32 %v6946_v59, %v6966_v21 }
0x2ba6   : > { %v6962_v36 = vpop.xlane.xlu0 %6961  ;;  %v6975_v1 = vmul.f32 %v12065_v10, %v12065_v10 }
0x2ba7   : > { %v6968_v22 = vmul.f32 0.03125, %v6962_v36  ;;  %v6974_v35 = vmul.f32 %v12067_v23, %v12067_v23 }
0x2ba8   : > { %v6981_v13 = vsel %vm640_vm0, %v6975_v1, 0.0 }
0x2ba9   : > { %v12074_v38 = vsub.f32 %v6948_v31, %v6968_v22  ;;  %6982 = vadd.xlane.f32.xlu0 %v6981_v13  ;;  %v6978_v12 = vsel %vm640_vm0, %v6974_v35, 0.0 }
0x2baa   : > { %6979 = vadd.xlane.f32.xlu1 %v6978_v12  ;;  %v6965_v33 = vpop.xlane.xlu0 %6964 }
0x2bab   : > { %v6969_v41 = vmul.f32 0.03125, %v6965_v33  ;;  %v6976_v49 = vmul.f32 %v12074_v38, %v12074_v38 }
0x2bad   : > { %v12079_v43 = vsub.f32 %v6949_v26, %v6969_v41  ;;  %v6984_v55 = vsel %vm640_vm0, %v6976_v49, 0.0  ;;  %v7990_v49 = vld [vmem:[%s12238_s15 + $0x1] ss:$0 sm:$0xff] }
0x2bae   : > { %6985 = vadd.xlane.f32.xlu1 %v6984_v55 }
0x2baf   : > { %v6977_v52 = vmul.f32 %v12079_v43, %v12079_v43 }
0x2bb1   : > { %v6987_v53 = vsel %vm2063_vm11, %v6977_v52, 0.0 }
0x2bb2   : > { %6988 = vadd.xlane.f32.xlu0 %v6987_v53 }
0x2c36   : > { %v6983_v48 = vpop.xlane.xlu0 %6982 }
0x2c37   : > { %v6991_v20 = vmul.f32 0.03125, %v6983_v48  ;;  %v6980_v58 = vpop.xlane.xlu1 %6979  ;;  %v9614_v48 = vpack.c.bf16 %v603_v42, %v602_v16 }
0x2c38   : > { %v6990_v6 = vmul.f32 0.03125, %v6980_v58 }
0x2c39   : > { %v6995_v44 = vadd.f32 1e-05, %v6991_v20  ;;  %v605_v20 = vld [vmem:[%s10889_s29 + $0x28] sm:$0xff] }
0x2c3a   : > { %v6994_v14 = vadd.f32 1e-05, %v6990_v6  ;;  %v606_v6 = vld [vmem:[%s10889_s29 + $0x30] sm:$0xff] }
0x2c3b   : > { %10197 = vrsqrt.f32 %v6995_v44  ;;  %v6986_v27 = vpop.xlane.xlu1 %6985  ;;  %v607_v44 = vld [vmem:[%s10889_s29 + $0x38] sm:$0xff] }
0x2c3c   : > { %10199 = vrsqrt.f32 %v6994_v14  ;;  %v6992_v63 = vmul.f32 0.03125, %v6986_v27  ;;  %v9626_v14 = vpack.c.bf16 %v607_v44, %v606_v6  ;;  %v608_v27 = vld [vmem:[%s10889_s29 + $0x40] sm:$0xff] }
0x2c3e   : > { %v6996_v46 = vadd.f32 1e-05, %v6992_v63  ;;  %v609_v63 = vld [vmem:[%s10889_s29 + $0x48] sm:$0xff] }
0x2c3f   : > { %v6989_v37 = vpop.xlane.xlu0 %6988 }
0x2c40   : > { %10201 = vrsqrt.f32 %v6996_v46  ;;  %v6993_v59 = vmul.f32 0.03125, %v6989_v37  ;;  %v9632_v46 = vpack.c.bf16 %v609_v63, %v608_v27  ;;  %v610_v37 = vld [vmem:[%s10889_s29 + $0x50] sm:$0xff] }
0x2c42   : > { %v6997_v56 = vadd.f32 1e-05, %v6993_v59  ;;  %v611_v59 = vld [vmem:[%s10889_s29 + $0x58] sm:$0xff] }
0x2c44   : > { %10203 = vrsqrt.f32 %v6997_v56  ;;  %v9638_v56 = vpack.c.bf16 %v611_v59, %v610_v37 }
0x2c45   : > { %v10198_v30 = vpop.eup %10197 }
0x2c46   : > { %v10200_v8 = vpop.eup %10199  ;;  %v7003_v2 = vmul.f32 %v10198_v30, %v12065_v10 }
0x2c47   : > { %v7002_v18 = vmul.f32 %v10200_v8, %v12067_v23 }
0x2c48   : > { %v7013_v31 = vmul.f32 %v7961_v51, %v7003_v2 }
0x2c49   : > { %v7012_v26 = vmul.f32 %v7961_v51, %v7002_v18 }
0x2c4a   : > { %v10202_v45 = vpop.eup %10201  ;;  %v7023_v32 = vadd.f32 %v7962_v3, %v7013_v31 }
0x2c4b   : > { %v7022_v47 = vadd.f32 %v7962_v3, %v7012_v26  ;;  %v7004_v61 = vmul.f32 %v10202_v45, %v12074_v38 }
0x2c4d   : > { %9030 = vmatprep.mubr.msk.f32.mxu1 %vm640_vm0, %v7022_v47  ;;  %v7014_v54 = vmul.f32 %v7961_v51, %v7004_v61 }
0x2c4e   : > { %v10204_v28 = vpop.eup %10203  ;;  %9031 = vmatmul.mubr.msk.f32.vlgmr.msra.gmra.mrb[110].mxu1 %vm640_vm0, %v7023_v32 }
0x2c4f   : > { %v7024_v62 = vadd.f32 %v7962_v3, %v7014_v54  ;;  %v7005_v9 = vmul.f32 %v10204_v28, %v12079_v43 }
0x2c51   : > { %9033 = vmatprep.mubr.msk.f32.mxu1 %vm640_vm0, %v7024_v62  ;;  %v7015_v40 = vmul.f32 %v7961_v51, %v7005_v9 }
0x2c53   : > { %v7025_v39 = vadd.f32 %v7962_v3, %v7015_v40 }
0x2c55   : > { %9034 = vmatmul.mubr.msk.f32.gmra.mrb[112].mxu1 %vm640_vm0, %v7025_v39 }
0x2d21   : > { %v9032_v21 = vpop.f32.mrb[110].mxu1 }
0x2d22   : > { %v7151_v10 = vadd.f32 %v9032_v21, %v7972_v11  ;;  %v7145_v23 = vpop.f32.mrb[111].mxu1 }
0x2d23   : > { %v7146_v36 = vadd.f32 %v7972_v11, %v7145_v23  ;;  %v613_v23 = vld [vmem:[%s10889_s29 + $0x68] sm:$0xff] }
0x2d24   : > { %v7165_v22 = vmax.f32 %v7151_v10, 0.0  ;;  %v612_v10 = vld [vmem:[%s10889_s29 + $0x60] sm:$0xff] }
0x2d25   : > { %v7164_v1 = vmax.f32 %v7146_v36, 0.0  ;;  %v9644_v36 = vpack.c.bf16 %v613_v23, %v612_v10 }
0x2d27   : > { %9044 = vmatprep.mubr.msk.f32.mxu0 %vm3810_vm13, %v7164_v1  ;;  %v614_v1 = vld [vmem:[%s10889_s29 + $0x70] sm:$0xff] }
0x2d28   : > { %v9035_v35 = vpop.f32.mrb[112].mxu1  ;;  %9045 = vmatmul.mubr.msk.f32.vlgmr.msra.gmra.mrb[62].mxu0 %vm3810_vm13, %v7165_v22  ;;  %v615_v22 = vld [vmem:[%s10889_s29 + $0x78] sm:$0xff] }
0x2d29   : > { %v7161_v13 = vadd.f32 %v9035_v35, %v7972_v11  ;;  %v7155_v38 = vpop.f32.mrb[113].mxu1  ;;  %9613 = vmatpush3.bf16.xpose.msk.msra.mxu0 %vm10363_vm1, %v9608_v7  ;;  %v604_v7 = vld [vmem:[%s10889_s29 + $0x20] sm:$0xff]  ;;  %v9650_v35 = vpack.c.bf16 %v615_v22, %v614_v1 }
0x2d2a   : > { %v7156_v12 = vadd.f32 %v7972_v11, %v7155_v38  ;;  %v9620_v58 = vpack.c.bf16 %v605_v20, %v604_v7  ;;  %9616 = vmatprep.subr.msk.bf16.mxu0 %vm10363_vm1, %v9614_v48 }
0x2d2b   : > { %v7167_v41 = vmax.f32 %v7161_v13, 0.0 }
0x2d2c   : > { %v7166_v33 = vmax.f32 %v7156_v12, 0.0 }
0x2d2e   : > { %9047 = vmatprep.mubr.msk.f32.mxu0 %vm3810_vm13, %v7166_v33 }
0x2d2f   : > { %9048 = vmatmul.mubr.msk.f32.gmra.mrb[64].mxu0 %vm3810_vm13, %v7167_v41 }
0x2d31   : > { %9619 = vmatpush3.bf16.xpose.msk.msra.mxu0 %vm10363_vm1, %v9614_v48 }
0x2d32   : > { %9622 = vmatprep.subr.msk.bf16.mxu0 %vm10363_vm1, %v9620_v58 }
0x2d39   : > { %9625 = vmatpush3.bf16.xpose.msk.msra.mxu0 %vm10363_vm1, %v9620_v58 }
0x2d3a   : > { %9628 = vmatprep.subr.msk.bf16.mxu0 %vm10363_vm1, %v9626_v14 }
0x2d41   : > { %9631 = vmatpush3.bf16.xpose.msk.msra.mxu0 %vm10363_vm1, %v9626_v14 }
0x2d42   : > { %9634 = vmatprep.subr.msk.bf16.mxu0 %vm10363_vm1, %v9632_v46 }
0x2d49   : > { %9637 = vmatpush3.bf16.xpose.msk.msra.mxu0 %vm10363_vm1, %v9632_v46 }
0x2d4a   : > { %9640 = vmatprep.subr.msk.bf16.mxu0 %vm10363_vm1, %v9638_v56 }
0x2d51   : > { %9643 = vmatpush3.bf16.xpose.msk.msra.mxu0 %vm10363_vm1, %v9638_v56 }
0x2d52   : > { %9646 = vmatprep.subr.msk.bf16.mxu0 %vm10363_vm1, %v9644_v36 }
0x2d59   : > { %9649 = vmatpush3.bf16.xpose.msk.msra.mxu0 %vm10363_vm1, %v9644_v36 }
0x2d5a   : > { %9652 = vmatprep.subr.msk.bf16.mxu0 %vm10363_vm1, %v9650_v35 }
0x2d61   : > { %9655 = vmatpush3.bf16.xpose.msk.msra.mxu0 %vm10363_vm1, %v9650_v35 }
0x2dfb   : > { %v9046_v43 = vpop.f32.mrb[62].mxu0 }
0x2dfc   : > { %v7277_v55 = vadd.f32 %v9046_v43, %v7990_v49  ;;  %v7271_v52 = vpop.f32.mrb[63].mxu0 }
0x2dfd   : > { %v7272_v53 = vadd.f32 %v7990_v49, %v7271_v52 }
0x2dfe   : > { %v7291_v0 = vadd.f32 %v7277_v55, %v7023_v32 }
0x2dff   : > { %v7290_v24 = vadd.f32 %v7272_v53, %v7022_v47 }
0x2e00   : > { %v7301_v17 = vsel %vm640_vm0, %v7291_v0, 0.0 }
0x2e01   : > { %7302 = vadd.xlane.f32.xlu0 %v7301_v17  ;;  %v7298_v25 = vsel %vm640_vm0, %v7290_v24, 0.0 }
0x2e02   : > { %7299 = vadd.xlane.f32.xlu1 %v7298_v25  ;;  %v9049_v57 = vpop.f32.mrb[64].mxu0 }
0x2e03   : > { %v7287_v15 = vadd.f32 %v9049_v57, %v7990_v49  ;;  %v7281_v29 = vpop.f32.mrb[65].mxu0 }
0x2e04   : > { %v7282_v50 = vadd.f32 %v7990_v49, %v7281_v29  ;;  %v8002_v29 = vld [vmem:[%s12240_s17 + $0x5] ss:$0 sm:$0xff] }
0x2e05   : > { %v7293_v19 = vadd.f32 %v7287_v15, %v7025_v39 }
0x2e06   : > { %v7292_v60 = vadd.f32 %v7282_v50, %v7024_v62 }
0x2e07   : > { %v7307_v5 = vsel %vm2063_vm11, %v7293_v19, 0.0 }
0x2e08   : > { %7308 = vadd.xlane.f32.xlu0 %v7307_v5  ;;  %v7304_v34 = vsel %vm640_vm0, %v7292_v60, 0.0 }
0x2e09   : > { %7305 = vadd.xlane.f32.xlu1 %v7304_v34 }
0x2e8e   : > { %v7303_v30 = vpop.xlane.xlu0 %7302 }
0x2e8f   : > { %v7311_v51 = vmul.f32 0.03125, %v7303_v30  ;;  %v7300_v8 = vpop.xlane.xlu1 %7299 }
0x2e90   : > { %v7310_v2 = vmul.f32 0.03125, %v7300_v8 }
0x2e91   : > { %v7315_v18 = vsub.f32 %v7291_v0, %v7311_v51 }
0x2e92   : > { %v7314_v3 = vsub.f32 %v7290_v24, %v7310_v2 }
0x2e93   : > { %v7319_v31 = vmul.f32 %v7315_v18, %v7315_v18 }
0x2e94   : > { %v7318_v26 = vmul.f32 %v7314_v3, %v7314_v3 }
0x2e95   : > { %v7309_v45 = vpop.xlane.xlu0 %7308  ;;  %v7325_v47 = vsel %vm640_vm0, %v7319_v31, 0.0 }
0x2e96   : > { %v7313_v61 = vmul.f32 0.03125, %v7309_v45  ;;  %v7306_v32 = vpop.xlane.xlu1 %7305  ;;  %7326 = vadd.xlane.f32.xlu0 %v7325_v47  ;;  %v7322_v54 = vsel %vm640_vm0, %v7318_v26, 0.0 }
0x2e97   : > { %v7312_v28 = vmul.f32 0.03125, %v7306_v32  ;;  %7323 = vadd.xlane.f32.xlu1 %v7322_v54 }
0x2e98   : > { %v7317_v62 = vsub.f32 %v7293_v19, %v7313_v61 }
0x2e99   : > { %v7316_v9 = vsub.f32 %v7292_v60, %v7312_v28 }
0x2e9a   : > { %v7321_v40 = vmul.f32 %v7317_v62, %v7317_v62 }
0x2e9b   : > { %v7320_v39 = vmul.f32 %v7316_v9, %v7316_v9 }
0x2e9c   : > { %v7331_v11 = vsel %vm2063_vm11, %v7321_v40, 0.0 }
0x2e9d   : > { %7332 = vadd.xlane.f32.xlu0 %v7331_v11  ;;  %v7328_v21 = vsel %vm640_vm0, %v7320_v39, 0.0 }
0x2e9e   : > { %7329 = vadd.xlane.f32.xlu1 %v7328_v21 }
0x2f23   : > { %v7327_v13 = vpop.xlane.xlu0 %7326 }
0x2f24   : > { %v7335_v38 = vmul.f32 0.03125, %v7327_v13  ;;  %v7324_v12 = vpop.xlane.xlu1 %7323 }
0x2f25   : > { %v7334_v33 = vmul.f32 0.03125, %v7324_v12 }
0x2f26   : > { %v7339_v41 = vadd.f32 1e-05, %v7335_v38 }
0x2f27   : > { %v7338_v49 = vadd.f32 1e-05, %v7334_v33 }
0x2f28   : > { %10205 = vrsqrt.f32 %v7339_v41 }
0x2f29   : > { %10207 = vrsqrt.f32 %v7338_v49 }
0x2f2a   : > { %v7333_v43 = vpop.xlane.xlu0 %7332 }
0x2f2b   : > { %v7337_v55 = vmul.f32 0.03125, %v7333_v43  ;;  %v7330_v52 = vpop.xlane.xlu1 %7329 }
0x2f2c   : > { %v7336_v53 = vmul.f32 0.03125, %v7330_v52 }
0x2f2d   : > { %v7341_v0 = vadd.f32 1e-05, %v7337_v55 }
0x2f2e   : > { %v7340_v24 = vadd.f32 1e-05, %v7336_v53 }
0x2f2f   : > { %10209 = vrsqrt.f32 %v7341_v0 }
0x2f30   : > { %10211 = vrsqrt.f32 %v7340_v24 }
0x2f32   : > { %v10206_v17 = vpop.eup %10205 }
0x2f33   : > { %v10208_v25 = vpop.eup %10207  ;;  %v7347_v57 = vmul.f32 %v10206_v17, %v7315_v18 }
0x2f34   : > { %v7346_v15 = vmul.f32 %v10208_v25, %v7314_v3 }
0x2f35   : > { %v7357_v50 = vmul.f32 %v8001_v4, %v7347_v57 }
0x2f36   : > { %v7356_v19 = vmul.f32 %v8001_v4, %v7346_v15 }
0x2f37   : > { %v7367_v34 = vadd.f32 %v8002_v29, %v7357_v50 }
0x2f38   : > { %v7366_v60 = vadd.f32 %v8002_v29, %v7356_v19 }
0x2f39   : > { %v10210_v5 = vpop.eup %10209 }
0x2f3a   : > { %v10212_v16 = vpop.eup %10211  ;;  %9082 = vmatprep.mubr.msk.f32.mxu0 %vm640_vm0, %v7366_v60  ;;  %v7349_v42 = vmul.f32 %v10210_v5, %v7317_v62 }
0x2f3b   : > { %9083 = vmatmul.mubr.msk.f32.vlgmr.msra.gmra.mrb[66].mxu0 %vm640_vm0, %v7367_v34  ;;  %v7348_v7 = vmul.f32 %v10212_v16, %v7316_v9 }
0x2f3c   : > { %v7359_v48 = vmul.f32 %v8001_v4, %v7349_v42 }
0x2f3d   : > { %v7358_v20 = vmul.f32 %v8001_v4, %v7348_v7 }
0x2f3e   : > { %v7369_v6 = vadd.f32 %v8002_v29, %v7359_v48 }
0x2f3f   : > { %v7368_v58 = vadd.f32 %v8002_v29, %v7358_v20 }
0x2f41   : > { %9085 = vmatprep.mubr.msk.f32.mxu0 %vm640_vm0, %v7368_v58 }
0x2f42   : > { %9086 = vmatmul.mubr.msk.f32.gmra.mrb[68].mxu0 %vm640_vm0, %v7369_v6 }
0x300e   : > { %v9084_v44 = vpop.f32.mrb[66].mxu0 }
0x300f   : > { %7510 = vst [vmem:[%s595_s2 + $0x8] sm:$0xff] %v9084_v44  ;;  %v7490_v14 = vpop.f32.mrb[67].mxu0 }
0x3010   : > { %7509 = vst [vmem:[%s595_s2] sm:$0xff] %v7490_v14 }
0x3015   : > { %v9087_v27 = vpop.f32.mrb[68].mxu0 }
0x3016   : > { %7512 = vst [vmem:[%s595_s2 + $0x18] sm:$0x7] %v9087_v27  ;;  %v7500_v63 = vpop.f32.mrb[69].mxu0 }
0x3017   : > { %7511 = vst [vmem:[%s595_s2 + $0x10] sm:$0xff] %v7500_v63 }
0x3018 PF: > { %s12320_s1 = sld [smem:[#allocation2_spill]] }
0x301e   : > { %s28_s27 = sadd.s32 1, %s12320_s1  }
0x301f   : > { %p25_p4 = scmp.ge.s32.totalorder %s28_s27, 4  }
0x3021   :  { %27 = sbr.rel (!%p25_p4) target bundleno = 9 (0x9), region = 147 }

</bundles_post_ra>
